<compile_context>
chip_gen: v6e
topology: v6e:2x2x1
jax: 0.10.0
libtpu: 0.0.40
codegen_flags: <defaults>
</compile_context>

<pallas_src>
import functools

import jax
import jax.numpy as jnp
from jax import lax
from jax.experimental import pallas as pl
from jax.experimental.pallas import tpu as pltpu

HIDDEN = 768


def _dual_linear_kernel(en_ref, hi_ref, wt_ref, b_ref, o_ref):
    # en_ref, hi_ref: (B, K); wt_ref: (K, TN); b_ref: (1, TN); o_ref: (B, 2, TN)
    wt = wt_ref[...]
    bias = b_ref[...]
    y_en = jnp.dot(en_ref[...], wt, preferred_element_type=jnp.float32) + bias
    y_hi = jnp.dot(hi_ref[...], wt, preferred_element_type=jnp.float32) + bias
    o_ref[:, 0, :] = y_en.astype(o_ref.dtype)
    o_ref[:, 1, :] = y_hi.astype(o_ref.dtype)


def _dual_linear(em_en, em_hi, w_t, b, *, n_splits):
    """em_en/em_hi: [B, K]; w_t: [K, N] (already transposed); b: [N] -> [B, 2, N]."""
    B, K = em_en.shape
    K2, N = w_t.shape
    assert K == K2 and em_hi.shape == (B, K)
    assert N % n_splits == 0
    tn = N // n_splits
    assert tn % 128 == 0
    b2 = b.reshape(1, N)

    cost = pl.CostEstimate(
        flops=2 * (2 * B) * K * N,
        transcendentals=0,
        bytes_accessed=(em_en.size + em_hi.size + w_t.size + b2.size + 2 * B * N)
        * em_en.dtype.itemsize,
    )

    return pl.pallas_call(
        _dual_linear_kernel,
        out_shape=jax.ShapeDtypeStruct((B, 2, N), em_en.dtype),
        grid_spec=pltpu.PrefetchScalarGridSpec(
            num_scalar_prefetch=0,
            grid=(n_splits,),  # 1 on v5e/v6e (resident weight); 2 on v7x (one TC per half of N)
            in_specs=[
                pl.BlockSpec((B, K), lambda j: (0, 0)),    # em_en, full slab
                pl.BlockSpec((B, K), lambda j: (0, 0)),    # em_hi, full slab
                pl.BlockSpec((K, tn), lambda j: (0, j)),   # weight [K, N], N-split
                pl.BlockSpec((1, tn), lambda j: (0, j)),   # bias, N-split
            ],
            out_specs=pl.BlockSpec((B, 2, tn), lambda j: (0, 0, j)),
        ),
        compiler_params=pltpu.CompilerParams(
            dimension_semantics=("parallel",),
        ),
        cost_estimate=cost,
    )(em_en, em_hi, w_t, b2)


@functools.partial(jax.jit, static_argnames=("n_splits",))
def model_lin_forward(em_en, em_hi, w_t, b, *, n_splits=1):
    """Matches Model_lin.forward; w_t is the pre-transposed [in, out] weight."""
    return _dual_linear(em_en, em_hi, w_t, b, n_splits=n_splits)


def prepare_params(w, b):
    """One-time, init-side prep: transpose the PyTorch [out, in] weight to [in, out]."""
    return jnp.asarray(w.T), jnp.asarray(b)


def _pick_n_splits():
    """grid split over N: 2 on v7x (two TensorCores per chip), 1 elsewhere."""
    try:
        kind = jax.devices()[0].device_kind.lower()
        if "v7" in kind:
            return 2
    except Exception:
        pass
    return 1


if __name__ == "__main__":
    key = jax.random.PRNGKey(0)
    k_en, k_hi, k_w, k_b = jax.random.split(key, 4)

    B = 2
    em_en = jax.random.normal(k_en, (B, HIDDEN), dtype=jnp.float32)
    em_hi = jax.random.normal(k_hi, (B, HIDDEN), dtype=jnp.float32)

    # Deterministic Linear(768, 768) init (PyTorch-style uniform bound 1/sqrt(fan_in)).
    bound = 1.0 / (HIDDEN ** 0.5)
    w = jax.random.uniform(k_w, (HIDDEN, HIDDEN), jnp.float32, -bound, bound)  # [out, in]
    b = jax.random.uniform(k_b, (HIDDEN,), jnp.float32, -bound, bound)

    # One-time param prep (outside the per-call path).
    w_t, b_p = prepare_params(w, b)
    n_splits = _pick_n_splits()

    out = model_lin_forward(em_en, em_hi, w_t, b_p, n_splits=n_splits)
    jax.block_until_ready(out)

    # Sanity check against a high-precision plain-JAX reference.
    y_en = lax.dot_general(em_en, w, (((1,), (1,)), ((), ())),
                           precision=lax.Precision.HIGHEST,
                           preferred_element_type=jnp.float32) + b
    y_hi = lax.dot_general(em_hi, w, (((1,), (1,)), ((), ())),
                           precision=lax.Precision.HIGHEST,
                           preferred_element_type=jnp.float32) + b
    ref = jnp.stack([y_en, y_hi], axis=1)

    assert out.shape == (B, 2, HIDDEN)
    assert jnp.allclose(out, ref, atol=5e-3, rtol=5e-3)

    print("KERNEL_OK")
</pallas_src>

<mosaic_0001>
module attributes {stable_mosaic.version = 11 : i64} {
  func.func @_dual_linear_kernel(%arg0: i32, %arg1: memref<2x768xf32, #tpu.memory_space<vmem>>, %arg2: memref<2x768xf32, #tpu.memory_space<vmem>>, %arg3: memref<768x768xf32, #tpu.memory_space<vmem>>, %arg4: memref<1x768xf32, #tpu.memory_space<vmem>>, %arg5: memref<2x2x768xf32, #tpu.memory_space<vmem>>) attributes {dimension_semantics = [#tpu.dimension_semantics<parallel>], iteration_bounds = array<i64: 1>, scalar_prefetch = 0 : i64, scratch_operands = 0 : i64, tpu.core_type = #tpu.core_type<tc>, window_params = [{pipeline_mode = #tpu.pipeline_mode<synchronous>, transform_indices = @transform_0, window_bounds = array<i64: 2, 768>}, {pipeline_mode = #tpu.pipeline_mode<synchronous>, transform_indices = @transform_1, window_bounds = array<i64: 2, 768>}, {transform_indices = @transform_2, window_bounds = array<i64: 768, 768>}, {transform_indices = @transform_3, window_bounds = array<i64: 1, 768>}, {transform_indices = @transform_4, window_bounds = array<i64: 2, 2, 768>}]} {
    %c0 = arith.constant 0 : index
    %c0_0 = arith.constant 0 : index
    %0 = vector.load %arg3[%c0, %c0_0] : memref<768x768xf32, #tpu.memory_space<vmem>>, vector<768x768xf32>
    %c0_1 = arith.constant 0 : index
    %c0_2 = arith.constant 0 : index
    %1 = vector.load %arg4[%c0_1, %c0_2] : memref<1x768xf32, #tpu.memory_space<vmem>>, vector<1x768xf32>
    %c0_3 = arith.constant 0 : index
    %c0_4 = arith.constant 0 : index
    %2 = vector.load %arg1[%c0_3, %c0_4] : memref<2x768xf32, #tpu.memory_space<vmem>>, vector<2x768xf32>
    %cst = arith.constant dense<0.000000e+00> : vector<2x768xf32>
    %3 = tpu.matmul %2, %0, %cst {dimension_numbers = #tpu.dot_dimension_numbers<[1], [0], [0], [1], [0, 0, 1, 1], [], []>} : vector<2x768xf32>, vector<768x768xf32>, vector<2x768xf32> -> vector<2x768xf32>
    %4 = vector.broadcast %1 : vector<1x768xf32> to vector<2x768xf32>
    %5 = arith.addf %3, %4 : vector<2x768xf32>
    %c0_5 = arith.constant 0 : index
    %c0_6 = arith.constant 0 : index
    %6 = vector.load %arg2[%c0_5, %c0_6] : memref<2x768xf32, #tpu.memory_space<vmem>>, vector<2x768xf32>
    %cst_7 = arith.constant dense<0.000000e+00> : vector<2x768xf32>
    %7 = tpu.matmul %6, %0, %cst_7 {dimension_numbers = #tpu.dot_dimension_numbers<[1], [0], [0], [1], [0, 0, 1, 1], [], []>} : vector<2x768xf32>, vector<768x768xf32>, vector<2x768xf32> -> vector<2x768xf32>
    %8 = vector.broadcast %1 : vector<1x768xf32> to vector<2x768xf32>
    %9 = arith.addf %7, %8 : vector<2x768xf32>
    %c0_8 = arith.constant 0 : index
    %c0_9 = arith.constant 0 : index
    %c0_10 = arith.constant 0 : index
    %10 = vector.load %arg5[%c0_8, %c0_9, %c0_10] : memref<2x2x768xf32, #tpu.memory_space<vmem>>, vector<2x1x768xf32>
    %11 = vector.shape_cast %10 : vector<2x1x768xf32> to vector<2x768xf32>
    %12 = vector.shape_cast %5 : vector<2x768xf32> to vector<2x1x768xf32>
    tpu.vector_store %arg5[%c0_8, %c0_9, %c0_10], %12 {strides = array<i32>} : memref<2x2x768xf32, #tpu.memory_space<vmem>>, vector<2x1x768xf32>,
    %c0_11 = arith.constant 0 : index
    %c1 = arith.constant 1 : index
    %c0_12 = arith.constant 0 : index
    %13 = vector.load %arg5[%c0_11, %c1, %c0_12] : memref<2x2x768xf32, #tpu.memory_space<vmem>>, vector<2x1x768xf32>
    %14 = vector.shape_cast %13 : vector<2x1x768xf32> to vector<2x768xf32>
    %15 = vector.shape_cast %9 : vector<2x768xf32> to vector<2x1x768xf32>
    tpu.vector_store %arg5[%c0_11, %c1, %c0_12], %15 {strides = array<i32>} : memref<2x2x768xf32, #tpu.memory_space<vmem>>, vector<2x1x768xf32>,
    return
  }
  func.func @transform_0(%arg0: i32) -> (i32, i32) {
    %c0_i32 = arith.constant 0 : i32
    %c0_i32_0 = arith.constant 0 : i32
    %c0_i32_1 = arith.constant 0 : i32
    return %c0_i32, %c0_i32_0 : i32, i32
  }
  func.func @transform_1(%arg0: i32) -> (i32, i32) {
    %c0_i32 = arith.constant 0 : i32
    %c0_i32_0 = arith.constant 0 : i32
    %c0_i32_1 = arith.constant 0 : i32
    return %c0_i32, %c0_i32_0 : i32, i32
  }
  func.func @transform_2(%arg0: i32) -> (i32, i32) {
    %c0_i32 = arith.constant 0 : i32
    %c0_i32_0 = arith.constant 0 : i32
    return %c0_i32, %arg0 : i32, i32
  }
  func.func @transform_3(%arg0: i32) -> (i32, i32) {
    %c0_i32 = arith.constant 0 : i32
    %c0_i32_0 = arith.constant 0 : i32
    return %c0_i32, %arg0 : i32, i32
  }
  func.func @transform_4(%arg0: i32) -> (i32, i32, i32) {
    %c0_i32 = arith.constant 0 : i32
    %c0_i32_0 = arith.constant 0 : i32
    %c0_i32_1 = arith.constant 0 : i32
    return %c0_i32, %c0_i32_0, %arg0 : i32, i32, i32
  }
}

</mosaic_0001>

<bundles_post_ra>
// kernel: model_lin_forward.1
= control target key start
LH: loop header
LB: loop body
LE: loop exit
PB: predicated region body
PF: predicated region fallthrough
CT: control target
= control target key end

     0   :  { %9 = vsyncpa [#allocation3], 0  ;;  %s3069_s0 = inlined_call_operand.hbm [shape: f32[2,768], index: 0, kind: input, shape index: {}]   ;;  %s3070_s1 = inlined_call_operand.hbm [shape: f32[2,768], index: 1, kind: input, shape index: {}]   ;;  %s3071_s2 = inlined_call_operand.hbm [shape: f32[768,768], index: 2, kind: input, shape index: {}]   ;;  %s3072_s3 = inlined_call_operand.vmem [shape: f32[1,768], index: 3, kind: input, shape index: {}]   ;;  %s3073_s4 = inlined_call_operand.hbm [shape: f32[2,2,768], index: 4, kind: output, shape index: {}]  }
   0x1   :  { %10 = vsyncpa [#allocation6], 0 }
   0x2   :  { %11 = vsyncpa [#allocation4], 0  ;;  %s2847_s15 = smov [#allocation5]   ;;  %s2848_s17 = smov [#allocation2]  }
   0x3   :  { %s28_s16 = sshll.u32 %s2847_s15, 4  ;;  %s18_s18 = sshll.u32 %s2848_s17, 4  ;;  %s29_s16 = int_to_ptr.vmem [resolvable:$true] %s28_s16  ;;  %s19_s18 = int_to_ptr.vmem [resolvable:$true] %s18_s18 }
   0x4   :  { %s2769_s19 = scalar_lea.vmem %s29_s16, 192  ;;  %p2774_p1 = scmp.lt.s32.totalorder %s29_s16, %s29_s16 }
   0x5   :  { %p2770_p0 = scmp.ne.s32.totalorder %s29_s16, %s2769_s19  ;;  %p2775_p2 = scmp.lt.s32.totalorder %s2769_s19, %s2769_s19 }
   0x7   :  { %p2776_p3 = por %p2775_p2, %p2774_p1 }
   0x9   :  { %p2777_p4 = pnand %p2776_p3, %p2770_p0 }
   0xb   :  { %2780 = shalt.err (!%p2777_p4)
}
   0xc   :  { %31 = dma.hbm_to_vmem [thread:$0]  %s3070_s1, 192, %s29_s16, [#allocation6]  }
   0xd   :  { %s2789_s22 = scalar_lea.vmem %s19_s18, 192  ;;  %p2794_p6 = scmp.lt.s32.totalorder %s19_s18, %s19_s18 }
   0xe   :  { %p2790_p5 = scmp.ne.s32.totalorder %s19_s18, %s2789_s22  ;;  %p2795_p7 = scmp.lt.s32.totalorder %s2789_s22, %s2789_s22 }
  0x10   :  { %p2796_p8 = por %p2795_p7, %p2794_p6 }
  0x12   :  { %p2797_p9 = pnand %p2796_p8, %p2790_p5 }
  0x14   :  { %2800 = shalt.err (!%p2797_p9)
}
  0x15   :  { %21 = dma.hbm_to_vmem [thread:$0]  %s3069_s0, 192, %s19_s18, [#allocation3]  }
  0x16   :  { %s2849_s25 = smov [#allocation7]  }
  0x17   :  { %s37_s26 = sshll.u32 %s2849_s25, 4  ;;  %s38_s26 = int_to_ptr.vmem [resolvable:$true] %s37_s26 }
  0x18   :  { %s2809_s27 = scalar_lea.vmem %s38_s26, 73728  ;;  %p2814_p11 = scmp.lt.s32.totalorder %s38_s26, %s38_s26 }
  0x19   :  { %p2810_p10 = scmp.ne.s32.totalorder %s38_s26, %s2809_s27  ;;  %p2815_p12 = scmp.lt.s32.totalorder %s2809_s27, %s2809_s27 }
  0x1b   :  { %p2816_p13 = por %p2815_p12, %p2814_p11 }
  0x1d   :  { %p2817_p0 = pnand %p2816_p13, %p2810_p10 }
  0x1f   :  { %2820 = shalt.err (!%p2817_p0)
}
  0x20   :  { %s2850_s1 = smov 768   ;;  %s2851_s28 = smov 48  }
  0x21   :  { %43 = dma.hbm_to_vmem [thread:$0]  %s3071_s2, 73728, %s38_s26, [#allocation6], %s2850_s1, %s2850_s1, %s2851_s28  }
  0x22   :  { %2841 = dma.done.wait [#allocation3], 192  }
  0x23   :  { %2842 = vsyncadd [#allocation3], 4294967104 }
  0x24   :  { %2843 = dma.done.wait [#allocation6], 73920  }
  0x25   :  { %2844 = vsyncadd [#allocation6], 4294893376  ;;  %v146_v0 = vld [vmem:[#allocation7 + $0x2d8] sm:$0xff]  ;;  %v145_v2 = vld [vmem:[#allocation7 + $0x2d0] sm:$0xff] }
  0x26   :  { %v338_v1 = vld [vmem:[#allocation7 + $0x8d8] sm:$0xff]  ;;  %698 = vmatprep.subr.mxu0 %v146_v0  ;;  %v337_v3 = vld [vmem:[#allocation7 + $0x8d0] sm:$0xff]  ;;  %v140_v4 = vld [vmem:[#allocation7 + $0x2a8] sm:$0xff] }
  0x27   :  { %769 = vmatprep.subr.mxu1 %v338_v1  ;;  %v332_v5 = vld [vmem:[#allocation7 + $0x8a8] sm:$0xff]  ;;  %699 = vmatpush1.msra.mxu0 %v145_v2  ;;  %v139_v6 = vld [vmem:[#allocation7 + $0x2a0] sm:$0xff]  ;;  %v134_v8 = vld [vmem:[#allocation7 + $0x278] sm:$0xff] }
  0x28   :  { %770 = vmatpush1.msra.mxu1 %v337_v3  ;;  %v331_v7 = vld [vmem:[#allocation7 + $0x8a0] sm:$0xff]  ;;  %700 = vmatprep.subr.mxu0 %v140_v4  ;;  %v326_v9 = vld [vmem:[#allocation7 + $0x878] sm:$0xff]  ;;  %v133_v10 = vld [vmem:[#allocation7 + $0x270] sm:$0xff] }
  0x29   :  { %771 = vmatprep.subr.mxu1 %v332_v5  ;;  %v325_v11 = vld [vmem:[#allocation7 + $0x870] sm:$0xff]  ;;  %701 = vmatpush1.msra.mxu0 %v139_v6  ;;  %v128_v12 = vld [vmem:[#allocation7 + $0x248] sm:$0xff]  ;;  %v127_v14 = vld [vmem:[#allocation7 + $0x240] sm:$0xff] }
  0x2a   :  { %772 = vmatpush1.msra.mxu1 %v331_v7  ;;  %v320_v13 = vld [vmem:[#allocation7 + $0x848] sm:$0xff]  ;;  %702 = vmatprep.subr.mxu0 %v134_v8  ;;  %v319_v15 = vld [vmem:[#allocation7 + $0x840] sm:$0xff]  ;;  %v122_v16 = vld [vmem:[#allocation7 + $0x218] sm:$0xff] }
  0x2b   :  { %773 = vmatprep.subr.mxu1 %v326_v9  ;;  %703 = vmatpush1.msra.mxu0 %v133_v10  ;;  %v314_v17 = vld [vmem:[#allocation7 + $0x818] sm:$0xff]  ;;  %v121_v18 = vld [vmem:[#allocation7 + $0x210] sm:$0xff]  ;;  %v116_v20 = vld [vmem:[#allocation7 + $0x1e8] sm:$0xff] }
  0x2c   :  { %774 = vmatpush1.msra.mxu1 %v325_v11  ;;  %704 = vmatprep.subr.mxu0 %v128_v12  ;;  %v313_v19 = vld [vmem:[#allocation7 + $0x810] sm:$0xff]  ;;  %v308_v21 = vld [vmem:[#allocation7 + $0x7e8] sm:$0xff]  ;;  %v115_v22 = vld [vmem:[#allocation7 + $0x1e0] sm:$0xff] }
  0x2d   :  { %775 = vmatprep.subr.mxu1 %v320_v13  ;;  %705 = vmatpush1.msra.mxu0 %v127_v14  ;;  %v307_v23 = vld [vmem:[#allocation7 + $0x7e0] sm:$0xff]  ;;  %v110_v24 = vld [vmem:[#allocation7 + $0x1b8] sm:$0xff]  ;;  %v109_v26 = vld [vmem:[#allocation7 + $0x1b0] sm:$0xff] }
  0x2e   :  { %776 = vmatpush1.msra.mxu1 %v319_v15  ;;  %706 = vmatprep.subr.mxu0 %v122_v16  ;;  %v302_v25 = vld [vmem:[#allocation7 + $0x7b8] sm:$0xff]  ;;  %v301_v27 = vld [vmem:[#allocation7 + $0x7b0] sm:$0xff]  ;;  %v104_v28 = vld [vmem:[#allocation7 + $0x188] sm:$0xff] }
  0x2f   :  { %777 = vmatprep.subr.mxu1 %v314_v17  ;;  %707 = vmatpush1.msra.mxu0 %v121_v18  ;;  %v296_v29 = vld [vmem:[#allocation7 + $0x788] sm:$0xff]  ;;  %v103_v30 = vld [vmem:[#allocation7 + $0x180] sm:$0xff]  ;;  %v98_v32 = vld [vmem:[#allocation7 + $0x158] sm:$0xff] }
  0x30   :  { %778 = vmatpush1.msra.mxu1 %v313_v19  ;;  %708 = vmatprep.subr.mxu0 %v116_v20  ;;  %v295_v31 = vld [vmem:[#allocation7 + $0x780] sm:$0xff]  ;;  %v290_v33 = vld [vmem:[#allocation7 + $0x758] sm:$0xff]  ;;  %v97_v34 = vld [vmem:[#allocation7 + $0x150] sm:$0xff] }
  0x31   :  { %779 = vmatprep.subr.mxu1 %v308_v21  ;;  %709 = vmatpush1.msra.mxu0 %v115_v22  ;;  %v289_v35 = vld [vmem:[#allocation7 + $0x750] sm:$0xff]  ;;  %v92_v36 = vld [vmem:[#allocation7 + $0x128] sm:$0xff]  ;;  %v91_v38 = vld [vmem:[#allocation7 + $0x120] sm:$0xff] }
  0x32   :  { %780 = vmatpush1.msra.mxu1 %v307_v23  ;;  %710 = vmatprep.subr.mxu0 %v110_v24  ;;  %v284_v37 = vld [vmem:[#allocation7 + $0x728] sm:$0xff]  ;;  %v283_v39 = vld [vmem:[#allocation7 + $0x720] sm:$0xff]  ;;  %v86_v40 = vld [vmem:[#allocation7 + $0xf8] sm:$0xff] }
  0x33   :  { %781 = vmatprep.subr.mxu1 %v302_v25  ;;  %711 = vmatpush1.msra.mxu0 %v109_v26  ;;  %v278_v41 = vld [vmem:[#allocation7 + $0x6f8] sm:$0xff]  ;;  %v85_v42 = vld [vmem:[#allocation7 + $0xf0] sm:$0xff]  ;;  %v80_v44 = vld [vmem:[#allocation7 + $0xc8] sm:$0xff] }
  0x34   :  { %782 = vmatpush1.msra.mxu1 %v301_v27  ;;  %712 = vmatprep.subr.mxu0 %v104_v28  ;;  %v277_v43 = vld [vmem:[#allocation7 + $0x6f0] sm:$0xff]  ;;  %v272_v45 = vld [vmem:[#allocation7 + $0x6c8] sm:$0xff]  ;;  %v79_v46 = vld [vmem:[#allocation7 + $0xc0] sm:$0xff] }
  0x35   :  { %783 = vmatprep.subr.mxu1 %v296_v29  ;;  %713 = vmatpush1.msra.mxu0 %v103_v30  ;;  %v271_v47 = vld [vmem:[#allocation7 + $0x6c0] sm:$0xff]  ;;  %v74_v48 = vld [vmem:[#allocation7 + $0x98] sm:$0xff]  ;;  %v73_v50 = vld [vmem:[#allocation7 + $0x90] sm:$0xff]  ;;  %v635_v30 = vlaneseq }
  0x36   :  { %784 = vmatpush1.msra.mxu1 %v295_v31  ;;  %714 = vmatprep.subr.mxu0 %v98_v32  ;;  %v266_v49 = vld [vmem:[#allocation7 + $0x698] sm:$0xff]  ;;  %v265_v51 = vld [vmem:[#allocation7 + $0x690] sm:$0xff]  ;;  %v68_v52 = vld [vmem:[#allocation7 + $0x68] sm:$0xff]  ;;  %v2852_v31 = vmov 1983009808  }
  0x37   :  { %785 = vmatprep.subr.mxu1 %v290_v33  ;;  %715 = vmatpush1.msra.mxu0 %v97_v34  ;;  %v260_v53 = vld [vmem:[#allocation7 + $0x668] sm:$0xff]  ;;  %v67_v54 = vld [vmem:[#allocation7 + $0x60] sm:$0xff]  ;;  %v62_v56 = vld [vmem:[#allocation7 + $0x38] sm:$0xff]  ;;  %v669_v32 = vunpack.c.l.s4 %v2852_v31  ;;  %vm3035_vm0 = vcmp.lt.s32.totalorder %v635_v30, 768 }
  0x38   :  { %786 = vmatpush1.msra.mxu1 %v289_v35  ;;  %716 = vmatprep.subr.mxu0 %v92_v36  ;;  %v259_v55 = vld [vmem:[#allocation7 + $0x660] sm:$0xff]  ;;  %v254_v57 = vld [vmem:[#allocation7 + $0x638] sm:$0xff]  ;;  %v61_v58 = vld [vmem:[#allocation7 + $0x30] sm:$0xff] }
  0x39   :  { %787 = vmatprep.subr.mxu1 %v284_v37  ;;  %717 = vmatpush1.msra.mxu0 %v91_v38  ;;  %v253_v59 = vld [vmem:[#allocation7 + $0x630] sm:$0xff]  ;;  %v56_v60 = vld [vmem:[#allocation7 + $0x8] sm:$0xff]  ;;  %v55_v62 = vld [vmem:[#allocation7] sm:$0xff] }
  0x3a   :  { %788 = vmatpush1.msra.mxu1 %v283_v39  ;;  %718 = vmatprep.subr.mxu0 %v86_v40  ;;  %v248_v61 = vld [vmem:[#allocation7 + $0x608] sm:$0xff]  ;;  %v247_v63 = vld [vmem:[#allocation7 + $0x600] sm:$0xff]  ;;  %v242_v0 = vld [vmem:[#allocation7 + $0x5d8] sm:$0xff] }
  0x3b   :  { %789 = vmatprep.subr.mxu1 %v278_v41  ;;  %719 = vmatpush1.msra.mxu0 %v85_v42  ;;  %v434_v1 = vld [vmem:[#allocation7 + $0xbd8] sm:$0xff]  ;;  %v241_v2 = vld [vmem:[#allocation7 + $0x5d0] sm:$0xff]  ;;  %v236_v4 = vld [vmem:[#allocation7 + $0x5a8] sm:$0xff]  ;;  %v2892_v41 = vshrl.u32 %v635_v30, 7  ;;  %v670_v42 = vunpack.c.0.s8 %v669_v32 }
  0x3c   :  { %790 = vmatpush1.msra.mxu1 %v277_v43  ;;  %720 = vmatprep.subr.mxu0 %v80_v44  ;;  %v433_v3 = vld [vmem:[#allocation7 + $0xbd0] sm:$0xff]  ;;  %v428_v5 = vld [vmem:[#allocation7 + $0xba8] sm:$0xff]  ;;  %v235_v6 = vld [vmem:[#allocation7 + $0x5a0] sm:$0xff] }
  0x3d   :  { %791 = vmatprep.subr.mxu1 %v272_v45  ;;  %721 = vmatpush1.msra.mxu0 %v79_v46  ;;  %v427_v7 = vld [vmem:[#allocation7 + $0xba0] sm:$0xff]  ;;  %v230_v8 = vld [vmem:[#allocation7 + $0x578] sm:$0xff]  ;;  %v229_v10 = vld [vmem:[#allocation7 + $0x570] sm:$0xff] }
  0x3e   :  { %792 = vmatpush1.msra.mxu1 %v271_v47  ;;  %722 = vmatprep.subr.mxu0 %v74_v48  ;;  %v422_v9 = vld [vmem:[#allocation7 + $0xb78] sm:$0xff]  ;;  %v421_v11 = vld [vmem:[#allocation7 + $0xb70] sm:$0xff]  ;;  %v224_v12 = vld [vmem:[#allocation7 + $0x548] sm:$0xff] }
  0x3f   :  { %793 = vmatprep.subr.mxu1 %v266_v49  ;;  %723 = vmatpush1.msra.mxu0 %v73_v50  ;;  %v416_v13 = vld [vmem:[#allocation7 + $0xb48] sm:$0xff]  ;;  %v223_v14 = vld [vmem:[#allocation7 + $0x540] sm:$0xff]  ;;  %v218_v16 = vld [vmem:[#allocation7 + $0x518] sm:$0xff] }
  0x40   :  { %794 = vmatpush1.msra.mxu1 %v265_v51  ;;  %724 = vmatprep.subr.mxu0 %v68_v52  ;;  %v415_v15 = vld [vmem:[#allocation7 + $0xb40] sm:$0xff]  ;;  %v410_v17 = vld [vmem:[#allocation7 + $0xb18] sm:$0xff]  ;;  %v217_v18 = vld [vmem:[#allocation7 + $0x510] sm:$0xff]  ;;  %v2895_v52 = vsub.s32 %v670_v42, %v2892_v41 }
  0x41   :  { %795 = vmatprep.subr.mxu1 %v260_v53  ;;  %725 = vmatpush1.msra.mxu0 %v67_v54  ;;  %v409_v19 = vld [vmem:[#allocation7 + $0xb10] sm:$0xff]  ;;  %v212_v20 = vld [vmem:[#allocation7 + $0x4e8] sm:$0xff]  ;;  %v211_v22 = vld [vmem:[#allocation7 + $0x4e0] sm:$0xff] }
  0x42   :  { %796 = vmatpush1.msra.mxu1 %v259_v55  ;;  %726 = vmatprep.subr.mxu0 %v62_v56  ;;  %v404_v21 = vld [vmem:[#allocation7 + $0xae8] sm:$0xff]  ;;  %v403_v23 = vld [vmem:[#allocation7 + $0xae0] sm:$0xff]  ;;  %v206_v24 = vld [vmem:[#allocation7 + $0x4b8] sm:$0xff] }
  0x43   :  { %797 = vmatprep.subr.mxu1 %v254_v57  ;;  %727 = vmatpush1.msra.mxu0 %v61_v58  ;;  %v398_v25 = vld [vmem:[#allocation7 + $0xab8] sm:$0xff]  ;;  %v205_v26 = vld [vmem:[#allocation7 + $0x4b0] sm:$0xff]  ;;  %v200_v28 = vld [vmem:[#allocation7 + $0x488] sm:$0xff] }
  0x44   :  { %798 = vmatpush1.msra.mxu1 %v253_v59  ;;  %728 = vmatprep.subr.mxu0 %v56_v60  ;;  %v397_v27 = vld [vmem:[#allocation7 + $0xab0] sm:$0xff]  ;;  %v392_v29 = vld [vmem:[#allocation7 + $0xa88] sm:$0xff]  ;;  %v199_v33 = vld [vmem:[#allocation7 + $0x480] sm:$0xff] }
  0x45   :  { %799 = vmatprep.subr.mxu1 %v248_v61  ;;  %729 = vmatpush1.msra.mxu0 %v55_v62  ;;  %v391_v34 = vld [vmem:[#allocation7 + $0xa80] sm:$0xff]  ;;  %v194_v35 = vld [vmem:[#allocation7 + $0x458] sm:$0xff]  ;;  %v193_v37 = vld [vmem:[#allocation7 + $0x450] sm:$0xff] }
  0x46   :  { %800 = vmatpush1.msra.mxu1 %v247_v63  ;;  %730 = vmatprep.subr.mxu0 %v242_v0  ;;  %v386_v36 = vld [vmem:[#allocation7 + $0xa58] sm:$0xff]  ;;  %v385_v38 = vld [vmem:[#allocation7 + $0xa50] sm:$0xff]  ;;  %v188_v39 = vld [vmem:[#allocation7 + $0x428] sm:$0xff] }
  0x47   :  { %801 = vmatprep.subr.mxu1 %v434_v1  ;;  %731 = vmatpush2.msra.mxu0 %v241_v2  ;;  %v380_v40 = vld [vmem:[#allocation7 + $0xa28] sm:$0xff]  ;;  %v187_v43 = vld [vmem:[#allocation7 + $0x420] sm:$0xff]  ;;  %v182_v45 = vld [vmem:[#allocation7 + $0x3f8] sm:$0xff] }
  0x48   :  { %802 = vmatpush2.msra.mxu1 %v433_v3  ;;  %732 = vmatprep.subr.mxu0 %v236_v4  ;;  %v379_v44 = vld [vmem:[#allocation7 + $0xa20] sm:$0xff]  ;;  %v374_v46 = vld [vmem:[#allocation7 + $0x9f8] sm:$0xff]  ;;  %v181_v47 = vld [vmem:[#allocation7 + $0x3f0] sm:$0xff] }
  0x49   :  { %803 = vmatprep.subr.mxu1 %v428_v5  ;;  %733 = vmatpush2.msra.mxu0 %v235_v6  ;;  %v373_v48 = vld [vmem:[#allocation7 + $0x9f0] sm:$0xff]  ;;  %v632_v49 = vld [vmem:[#allocation2] sm:$0xff]  ;;  %v175_v53 = vld [vmem:[#allocation7 + $0x3c0] sm:$0xff] }
  0x4a   :  { %804 = vmatpush2.msra.mxu1 %v427_v7  ;;  %734 = vmatprep.subr.mxu0 %v230_v8  ;;  %v176_v50 = vld [vmem:[#allocation7 + $0x3c8] sm:$0xff]  ;;  %v367_v54 = vld [vmem:[#allocation7 + $0x9c0] sm:$0xff]  ;;  %v170_v55 = vld [vmem:[#allocation7 + $0x398] sm:$0xff]  ;;  %v667_v57 = vcombine.high %v632_v49, %v632_v49  ;;  %v2898_v62 = vrot.slane %v632_v49, %v2895_v52 }
  0x4b   :  { %805 = vmatprep.subr.mxu1 %v422_v9  ;;  %735 = vmatpush2.msra.mxu0 %v229_v10  ;;  %v368_v51 = vld [vmem:[#allocation7 + $0x9c8] sm:$0xff]  ;;  %v362_v56 = vld [vmem:[#allocation7 + $0x998] sm:$0xff]  ;;  %v169_v58 = vld [vmem:[#allocation7 + $0x390] sm:$0xff] }
  0x4c   :  { %806 = vmatpush2.msra.mxu1 %v421_v11  ;;  %736 = vmatprep.subr.mxu0 %v224_v12  ;;  %v361_v59 = vld [vmem:[#allocation7 + $0x990] sm:$0xff]  ;;  %v164_v60 = vld [vmem:[#allocation7 + $0x368] sm:$0xff]  ;;  %v163_v63 = vld [vmem:[#allocation7 + $0x360] sm:$0xff]  ;;  %v2901_v3 = vrot.slane %v667_v57, %v2895_v52  ;;  %v2905_v8 = vcombine.high %v2898_v62, %v2898_v62 }
  0x4d   :  { %807 = vmatprep.subr.mxu1 %v416_v13  ;;  %737 = vmatpush2.msra.mxu0 %v223_v14  ;;  %v356_v61 = vld [vmem:[#allocation7 + $0x968] sm:$0xff]  ;;  %v355_v0 = vld [vmem:[#allocation7 + $0x960] sm:$0xff]  ;;  %v158_v1 = vld [vmem:[#allocation7 + $0x338] sm:$0xff] }
  0x4e   :  { %808 = vmatpush2.msra.mxu1 %v415_v15  ;;  %738 = vmatprep.subr.mxu0 %v218_v16  ;;  %v350_v2 = vld [vmem:[#allocation7 + $0x938] sm:$0xff]  ;;  %v157_v4 = vld [vmem:[#allocation7 + $0x330] sm:$0xff]  ;;  %v152_v6 = vld [vmem:[#allocation7 + $0x308] sm:$0xff]  ;;  %v2909_v11 = vcombine.high %v2901_v3, %v2901_v3 }
  0x4f   :  { %809 = vmatprep.subr.mxu1 %v410_v17  ;;  %739 = vmatpush2.msra.mxu0 %v217_v18  ;;  %v349_v5 = vld [vmem:[#allocation7 + $0x930] sm:$0xff]  ;;  %v344_v7 = vld [vmem:[#allocation7 + $0x908] sm:$0xff]  ;;  %v151_v9 = vld [vmem:[#allocation7 + $0x300] sm:$0xff] }
  0x50   :  { %810 = vmatpush2.msra.mxu1 %v409_v19  ;;  %740 = vmatprep.subr.mxu0 %v212_v20  ;;  %v343_v10 = vld [vmem:[#allocation7 + $0x900] sm:$0xff]  ;;  %v530_v12 = vld [vmem:[#allocation7 + $0xed8] sm:$0xff]  ;;  %v148_v13 = vld [vmem:[#allocation7 + $0x2e8] sm:$0xff] }
  0x51   :  { %811 = vmatprep.subr.mxu1 %v404_v21  ;;  %741 = vmatpush2.msra.mxu0 %v211_v22  ;;  %v529_v14 = vld [vmem:[#allocation7 + $0xed0] sm:$0xff]  ;;  %v147_v15 = vld [vmem:[#allocation7 + $0x2e0] sm:$0xff]  ;;  %v524_v16 = vld [vmem:[#allocation7 + $0xea8] sm:$0xff] }
  0x52   :  { %812 = vmatpush2.msra.mxu1 %v403_v23  ;;  %742 = vmatprep.subr.mxu0 %v206_v24  ;;  %v142_v17 = vld [vmem:[#allocation7 + $0x2b8] sm:$0xff]  ;;  %v523_v18 = vld [vmem:[#allocation7 + $0xea0] sm:$0xff]  ;;  %v141_v19 = vld [vmem:[#allocation7 + $0x2b0] sm:$0xff] }
  0x53   :  { %813 = vmatprep.subr.mxu1 %v398_v25  ;;  %743 = vmatpush2.msra.mxu0 %v205_v26  ;;  %v518_v20 = vld [vmem:[#allocation7 + $0xe78] sm:$0xff]  ;;  %v136_v21 = vld [vmem:[#allocation7 + $0x288] sm:$0xff]  ;;  %v517_v22 = vld [vmem:[#allocation7 + $0xe70] sm:$0xff] }
  0x54   :  { %814 = vmatpush2.msra.mxu1 %v397_v27  ;;  %744 = vmatprep.subr.mxu0 %v200_v28  ;;  %v135_v23 = vld [vmem:[#allocation7 + $0x280] sm:$0xff]  ;;  %v512_v24 = vld [vmem:[#allocation7 + $0xe48] sm:$0xff]  ;;  %v130_v25 = vld [vmem:[#allocation7 + $0x258] sm:$0xff] }
  0x55   :  { %815 = vmatprep.subr.mxu1 %v392_v29  ;;  %745 = vmatpush2.msra.mxu0 %v199_v33  ;;  %v511_v26 = vld [vmem:[#allocation7 + $0xe40] sm:$0xff]  ;;  %v129_v27 = vld [vmem:[#allocation7 + $0x250] sm:$0xff]  ;;  %v506_v28 = vld [vmem:[#allocation7 + $0xe18] sm:$0xff] }
  0x56   :  { %816 = vmatpush2.msra.mxu1 %v391_v34  ;;  %746 = vmatprep.subr.mxu0 %v194_v35  ;;  %v124_v29 = vld [vmem:[#allocation7 + $0x228] sm:$0xff]  ;;  %v505_v31 = vld [vmem:[#allocation7 + $0xe10] sm:$0xff]  ;;  %v123_v32 = vld [vmem:[#allocation7 + $0x220] sm:$0xff] }
  0x57   :  { %817 = vmatprep.subr.mxu1 %v386_v36  ;;  %747 = vmatpush2.msra.mxu0 %v193_v37  ;;  %v500_v33 = vld [vmem:[#allocation7 + $0xde8] sm:$0xff]  ;;  %v118_v34 = vld [vmem:[#allocation7 + $0x1f8] sm:$0xff]  ;;  %v499_v35 = vld [vmem:[#allocation7 + $0xde0] sm:$0xff] }
  0x58   :  { %818 = vmatpush2.msra.mxu1 %v385_v38  ;;  %748 = vmatprep.subr.mxu0 %v188_v39  ;;  %v117_v36 = vld [vmem:[#allocation7 + $0x1f0] sm:$0xff]  ;;  %v494_v37 = vld [vmem:[#allocation7 + $0xdb8] sm:$0xff]  ;;  %v112_v38 = vld [vmem:[#allocation7 + $0x1c8] sm:$0xff] }
  0x59   :  { %819 = vmatprep.subr.mxu1 %v380_v40  ;;  %749 = vmatpush2.msra.mxu0 %v187_v43  ;;  %v493_v39 = vld [vmem:[#allocation7 + $0xdb0] sm:$0xff]  ;;  %v111_v40 = vld [vmem:[#allocation7 + $0x1c0] sm:$0xff]  ;;  %v488_v42 = vld [vmem:[#allocation7 + $0xd88] sm:$0xff] }
  0x5a   :  { %820 = vmatpush2.msra.mxu1 %v379_v44  ;;  %750 = vmatprep.subr.mxu0 %v182_v45  ;;  %v106_v43 = vld [vmem:[#allocation7 + $0x198] sm:$0xff]  ;;  %v487_v44 = vld [vmem:[#allocation7 + $0xd80] sm:$0xff]  ;;  %v105_v45 = vld [vmem:[#allocation7 + $0x190] sm:$0xff] }
  0x5b   :  { %821 = vmatprep.subr.mxu1 %v374_v46  ;;  %751 = vmatpush2.msra.mxu0 %v181_v47  ;;  %v482_v46 = vld [vmem:[#allocation7 + $0xd58] sm:$0xff]  ;;  %v100_v47 = vld [vmem:[#allocation7 + $0x168] sm:$0xff]  ;;  %v99_v49 = vld [vmem:[#allocation7 + $0x160] sm:$0xff] }
  0x5c   :  { %822 = vmatpush2.msra.mxu1 %v373_v48  ;;  %752 = vmatprep.subr.mxu0 %v176_v50  ;;  %v481_v48 = vld [vmem:[#allocation7 + $0xd50] sm:$0xff]  ;;  %v476_v50 = vld [vmem:[#allocation7 + $0xd28] sm:$0xff] }
  0x5d   :  { %823 = vmatprep.subr.mxu1 %v368_v51  ;;  %753 = vmatpush2.msra.mxu0 %v175_v53  ;;  %v94_v51 = vld [vmem:[#allocation7 + $0x138] sm:$0xff]  ;;  %v475_v53 = vld [vmem:[#allocation7 + $0xd20] sm:$0xff]  ;;  %v469_v57 = vld [vmem:[#allocation7 + $0xcf0] sm:$0xff] }
  0x5e   :  { %824 = vmatpush2.msra.mxu1 %v367_v54  ;;  %754 = vmatprep.subr.mxu0 %v170_v55  ;;  %v93_v54 = vld [vmem:[#allocation7 + $0x130] sm:$0xff]  ;;  %v470_v55 = vld [vmem:[#allocation7 + $0xcf8] sm:$0xff] }
  0x5f   :  { %825 = vmatprep.subr.mxu1 %v362_v56  ;;  %755 = vmatpush2.msra.mxu0 %v169_v58  ;;  %v88_v56 = vld [vmem:[#allocation7 + $0x108] sm:$0xff]  ;;  %v87_v58 = vld [vmem:[#allocation7 + $0x100] sm:$0xff] }
  0x60   :  { %826 = vmatpush2.msra.mxu1 %v361_v59  ;;  %756 = vmatprep.subr.mxu0 %v164_v60  ;;  %v464_v59 = vld [vmem:[#allocation7 + $0xcc8] sm:$0xff]  ;;  %v82_v60 = vld [vmem:[#allocation7 + $0xd8] sm:$0xff] }
  0x61   :  { %827 = vmatprep.subr.mxu1 %v356_v61  ;;  %757 = vmatpush2.msra.mxu0 %v163_v63  ;;  %v463_v61 = vld [vmem:[#allocation7 + $0xcc0] sm:$0xff]  ;;  %v81_v63 = vld [vmem:[#allocation7 + $0xd0] sm:$0xff] }
  0x62   :  { %828 = vmatpush2.msra.mxu1 %v355_v0  ;;  %758 = vmatprep.subr.mxu0 %v158_v1  ;;  %v458_v0 = vld [vmem:[#allocation7 + $0xc98] sm:$0xff]  ;;  %v76_v1 = vld [vmem:[#allocation7 + $0xa8] sm:$0xff] }
  0x63   :  { %829 = vmatprep.subr.mxu1 %v350_v2  ;;  %759 = vmatpush2.msra.mxu0 %v157_v4  ;;  %v457_v2 = vld [vmem:[#allocation7 + $0xc90] sm:$0xff]  ;;  %v75_v4 = vld [vmem:[#allocation7 + $0xa0] sm:$0xff] }
  0x64   :  { %830 = vmatpush2.msra.mxu1 %v349_v5  ;;  %760 = vmatprep.subr.mxu0 %v152_v6  ;;  %v452_v5 = vld [vmem:[#allocation7 + $0xc68] sm:$0xff]  ;;  %v70_v6 = vld [vmem:[#allocation7 + $0x78] sm:$0xff] }
  0x65   :  { %831 = vmatprep.subr.mxu1 %v344_v7  ;;  %761 = vmatpush2.msra.mxu0 %v151_v9  ;;  %v451_v7 = vld [vmem:[#allocation7 + $0xc60] sm:$0xff]  ;;  %v69_v9 = vld [vmem:[#allocation7 + $0x70] sm:$0xff] }
  0x66   :  { %762 = vmatprep.mubr.f32.mxu0 %v2905_v8  ;;  %832 = vmatpush2.msra.mxu1 %v343_v10  ;;  %v446_v10 = vld [vmem:[#allocation7 + $0xc38] sm:$0xff] }
  0x67   :  { %763 = vmatmul.mubr.f32.vlgmr.msra.gmra.mxu0 %v2898_v62  ;;  %833 = vmatprep.mubr.f32.mxu1 %v2909_v11 }
  0x68   :  { %840 = vmatprep.subr.mxu0 %v530_v12  ;;  %911 = vmatprep.subr.mxu1 %v148_v13  ;;  %v64_v12 = vld [vmem:[#allocation7 + $0x48] sm:$0xff]  ;;  %v445_v13 = vld [vmem:[#allocation7 + $0xc30] sm:$0xff] }
  0x69   :  { %834 = vmatmul.mubr.f32.vlgmr.msra.gmra.mxu1 %v2901_v3  ;;  %841 = vmatpush1.msra.mxu0 %v529_v14  ;;  %v63_v14 = vld [vmem:[#allocation7 + $0x40] sm:$0xff] }
  0x6a   :  { %912 = vmatpush1.msra.mxu1 %v147_v15  ;;  %842 = vmatprep.subr.mxu0 %v524_v16  ;;  %v440_v15 = vld [vmem:[#allocation7 + $0xc08] sm:$0xff]  ;;  %v58_v16 = vld [vmem:[#allocation7 + $0x18] sm:$0xff] }
  0x6b   :  { %913 = vmatprep.subr.mxu1 %v142_v17  ;;  %843 = vmatpush1.msra.mxu0 %v523_v18  ;;  %v439_v17 = vld [vmem:[#allocation7 + $0xc00] sm:$0xff]  ;;  %v57_v18 = vld [vmem:[#allocation7 + $0x10] sm:$0xff] }
  0x6c   :  { %914 = vmatpush1.msra.mxu1 %v141_v19  ;;  %844 = vmatprep.subr.mxu0 %v518_v20  ;;  %v626_v19 = vld [vmem:[#allocation7 + $0x11d8] sm:$0xff]  ;;  %v244_v20 = vld [vmem:[#allocation7 + $0x5e8] sm:$0xff] }
  0x6d   :  { %915 = vmatprep.subr.mxu1 %v136_v21  ;;  %845 = vmatpush1.msra.mxu0 %v517_v22  ;;  %v625_v21 = vld [vmem:[#allocation7 + $0x11d0] sm:$0xff]  ;;  %v243_v22 = vld [vmem:[#allocation7 + $0x5e0] sm:$0xff] }
  0x6e   :  { %916 = vmatpush1.msra.mxu1 %v135_v23  ;;  %846 = vmatprep.subr.mxu0 %v512_v24  ;;  %v620_v23 = vld [vmem:[#allocation7 + $0x11a8] sm:$0xff]  ;;  %v238_v24 = vld [vmem:[#allocation7 + $0x5b8] sm:$0xff] }
  0x6f   :  { %917 = vmatprep.subr.mxu1 %v130_v25  ;;  %847 = vmatpush1.msra.mxu0 %v511_v26  ;;  %v619_v25 = vld [vmem:[#allocation7 + $0x11a0] sm:$0xff]  ;;  %v237_v26 = vld [vmem:[#allocation7 + $0x5b0] sm:$0xff] }
  0x70   :  { %918 = vmatpush1.msra.mxu1 %v129_v27  ;;  %848 = vmatprep.subr.mxu0 %v506_v28  ;;  %v614_v27 = vld [vmem:[#allocation7 + $0x1178] sm:$0xff]  ;;  %v232_v28 = vld [vmem:[#allocation7 + $0x588] sm:$0xff] }
  0x71   :  { %919 = vmatprep.subr.mxu1 %v124_v29  ;;  %849 = vmatpush1.msra.mxu0 %v505_v31  ;;  %v613_v29 = vld [vmem:[#allocation7 + $0x1170] sm:$0xff]  ;;  %v231_v31 = vld [vmem:[#allocation7 + $0x580] sm:$0xff] }
  0x72   :  { %920 = vmatpush1.msra.mxu1 %v123_v32  ;;  %850 = vmatprep.subr.mxu0 %v500_v33  ;;  %v608_v32 = vld [vmem:[#allocation7 + $0x1148] sm:$0xff]  ;;  %v226_v33 = vld [vmem:[#allocation7 + $0x558] sm:$0xff] }
  0x73   :  { %921 = vmatprep.subr.mxu1 %v118_v34  ;;  %851 = vmatpush1.msra.mxu0 %v499_v35  ;;  %v607_v34 = vld [vmem:[#allocation7 + $0x1140] sm:$0xff]  ;;  %v225_v35 = vld [vmem:[#allocation7 + $0x550] sm:$0xff] }
  0x74   :  { %922 = vmatpush1.msra.mxu1 %v117_v36  ;;  %852 = vmatprep.subr.mxu0 %v494_v37  ;;  %v602_v36 = vld [vmem:[#allocation7 + $0x1118] sm:$0xff]  ;;  %v220_v37 = vld [vmem:[#allocation7 + $0x528] sm:$0xff] }
  0x75   :  { %923 = vmatprep.subr.mxu1 %v112_v38  ;;  %853 = vmatpush1.msra.mxu0 %v493_v39  ;;  %v601_v38 = vld [vmem:[#allocation7 + $0x1110] sm:$0xff]  ;;  %v219_v39 = vld [vmem:[#allocation7 + $0x520] sm:$0xff] }
  0x76   :  { %924 = vmatpush1.msra.mxu1 %v111_v40  ;;  %854 = vmatprep.subr.mxu0 %v488_v42  ;;  %v596_v40 = vld [vmem:[#allocation7 + $0x10e8] sm:$0xff]  ;;  %v214_v42 = vld [vmem:[#allocation7 + $0x4f8] sm:$0xff] }
  0x77   :  { %925 = vmatprep.subr.mxu1 %v106_v43  ;;  %855 = vmatpush1.msra.mxu0 %v487_v44  ;;  %v595_v43 = vld [vmem:[#allocation7 + $0x10e0] sm:$0xff]  ;;  %v213_v44 = vld [vmem:[#allocation7 + $0x4f0] sm:$0xff] }
  0x78   :  { %926 = vmatpush1.msra.mxu1 %v105_v45  ;;  %856 = vmatprep.subr.mxu0 %v482_v46  ;;  %v590_v45 = vld [vmem:[#allocation7 + $0x10b8] sm:$0xff]  ;;  %v208_v46 = vld [vmem:[#allocation7 + $0x4c8] sm:$0xff] }
  0x79   :  { %927 = vmatprep.subr.mxu1 %v100_v47  ;;  %857 = vmatpush1.msra.mxu0 %v481_v48  ;;  %v589_v47 = vld [vmem:[#allocation7 + $0x10b0] sm:$0xff]  ;;  %v207_v48 = vld [vmem:[#allocation7 + $0x4c0] sm:$0xff] }
  0x7a   :  { %928 = vmatpush1.msra.mxu1 %v99_v49  ;;  %858 = vmatprep.subr.mxu0 %v476_v50  ;;  %v584_v49 = vld [vmem:[#allocation7 + $0x1088] sm:$0xff]  ;;  %v202_v50 = vld [vmem:[#allocation7 + $0x498] sm:$0xff] }
  0x7b   :  { %929 = vmatprep.subr.mxu1 %v94_v51  ;;  %859 = vmatpush1.msra.mxu0 %v475_v53  ;;  %v583_v51 = vld [vmem:[#allocation7 + $0x1080] sm:$0xff]  ;;  %v201_v53 = vld [vmem:[#allocation7 + $0x490] sm:$0xff] }
  0x7c   :  { %930 = vmatpush1.msra.mxu1 %v93_v54  ;;  %860 = vmatprep.subr.mxu0 %v470_v55  ;;  %v578_v54 = vld [vmem:[#allocation7 + $0x1058] sm:$0xff]  ;;  %v196_v55 = vld [vmem:[#allocation7 + $0x468] sm:$0xff] }
  0x7d   :  { %931 = vmatprep.subr.mxu1 %v88_v56  ;;  %861 = vmatpush1.msra.mxu0 %v469_v57  ;;  %v577_v56 = vld [vmem:[#allocation7 + $0x1050] sm:$0xff]  ;;  %v195_v57 = vld [vmem:[#allocation7 + $0x460] sm:$0xff] }
  0x7e   :  { %932 = vmatpush1.msra.mxu1 %v87_v58  ;;  %862 = vmatprep.subr.mxu0 %v464_v59  ;;  %v572_v58 = vld [vmem:[#allocation7 + $0x1028] sm:$0xff]  ;;  %v190_v59 = vld [vmem:[#allocation7 + $0x438] sm:$0xff] }
  0x7f   :  { %933 = vmatprep.subr.mxu1 %v82_v60  ;;  %863 = vmatpush1.msra.mxu0 %v463_v61  ;;  %v571_v60 = vld [vmem:[#allocation7 + $0x1020] sm:$0xff]  ;;  %v189_v61 = vld [vmem:[#allocation7 + $0x430] sm:$0xff] }
  0x80   :  { %934 = vmatpush1.msra.mxu1 %v81_v63  ;;  %864 = vmatprep.subr.mxu0 %v458_v0  ;;  %v566_v63 = vld [vmem:[#allocation7 + $0xff8] sm:$0xff]  ;;  %v184_v0 = vld [vmem:[#allocation7 + $0x408] sm:$0xff] }
  0x81   :  { %935 = vmatprep.subr.mxu1 %v76_v1  ;;  %865 = vmatpush1.msra.mxu0 %v457_v2  ;;  %v565_v1 = vld [vmem:[#allocation7 + $0xff0] sm:$0xff]  ;;  %v183_v2 = vld [vmem:[#allocation7 + $0x400] sm:$0xff] }
  0x82   :  { %936 = vmatpush1.msra.mxu1 %v75_v4  ;;  %866 = vmatprep.subr.mxu0 %v452_v5  ;;  %v560_v4 = vld [vmem:[#allocation7 + $0xfc8] sm:$0xff]  ;;  %v178_v5 = vld [vmem:[#allocation7 + $0x3d8] sm:$0xff] }
  0x83   :  { %937 = vmatprep.subr.mxu1 %v70_v6  ;;  %867 = vmatpush1.msra.mxu0 %v451_v7  ;;  %v559_v6 = vld [vmem:[#allocation7 + $0xfc0] sm:$0xff]  ;;  %v177_v7 = vld [vmem:[#allocation7 + $0x3d0] sm:$0xff] }
  0x84   :  { %938 = vmatpush1.msra.mxu1 %v69_v9  ;;  %868 = vmatprep.subr.mxu0 %v446_v10  ;;  %v554_v9 = vld [vmem:[#allocation7 + $0xf98] sm:$0xff]  ;;  %v172_v10 = vld [vmem:[#allocation7 + $0x3a8] sm:$0xff] }
  0x85   :  { %939 = vmatprep.subr.mxu1 %v64_v12  ;;  %869 = vmatpush1.msra.mxu0 %v445_v13  ;;  %v553_v12 = vld [vmem:[#allocation7 + $0xf90] sm:$0xff]  ;;  %v171_v13 = vld [vmem:[#allocation7 + $0x3a0] sm:$0xff] }
  0x86   :  { %940 = vmatpush1.msra.mxu1 %v63_v14  ;;  %870 = vmatprep.subr.mxu0 %v440_v15  ;;  %v548_v14 = vld [vmem:[#allocation7 + $0xf68] sm:$0xff]  ;;  %v166_v15 = vld [vmem:[#allocation7 + $0x378] sm:$0xff] }
  0x87   :  { %941 = vmatprep.subr.mxu1 %v58_v16  ;;  %871 = vmatpush1.msra.mxu0 %v439_v17  ;;  %v547_v16 = vld [vmem:[#allocation7 + $0xf60] sm:$0xff]  ;;  %v165_v17 = vld [vmem:[#allocation7 + $0x370] sm:$0xff] }
  0x88   :  { %942 = vmatpush1.msra.mxu1 %v57_v18  ;;  %872 = vmatprep.subr.mxu0 %v626_v19  ;;  %v2915_v18 = vld.sshfl [vmem:[#allocation2 + $0x8] sm:$0x33 pattern:$0x76325410]  ;;  %v542_v19 = vld [vmem:[#allocation7 + $0xf38] sm:$0xff] }
  0x89   :  { %943 = vmatprep.subr.mxu1 %v244_v20  ;;  %873 = vmatpush2.msra.mxu0 %v625_v21  ;;  %v160_v20 = vld [vmem:[#allocation7 + $0x348] sm:$0xff]  ;;  %v541_v21 = vld [vmem:[#allocation7 + $0xf30] sm:$0xff] }
  0x8a   :  { %944 = vmatpush2.msra.mxu1 %v243_v22  ;;  %874 = vmatprep.subr.mxu0 %v620_v23  ;;  %v159_v22 = vld [vmem:[#allocation7 + $0x340] sm:$0xff]  ;;  %v536_v23 = vld [vmem:[#allocation7 + $0xf08] sm:$0xff] }
  0x8b   :  { %945 = vmatprep.subr.mxu1 %v238_v24  ;;  %875 = vmatpush2.msra.mxu0 %v619_v25  ;;  %v154_v24 = vld [vmem:[#allocation7 + $0x318] sm:$0xff]  ;;  %v2919_v25 = vcombine.high %v2915_v18, %v2915_v18 }
  0x8c   :  { %946 = vmatpush2.msra.mxu1 %v237_v26  ;;  %876 = vmatprep.subr.mxu0 %v614_v27  ;;  %v535_v26 = vld [vmem:[#allocation7 + $0xf00] sm:$0xff]  ;;  %v153_v27 = vld [vmem:[#allocation7 + $0x310] sm:$0xff] }
  0x8d   :  { %947 = vmatprep.subr.mxu1 %v232_v28  ;;  %877 = vmatpush2.msra.mxu0 %v613_v29  ;;  %v340_v28 = vld [vmem:[#allocation7 + $0x8e8] sm:$0xff] }
  0x8e   :  { %948 = vmatpush2.msra.mxu1 %v231_v31  ;;  %878 = vmatprep.subr.mxu0 %v608_v32  ;;  %v532_v29 = vld [vmem:[#allocation7 + $0xee8] sm:$0xff]  ;;  %v339_v31 = vld [vmem:[#allocation7 + $0x8e0] sm:$0xff] }
  0x8f   :  { %949 = vmatprep.subr.mxu1 %v226_v33  ;;  %879 = vmatpush2.msra.mxu0 %v607_v34  ;;  %v531_v32 = vld [vmem:[#allocation7 + $0xee0] sm:$0xff]  ;;  %v334_v33 = vld [vmem:[#allocation7 + $0x8b8] sm:$0xff] }
  0x90   :  { %950 = vmatpush2.msra.mxu1 %v225_v35  ;;  %880 = vmatprep.subr.mxu0 %v602_v36  ;;  %v526_v34 = vld [vmem:[#allocation7 + $0xeb8] sm:$0xff]  ;;  %v333_v35 = vld [vmem:[#allocation7 + $0x8b0] sm:$0xff] }
  0x91   :  { %951 = vmatprep.subr.mxu1 %v220_v37  ;;  %881 = vmatpush2.msra.mxu0 %v601_v38  ;;  %v525_v36 = vld [vmem:[#allocation7 + $0xeb0] sm:$0xff]  ;;  %v328_v37 = vld [vmem:[#allocation7 + $0x888] sm:$0xff] }
  0x92   :  { %952 = vmatpush2.msra.mxu1 %v219_v39  ;;  %882 = vmatprep.subr.mxu0 %v596_v40  ;;  %v520_v38 = vld [vmem:[#allocation7 + $0xe88] sm:$0xff]  ;;  %v327_v39 = vld [vmem:[#allocation7 + $0x880] sm:$0xff] }
  0x93   :  { %953 = vmatprep.subr.mxu1 %v214_v42  ;;  %883 = vmatpush2.msra.mxu0 %v595_v43  ;;  %v519_v40 = vld [vmem:[#allocation7 + $0xe80] sm:$0xff]  ;;  %v322_v42 = vld [vmem:[#allocation7 + $0x858] sm:$0xff] }
  0x94   :  { %954 = vmatpush2.msra.mxu1 %v213_v44  ;;  %884 = vmatprep.subr.mxu0 %v590_v45  ;;  %v514_v43 = vld [vmem:[#allocation7 + $0xe58] sm:$0xff]  ;;  %v321_v44 = vld [vmem:[#allocation7 + $0x850] sm:$0xff] }
  0x95   :  { %955 = vmatprep.subr.mxu1 %v208_v46  ;;  %885 = vmatpush2.msra.mxu0 %v589_v47  ;;  %v513_v45 = vld [vmem:[#allocation7 + $0xe50] sm:$0xff]  ;;  %v316_v46 = vld [vmem:[#allocation7 + $0x828] sm:$0xff] }
  0x96   :  { %956 = vmatpush2.msra.mxu1 %v207_v48  ;;  %886 = vmatprep.subr.mxu0 %v584_v49  ;;  %v508_v47 = vld [vmem:[#allocation7 + $0xe28] sm:$0xff]  ;;  %v315_v48 = vld [vmem:[#allocation7 + $0x820] sm:$0xff] }
  0x97   :  { %957 = vmatprep.subr.mxu1 %v202_v50  ;;  %887 = vmatpush2.msra.mxu0 %v583_v51  ;;  %v507_v49 = vld [vmem:[#allocation7 + $0xe20] sm:$0xff]  ;;  %v310_v50 = vld [vmem:[#allocation7 + $0x7f8] sm:$0xff] }
  0x98   :  { %958 = vmatpush2.msra.mxu1 %v201_v53  ;;  %888 = vmatprep.subr.mxu0 %v578_v54  ;;  %v502_v51 = vld [vmem:[#allocation7 + $0xdf8] sm:$0xff]  ;;  %v309_v53 = vld [vmem:[#allocation7 + $0x7f0] sm:$0xff] }
  0x99   :  { %959 = vmatprep.subr.mxu1 %v196_v55  ;;  %889 = vmatpush2.msra.mxu0 %v577_v56  ;;  %v501_v54 = vld [vmem:[#allocation7 + $0xdf0] sm:$0xff]  ;;  %v304_v55 = vld [vmem:[#allocation7 + $0x7c8] sm:$0xff] }
  0x9a   :  { %960 = vmatpush2.msra.mxu1 %v195_v57  ;;  %890 = vmatprep.subr.mxu0 %v572_v58  ;;  %v496_v56 = vld [vmem:[#allocation7 + $0xdc8] sm:$0xff]  ;;  %v303_v57 = vld [vmem:[#allocation7 + $0x7c0] sm:$0xff] }
  0x9b   :  { %961 = vmatprep.subr.mxu1 %v190_v59  ;;  %891 = vmatpush2.msra.mxu0 %v571_v60  ;;  %v495_v58 = vld [vmem:[#allocation7 + $0xdc0] sm:$0xff]  ;;  %v298_v59 = vld [vmem:[#allocation7 + $0x798] sm:$0xff] }
  0x9c   :  { %962 = vmatpush2.msra.mxu1 %v189_v61  ;;  %892 = vmatprep.subr.mxu0 %v566_v63  ;;  %v490_v60 = vld [vmem:[#allocation7 + $0xd98] sm:$0xff]  ;;  %v297_v61 = vld [vmem:[#allocation7 + $0x790] sm:$0xff] }
  0x9d   :  { %963 = vmatprep.subr.mxu1 %v184_v0  ;;  %893 = vmatpush2.msra.mxu0 %v565_v1  ;;  %v489_v63 = vld [vmem:[#allocation7 + $0xd90] sm:$0xff]  ;;  %v292_v0 = vld [vmem:[#allocation7 + $0x768] sm:$0xff] }
  0x9e   :  { %964 = vmatpush2.msra.mxu1 %v183_v2  ;;  %894 = vmatprep.subr.mxu0 %v560_v4  ;;  %v484_v1 = vld [vmem:[#allocation7 + $0xd68] sm:$0xff]  ;;  %v291_v2 = vld [vmem:[#allocation7 + $0x760] sm:$0xff] }
  0x9f   :  { %965 = vmatprep.subr.mxu1 %v178_v5  ;;  %895 = vmatpush2.msra.mxu0 %v559_v6  ;;  %v483_v4 = vld [vmem:[#allocation7 + $0xd60] sm:$0xff]  ;;  %v286_v5 = vld [vmem:[#allocation7 + $0x738] sm:$0xff] }
  0xa0   :  { %966 = vmatpush2.msra.mxu1 %v177_v7  ;;  %896 = vmatprep.subr.mxu0 %v554_v9  ;;  %v478_v6 = vld [vmem:[#allocation7 + $0xd38] sm:$0xff]  ;;  %v285_v7 = vld [vmem:[#allocation7 + $0x730] sm:$0xff] }
  0xa1   :  { %967 = vmatprep.subr.mxu1 %v172_v10  ;;  %897 = vmatpush2.msra.mxu0 %v553_v12  ;;  %v477_v9 = vld [vmem:[#allocation7 + $0xd30] sm:$0xff]  ;;  %v280_v10 = vld [vmem:[#allocation7 + $0x708] sm:$0xff] }
  0xa2   :  { %968 = vmatpush2.msra.mxu1 %v171_v13  ;;  %898 = vmatprep.subr.mxu0 %v548_v14  ;;  %v472_v12 = vld [vmem:[#allocation7 + $0xd08] sm:$0xff]  ;;  %v279_v13 = vld [vmem:[#allocation7 + $0x700] sm:$0xff] }
  0xa3   :  { %969 = vmatprep.subr.mxu1 %v166_v15  ;;  %899 = vmatpush2.msra.mxu0 %v547_v16  ;;  %v471_v14 = vld [vmem:[#allocation7 + $0xd00] sm:$0xff]  ;;  %v274_v15 = vld [vmem:[#allocation7 + $0x6d8] sm:$0xff] }
  0xa4   :  { %970 = vmatpush2.msra.mxu1 %v165_v17  ;;  %900 = vmatprep.subr.mxu0 %v542_v19  ;;  %v466_v16 = vld [vmem:[#allocation7 + $0xcd8] sm:$0xff]  ;;  %v273_v17 = vld [vmem:[#allocation7 + $0x6d0] sm:$0xff] }
  0xa5   :  { %971 = vmatprep.subr.mxu1 %v160_v20  ;;  %901 = vmatpush2.msra.mxu0 %v541_v21  ;;  %v465_v19 = vld [vmem:[#allocation7 + $0xcd0] sm:$0xff]  ;;  %v268_v20 = vld [vmem:[#allocation7 + $0x6a8] sm:$0xff] }
  0xa6   :  { %972 = vmatpush2.msra.mxu1 %v159_v22  ;;  %902 = vmatprep.subr.mxu0 %v536_v23  ;;  %v460_v21 = vld [vmem:[#allocation7 + $0xca8] sm:$0xff]  ;;  %v267_v22 = vld [vmem:[#allocation7 + $0x6a0] sm:$0xff] }
  0xa7   :  { %973 = vmatprep.subr.mxu1 %v154_v24  ;;  %903 = vmatpush2.msra.mxu0 %v535_v26  ;;  %v459_v23 = vld [vmem:[#allocation7 + $0xca0] sm:$0xff]  ;;  %v262_v24 = vld [vmem:[#allocation7 + $0x678] sm:$0xff] }
  0xa8   :  { %904 = vmatprep.mubr.f32.mxu0 %v2919_v25  ;;  %974 = vmatpush2.msra.mxu1 %v153_v27  ;;  %v454_v26 = vld [vmem:[#allocation7 + $0xc78] sm:$0xff]  ;;  %v261_v27 = vld [vmem:[#allocation7 + $0x670] sm:$0xff] }
  0xa9   :  { %905 = vmatmul.mubr.f32.vlgmr.msra.gmra.mxu0 %v2915_v18  ;;  %975 = vmatprep.mubr.f32.mxu1 %v2905_v8 }
  0xaa   :  { %982 = vmatprep.subr.mxu0 %v340_v28  ;;  %1053 = vmatprep.subr.mxu1 %v532_v29  ;;  %v453_v28 = vld [vmem:[#allocation7 + $0xc70] sm:$0xff]  ;;  %v256_v29 = vld [vmem:[#allocation7 + $0x648] sm:$0xff] }
  0xab   :  { %976 = vmatmul.mubr.f32.vlgmr.msra.gmra.mxu1 %v2898_v62  ;;  %983 = vmatpush1.msra.mxu0 %v339_v31  ;;  %v448_v31 = vld [vmem:[#allocation7 + $0xc48] sm:$0xff] }
  0xac   :  { %1054 = vmatpush1.msra.mxu1 %v531_v32  ;;  %984 = vmatprep.subr.mxu0 %v334_v33  ;;  %v255_v32 = vld [vmem:[#allocation7 + $0x640] sm:$0xff] }
  0xad   :  { %1055 = vmatprep.subr.mxu1 %v526_v34  ;;  %985 = vmatpush1.msra.mxu0 %v333_v35  ;;  %v447_v33 = vld [vmem:[#allocation7 + $0xc40] sm:$0xff]  ;;  %v250_v34 = vld [vmem:[#allocation7 + $0x618] sm:$0xff] }
  0xae   :  { %1056 = vmatpush1.msra.mxu1 %v525_v36  ;;  %986 = vmatprep.subr.mxu0 %v328_v37  ;;  %v442_v35 = vld [vmem:[#allocation7 + $0xc18] sm:$0xff]  ;;  %v249_v36 = vld [vmem:[#allocation7 + $0x610] sm:$0xff] }
  0xaf   :  { %1057 = vmatprep.subr.mxu1 %v520_v38  ;;  %987 = vmatpush1.msra.mxu0 %v327_v39  ;;  %v441_v37 = vld [vmem:[#allocation7 + $0xc10] sm:$0xff]  ;;  %v436_v38 = vld [vmem:[#allocation7 + $0xbe8] sm:$0xff] }
  0xb0   :  { %1058 = vmatpush1.msra.mxu1 %v519_v40  ;;  %988 = vmatprep.subr.mxu0 %v322_v42  ;;  %v628_v39 = vld [vmem:[#allocation7 + $0x11e8] sm:$0xff]  ;;  %v435_v40 = vld [vmem:[#allocation7 + $0xbe0] sm:$0xff] }
  0xb1   :  { %1059 = vmatprep.subr.mxu1 %v514_v43  ;;  %989 = vmatpush1.msra.mxu0 %v321_v44  ;;  %v627_v42 = vld [vmem:[#allocation7 + $0x11e0] sm:$0xff]  ;;  %v430_v43 = vld [vmem:[#allocation7 + $0xbb8] sm:$0xff] }
  0xb2   :  { %1060 = vmatpush1.msra.mxu1 %v513_v45  ;;  %990 = vmatprep.subr.mxu0 %v316_v46  ;;  %v622_v44 = vld [vmem:[#allocation7 + $0x11b8] sm:$0xff]  ;;  %v429_v45 = vld [vmem:[#allocation7 + $0xbb0] sm:$0xff] }
  0xb3   :  { %1061 = vmatprep.subr.mxu1 %v508_v47  ;;  %991 = vmatpush1.msra.mxu0 %v315_v48  ;;  %v621_v46 = vld [vmem:[#allocation7 + $0x11b0] sm:$0xff]  ;;  %v424_v47 = vld [vmem:[#allocation7 + $0xb88] sm:$0xff] }
  0xb4   :  { %1062 = vmatpush1.msra.mxu1 %v507_v49  ;;  %992 = vmatprep.subr.mxu0 %v310_v50  ;;  %v616_v48 = vld [vmem:[#allocation7 + $0x1188] sm:$0xff]  ;;  %v423_v49 = vld [vmem:[#allocation7 + $0xb80] sm:$0xff] }
  0xb5   :  { %1063 = vmatprep.subr.mxu1 %v502_v51  ;;  %993 = vmatpush1.msra.mxu0 %v309_v53  ;;  %v615_v50 = vld [vmem:[#allocation7 + $0x1180] sm:$0xff]  ;;  %v418_v51 = vld [vmem:[#allocation7 + $0xb58] sm:$0xff] }
  0xb6   :  { %1064 = vmatpush1.msra.mxu1 %v501_v54  ;;  %994 = vmatprep.subr.mxu0 %v304_v55  ;;  %v610_v53 = vld [vmem:[#allocation7 + $0x1158] sm:$0xff]  ;;  %v417_v54 = vld [vmem:[#allocation7 + $0xb50] sm:$0xff] }
  0xb7   :  { %1065 = vmatprep.subr.mxu1 %v496_v56  ;;  %995 = vmatpush1.msra.mxu0 %v303_v57  ;;  %v609_v55 = vld [vmem:[#allocation7 + $0x1150] sm:$0xff]  ;;  %v412_v56 = vld [vmem:[#allocation7 + $0xb28] sm:$0xff] }
  0xb8   :  { %1066 = vmatpush1.msra.mxu1 %v495_v58  ;;  %996 = vmatprep.subr.mxu0 %v298_v59  ;;  %v604_v57 = vld [vmem:[#allocation7 + $0x1128] sm:$0xff]  ;;  %v411_v58 = vld [vmem:[#allocation7 + $0xb20] sm:$0xff] }
  0xb9   :  { %1067 = vmatprep.subr.mxu1 %v490_v60  ;;  %997 = vmatpush1.msra.mxu0 %v297_v61  ;;  %v603_v59 = vld [vmem:[#allocation7 + $0x1120] sm:$0xff]  ;;  %v406_v60 = vld [vmem:[#allocation7 + $0xaf8] sm:$0xff] }
  0xba   :  { %1068 = vmatpush1.msra.mxu1 %v489_v63  ;;  %998 = vmatprep.subr.mxu0 %v292_v0  ;;  %v598_v61 = vld [vmem:[#allocation7 + $0x10f8] sm:$0xff]  ;;  %v405_v63 = vld [vmem:[#allocation7 + $0xaf0] sm:$0xff] }
  0xbb   :  { %1069 = vmatprep.subr.mxu1 %v484_v1  ;;  %999 = vmatpush1.msra.mxu0 %v291_v2  ;;  %v597_v0 = vld [vmem:[#allocation7 + $0x10f0] sm:$0xff]  ;;  %v400_v1 = vld [vmem:[#allocation7 + $0xac8] sm:$0xff] }
  0xbc   :  { %1070 = vmatpush1.msra.mxu1 %v483_v4  ;;  %1000 = vmatprep.subr.mxu0 %v286_v5  ;;  %v592_v2 = vld [vmem:[#allocation7 + $0x10c8] sm:$0xff]  ;;  %v399_v4 = vld [vmem:[#allocation7 + $0xac0] sm:$0xff] }
  0xbd   :  { %1071 = vmatprep.subr.mxu1 %v478_v6  ;;  %1001 = vmatpush1.msra.mxu0 %v285_v7  ;;  %v591_v5 = vld [vmem:[#allocation7 + $0x10c0] sm:$0xff]  ;;  %v394_v6 = vld [vmem:[#allocation7 + $0xa98] sm:$0xff] }
  0xbe   :  { %1072 = vmatpush1.msra.mxu1 %v477_v9  ;;  %1002 = vmatprep.subr.mxu0 %v280_v10  ;;  %v586_v7 = vld [vmem:[#allocation7 + $0x1098] sm:$0xff]  ;;  %v393_v9 = vld [vmem:[#allocation7 + $0xa90] sm:$0xff] }
  0xbf   :  { %1073 = vmatprep.subr.mxu1 %v472_v12  ;;  %1003 = vmatpush1.msra.mxu0 %v279_v13  ;;  %v585_v10 = vld [vmem:[#allocation7 + $0x1090] sm:$0xff]  ;;  %v388_v12 = vld [vmem:[#allocation7 + $0xa68] sm:$0xff] }
  0xc0   :  { %1074 = vmatpush1.msra.mxu1 %v471_v14  ;;  %1004 = vmatprep.subr.mxu0 %v274_v15  ;;  %v580_v13 = vld [vmem:[#allocation7 + $0x1068] sm:$0xff]  ;;  %v387_v14 = vld [vmem:[#allocation7 + $0xa60] sm:$0xff] }
  0xc1   :  { %1075 = vmatprep.subr.mxu1 %v466_v16  ;;  %1005 = vmatpush1.msra.mxu0 %v273_v17  ;;  %v579_v15 = vld [vmem:[#allocation7 + $0x1060] sm:$0xff]  ;;  %v382_v16 = vld [vmem:[#allocation7 + $0xa38] sm:$0xff] }
  0xc2   :  { %1076 = vmatpush1.msra.mxu1 %v465_v19  ;;  %1006 = vmatprep.subr.mxu0 %v268_v20  ;;  %v574_v17 = vld [vmem:[#allocation7 + $0x1038] sm:$0xff]  ;;  %v381_v19 = vld [vmem:[#allocation7 + $0xa30] sm:$0xff] }
  0xc3   :  { %1077 = vmatprep.subr.mxu1 %v460_v21  ;;  %1007 = vmatpush1.msra.mxu0 %v267_v22  ;;  %v573_v20 = vld [vmem:[#allocation7 + $0x1030] sm:$0xff]  ;;  %v376_v21 = vld [vmem:[#allocation7 + $0xa08] sm:$0xff] }
  0xc4   :  { %1078 = vmatpush1.msra.mxu1 %v459_v23  ;;  %1008 = vmatprep.subr.mxu0 %v262_v24  ;;  %v568_v22 = vld [vmem:[#allocation7 + $0x1008] sm:$0xff]  ;;  %v375_v23 = vld [vmem:[#allocation7 + $0xa00] sm:$0xff] }
  0xc5   :  { %1079 = vmatprep.subr.mxu1 %v454_v26  ;;  %1009 = vmatpush1.msra.mxu0 %v261_v27  ;;  %v567_v24 = vld [vmem:[#allocation7 + $0x1000] sm:$0xff]  ;;  %v370_v26 = vld [vmem:[#allocation7 + $0x9d8] sm:$0xff] }
  0xc6   :  { %1080 = vmatpush1.msra.mxu1 %v453_v28  ;;  %1010 = vmatprep.subr.mxu0 %v256_v29  ;;  %v562_v27 = vld [vmem:[#allocation7 + $0xfd8] sm:$0xff]  ;;  %v369_v28 = vld [vmem:[#allocation7 + $0x9d0] sm:$0xff] }
  0xc7   :  { %1081 = vmatprep.subr.mxu1 %v448_v31  ;;  %1011 = vmatpush1.msra.mxu0 %v255_v32  ;;  %v561_v29 = vld [vmem:[#allocation7 + $0xfd0] sm:$0xff]  ;;  %v364_v31 = vld [vmem:[#allocation7 + $0x9a8] sm:$0xff] }
  0xc8   :  { %1082 = vmatpush1.msra.mxu1 %v447_v33  ;;  %1012 = vmatprep.subr.mxu0 %v250_v34  ;;  %v556_v32 = vld [vmem:[#allocation7 + $0xfa8] sm:$0xff]  ;;  %v363_v33 = vld [vmem:[#allocation7 + $0x9a0] sm:$0xff] }
  0xc9   :  { %1083 = vmatprep.subr.mxu1 %v442_v35  ;;  %1013 = vmatpush1.msra.mxu0 %v249_v36  ;;  %v555_v34 = vld [vmem:[#allocation7 + $0xfa0] sm:$0xff]  ;;  %v358_v35 = vld [vmem:[#allocation7 + $0x978] sm:$0xff] }
  0xca   :  { %1084 = vmatpush1.msra.mxu1 %v441_v37  ;;  %1014 = vmatprep.subr.mxu0 %v436_v38  ;;  %v550_v36 = vld [vmem:[#allocation7 + $0xf78] sm:$0xff]  ;;  %v357_v37 = vld [vmem:[#allocation7 + $0x970] sm:$0xff] }
  0xcb   :  { %1085 = vmatprep.subr.mxu1 %v628_v39  ;;  %1015 = vmatpush2.msra.mxu0 %v435_v40  ;;  %v549_v38 = vld [vmem:[#allocation7 + $0xf70] sm:$0xff]  ;;  %v352_v39 = vld [vmem:[#allocation7 + $0x948] sm:$0xff] }
  0xcc   :  { %1086 = vmatpush2.msra.mxu1 %v627_v42  ;;  %1016 = vmatprep.subr.mxu0 %v430_v43  ;;  %v544_v40 = vld [vmem:[#allocation7 + $0xf48] sm:$0xff]  ;;  %v351_v42 = vld [vmem:[#allocation7 + $0x940] sm:$0xff] }
  0xcd   :  { %1087 = vmatprep.subr.mxu1 %v622_v44  ;;  %1017 = vmatpush2.msra.mxu0 %v429_v45  ;;  %v543_v43 = vld [vmem:[#allocation7 + $0xf40] sm:$0xff]  ;;  %v346_v44 = vld [vmem:[#allocation7 + $0x918] sm:$0xff] }
  0xce   :  { %1088 = vmatpush2.msra.mxu1 %v621_v46  ;;  %1018 = vmatprep.subr.mxu0 %v424_v47  ;;  %v538_v45 = vld [vmem:[#allocation7 + $0xf18] sm:$0xff]  ;;  %v345_v46 = vld [vmem:[#allocation7 + $0x910] sm:$0xff] }
  0xcf   :  { %1089 = vmatprep.subr.mxu1 %v616_v48  ;;  %1019 = vmatpush2.msra.mxu0 %v423_v49  ;;  %v537_v47 = vld [vmem:[#allocation7 + $0xf10] sm:$0xff]  ;;  %v150_v48 = vld [vmem:[#allocation7 + $0x2f8] sm:$0xff] }
  0xd0   :  { %1090 = vmatpush2.msra.mxu1 %v615_v50  ;;  %1020 = vmatprep.subr.mxu0 %v418_v51  ;;  %v342_v49 = vld [vmem:[#allocation7 + $0x8f8] sm:$0xff]  ;;  %v149_v50 = vld [vmem:[#allocation7 + $0x2f0] sm:$0xff] }
  0xd1   :  { %1091 = vmatprep.subr.mxu1 %v610_v53  ;;  %1021 = vmatpush2.msra.mxu0 %v417_v54  ;;  %v341_v51 = vld [vmem:[#allocation7 + $0x8f0] sm:$0xff]  ;;  %v144_v53 = vld [vmem:[#allocation7 + $0x2c8] sm:$0xff] }
  0xd2   :  { %1092 = vmatpush2.msra.mxu1 %v609_v55  ;;  %1022 = vmatprep.subr.mxu0 %v412_v56  ;;  %v336_v54 = vld [vmem:[#allocation7 + $0x8c8] sm:$0xff]  ;;  %v143_v55 = vld [vmem:[#allocation7 + $0x2c0] sm:$0xff] }
  0xd3   :  { %1093 = vmatprep.subr.mxu1 %v604_v57  ;;  %1023 = vmatpush2.msra.mxu0 %v411_v58  ;;  %v335_v56 = vld [vmem:[#allocation7 + $0x8c0] sm:$0xff]  ;;  %v138_v57 = vld [vmem:[#allocation7 + $0x298] sm:$0xff] }
  0xd4   :  { %1094 = vmatpush2.msra.mxu1 %v603_v59  ;;  %1024 = vmatprep.subr.mxu0 %v406_v60  ;;  %v330_v58 = vld [vmem:[#allocation7 + $0x898] sm:$0xff]  ;;  %v137_v59 = vld [vmem:[#allocation7 + $0x290] sm:$0xff] }
  0xd5   :  { %1095 = vmatprep.subr.mxu1 %v598_v61  ;;  %1025 = vmatpush2.msra.mxu0 %v405_v63  ;;  %v329_v60 = vld [vmem:[#allocation7 + $0x890] sm:$0xff]  ;;  %v132_v61 = vld [vmem:[#allocation7 + $0x268] sm:$0xff] }
  0xd6   :  { %1096 = vmatpush2.msra.mxu1 %v597_v0  ;;  %1026 = vmatprep.subr.mxu0 %v400_v1  ;;  %v324_v63 = vld [vmem:[#allocation7 + $0x868] sm:$0xff]  ;;  %v131_v0 = vld [vmem:[#allocation7 + $0x260] sm:$0xff] }
  0xd7   :  { %1097 = vmatprep.subr.mxu1 %v592_v2  ;;  %1027 = vmatpush2.msra.mxu0 %v399_v4  ;;  %v323_v1 = vld [vmem:[#allocation7 + $0x860] sm:$0xff]  ;;  %v318_v2 = vld [vmem:[#allocation7 + $0x838] sm:$0xff]  ;;  %v125_v4 = vld [vmem:[#allocation7 + $0x230] sm:$0xff] }
  0xd8   :  { %1098 = vmatpush2.msra.mxu1 %v591_v5  ;;  %1028 = vmatprep.subr.mxu0 %v394_v6  ;;  %v317_v5 = vld [vmem:[#allocation7 + $0x830] sm:$0xff]  ;;  %v120_v6 = vld [vmem:[#allocation7 + $0x208] sm:$0xff] }
  0xd9   :  { %1099 = vmatprep.subr.mxu1 %v586_v7  ;;  %1029 = vmatpush2.msra.mxu0 %v393_v9  ;;  %v312_v7 = vld [vmem:[#allocation7 + $0x808] sm:$0xff]  ;;  %v119_v9 = vld [vmem:[#allocation7 + $0x200] sm:$0xff] }
  0xda   :  { %1100 = vmatpush2.msra.mxu1 %v585_v10  ;;  %1030 = vmatprep.subr.mxu0 %v388_v12  ;;  %v311_v10 = vld [vmem:[#allocation7 + $0x800] sm:$0xff]  ;;  %v114_v12 = vld [vmem:[#allocation7 + $0x1d8] sm:$0xff] }
  0xdb   :  { %1101 = vmatprep.subr.mxu1 %v580_v13  ;;  %1031 = vmatpush2.msra.mxu0 %v387_v14  ;;  %v306_v13 = vld [vmem:[#allocation7 + $0x7d8] sm:$0xff]  ;;  %v113_v14 = vld [vmem:[#allocation7 + $0x1d0] sm:$0xff] }
  0xdc   :  { %1102 = vmatpush2.msra.mxu1 %v579_v15  ;;  %1032 = vmatprep.subr.mxu0 %v382_v16  ;;  %v305_v15 = vld [vmem:[#allocation7 + $0x7d0] sm:$0xff]  ;;  %v108_v16 = vld [vmem:[#allocation7 + $0x1a8] sm:$0xff] }
  0xdd   :  { %1103 = vmatprep.subr.mxu1 %v574_v17  ;;  %1033 = vmatpush2.msra.mxu0 %v381_v19  ;;  %v300_v17 = vld [vmem:[#allocation7 + $0x7a8] sm:$0xff]  ;;  %v107_v19 = vld [vmem:[#allocation7 + $0x1a0] sm:$0xff] }
  0xde   :  { %1104 = vmatpush2.msra.mxu1 %v573_v20  ;;  %1034 = vmatprep.subr.mxu0 %v376_v21  ;;  %v299_v20 = vld [vmem:[#allocation7 + $0x7a0] sm:$0xff]  ;;  %v102_v21 = vld [vmem:[#allocation7 + $0x178] sm:$0xff] }
  0xdf   :  { %1105 = vmatprep.subr.mxu1 %v568_v22  ;;  %1035 = vmatpush2.msra.mxu0 %v375_v23  ;;  %v294_v22 = vld [vmem:[#allocation7 + $0x778] sm:$0xff]  ;;  %v101_v23 = vld [vmem:[#allocation7 + $0x170] sm:$0xff] }
  0xe0   :  { %1106 = vmatpush2.msra.mxu1 %v567_v24  ;;  %1036 = vmatprep.subr.mxu0 %v370_v26  ;;  %v293_v24 = vld [vmem:[#allocation7 + $0x770] sm:$0xff]  ;;  %v96_v26 = vld [vmem:[#allocation7 + $0x148] sm:$0xff] }
  0xe1   :  { %1107 = vmatprep.subr.mxu1 %v562_v27  ;;  %1037 = vmatpush2.msra.mxu0 %v369_v28  ;;  %v288_v27 = vld [vmem:[#allocation7 + $0x748] sm:$0xff]  ;;  %v95_v28 = vld [vmem:[#allocation7 + $0x140] sm:$0xff] }
  0xe2   :  { %1108 = vmatpush2.msra.mxu1 %v561_v29  ;;  %1038 = vmatprep.subr.mxu0 %v364_v31  ;;  %v287_v29 = vld [vmem:[#allocation7 + $0x740] sm:$0xff]  ;;  %v90_v31 = vld [vmem:[#allocation7 + $0x118] sm:$0xff] }
  0xe3   :  { %1109 = vmatprep.subr.mxu1 %v556_v32  ;;  %1039 = vmatpush2.msra.mxu0 %v363_v33  ;;  %v282_v32 = vld [vmem:[#allocation7 + $0x718] sm:$0xff]  ;;  %v89_v33 = vld [vmem:[#allocation7 + $0x110] sm:$0xff] }
  0xe4   :  { %1110 = vmatpush2.msra.mxu1 %v555_v34  ;;  %1040 = vmatprep.subr.mxu0 %v358_v35  ;;  %v281_v34 = vld [vmem:[#allocation7 + $0x710] sm:$0xff]  ;;  %v84_v35 = vld [vmem:[#allocation7 + $0xe8] sm:$0xff] }
  0xe5   :  { %1111 = vmatprep.subr.mxu1 %v550_v36  ;;  %1041 = vmatpush2.msra.mxu0 %v357_v37  ;;  %v276_v36 = vld [vmem:[#allocation7 + $0x6e8] sm:$0xff]  ;;  %v83_v37 = vld [vmem:[#allocation7 + $0xe0] sm:$0xff] }
  0xe6   :  { %1112 = vmatpush2.msra.mxu1 %v549_v38  ;;  %1042 = vmatprep.subr.mxu0 %v352_v39  ;;  %v275_v38 = vld [vmem:[#allocation7 + $0x6e0] sm:$0xff]  ;;  %v78_v39 = vld [vmem:[#allocation7 + $0xb8] sm:$0xff] }
  0xe7   :  { %1113 = vmatprep.subr.mxu1 %v544_v40  ;;  %1043 = vmatpush2.msra.mxu0 %v351_v42  ;;  %v270_v40 = vld [vmem:[#allocation7 + $0x6b8] sm:$0xff]  ;;  %v77_v42 = vld [vmem:[#allocation7 + $0xb0] sm:$0xff] }
  0xe8   :  { %1114 = vmatpush2.msra.mxu1 %v543_v43  ;;  %1044 = vmatprep.subr.mxu0 %v346_v44  ;;  %v269_v43 = vld [vmem:[#allocation7 + $0x6b0] sm:$0xff]  ;;  %v72_v44 = vld [vmem:[#allocation7 + $0x88] sm:$0xff] }
  0xe9   :  { %1115 = vmatprep.subr.mxu1 %v538_v45  ;;  %1045 = vmatpush2.msra.mxu0 %v345_v46  ;;  %v264_v45 = vld [vmem:[#allocation7 + $0x688] sm:$0xff]  ;;  %v71_v46 = vld [vmem:[#allocation7 + $0x80] sm:$0xff] }
  0xea   :  { %1046 = vmatprep.mubr.f32.mxu0 %v2909_v11  ;;  %1116 = vmatpush2.msra.mxu1 %v537_v47  ;;  %v263_v47 = vld [vmem:[#allocation7 + $0x680] sm:$0xff] }
  0xeb   :  { %1047 = vmatmul.mubr.f32.vlgmr.msra.gmra.mxu0 %v2901_v3  ;;  %1117 = vmatprep.mubr.f32.mxu1 %v2919_v25 }
  0xec   :  { %1124 = vmatprep.subr.mxu0 %v150_v48  ;;  %1195 = vmatprep.subr.mxu1 %v342_v49  ;;  %v66_v48 = vld [vmem:[#allocation7 + $0x58] sm:$0xff] }
  0xed   :  { %1118 = vmatmul.mubr.f32.vlgmr.msra.gmra.mxu1 %v2915_v18  ;;  %1125 = vmatpush1.msra.mxu0 %v149_v50  ;;  %v126_v18 = vld [vmem:[#allocation7 + $0x238] sm:$0xff]  ;;  %v65_v50 = vld [vmem:[#allocation7 + $0x50] sm:$0xff] }
  0xee   :  { %1196 = vmatpush1.msra.mxu1 %v341_v51  ;;  %1126 = vmatprep.subr.mxu0 %v144_v53  ;;  %v258_v49 = vld [vmem:[#allocation7 + $0x658] sm:$0xff]  ;;  %v257_v51 = vld [vmem:[#allocation7 + $0x650] sm:$0xff]  ;;  %v60_v53 = vld [vmem:[#allocation7 + $0x28] sm:$0xff] }
  0xef   :  { %1197 = vmatprep.subr.mxu1 %v336_v54  ;;  %1127 = vmatpush1.msra.mxu0 %v143_v55  ;;  %v252_v54 = vld [vmem:[#allocation7 + $0x628] sm:$0xff]  ;;  %v59_v55 = vld [vmem:[#allocation7 + $0x20] sm:$0xff] }
  0xf0   :  { %1198 = vmatpush1.msra.mxu1 %v335_v56  ;;  %1128 = vmatprep.subr.mxu0 %v138_v57  ;;  %v251_v56 = vld [vmem:[#allocation7 + $0x620] sm:$0xff]  ;;  %v246_v57 = vld [vmem:[#allocation7 + $0x5f8] sm:$0xff] }
  0xf1   :  { %1199 = vmatprep.subr.mxu1 %v330_v58  ;;  %1129 = vmatpush1.msra.mxu0 %v137_v59  ;;  %v438_v58 = vld [vmem:[#allocation7 + $0xbf8] sm:$0xff]  ;;  %v245_v59 = vld [vmem:[#allocation7 + $0x5f0] sm:$0xff] }
  0xf2   :  { %1200 = vmatpush1.msra.mxu1 %v329_v60  ;;  %1130 = vmatprep.subr.mxu0 %v132_v61  ;;  %v437_v60 = vld [vmem:[#allocation7 + $0xbf0] sm:$0xff]  ;;  %v240_v61 = vld [vmem:[#allocation7 + $0x5c8] sm:$0xff] }
  0xf3   :  { %1201 = vmatprep.subr.mxu1 %v324_v63  ;;  %1131 = vmatpush1.msra.mxu0 %v131_v0  ;;  %v432_v63 = vld [vmem:[#allocation7 + $0xbc8] sm:$0xff]  ;;  %v239_v0 = vld [vmem:[#allocation7 + $0x5c0] sm:$0xff] }
  0xf4   :  { %1202 = vmatpush1.msra.mxu1 %v323_v1  ;;  %1132 = vmatprep.subr.mxu0 %v126_v18  ;;  %v431_v1 = vld [vmem:[#allocation7 + $0xbc0] sm:$0xff]  ;;  %v234_v18 = vld [vmem:[#allocation7 + $0x598] sm:$0xff] }
  0xf5   :  { %1203 = vmatprep.subr.mxu1 %v318_v2  ;;  %1133 = vmatpush1.msra.mxu0 %v125_v4  ;;  %v426_v2 = vld [vmem:[#allocation7 + $0xb98] sm:$0xff]  ;;  %v233_v4 = vld [vmem:[#allocation7 + $0x590] sm:$0xff] }
  0xf6   :  { %1204 = vmatpush1.msra.mxu1 %v317_v5  ;;  %1134 = vmatprep.subr.mxu0 %v120_v6  ;;  %v425_v5 = vld [vmem:[#allocation7 + $0xb90] sm:$0xff]  ;;  %v228_v6 = vld [vmem:[#allocation7 + $0x568] sm:$0xff] }
  0xf7   :  { %1205 = vmatprep.subr.mxu1 %v312_v7  ;;  %1135 = vmatpush1.msra.mxu0 %v119_v9  ;;  %v420_v7 = vld [vmem:[#allocation7 + $0xb68] sm:$0xff]  ;;  %v227_v9 = vld [vmem:[#allocation7 + $0x560] sm:$0xff] }
  0xf8   :  { %1206 = vmatpush1.msra.mxu1 %v311_v10  ;;  %1136 = vmatprep.subr.mxu0 %v114_v12  ;;  %v419_v10 = vld [vmem:[#allocation7 + $0xb60] sm:$0xff]  ;;  %v222_v12 = vld [vmem:[#allocation7 + $0x538] sm:$0xff] }
  0xf9   :  { %1207 = vmatprep.subr.mxu1 %v306_v13  ;;  %1137 = vmatpush1.msra.mxu0 %v113_v14  ;;  %v414_v13 = vld [vmem:[#allocation7 + $0xb38] sm:$0xff]  ;;  %v221_v14 = vld [vmem:[#allocation7 + $0x530] sm:$0xff] }
  0xfa   :  { %1208 = vmatpush1.msra.mxu1 %v305_v15  ;;  %1138 = vmatprep.subr.mxu0 %v108_v16  ;;  %v413_v15 = vld [vmem:[#allocation7 + $0xb30] sm:$0xff]  ;;  %v216_v16 = vld [vmem:[#allocation7 + $0x508] sm:$0xff] }
  0xfb   :  { %1209 = vmatprep.subr.mxu1 %v300_v17  ;;  %1139 = vmatpush1.msra.mxu0 %v107_v19  ;;  %v408_v17 = vld [vmem:[#allocation7 + $0xb08] sm:$0xff]  ;;  %v215_v19 = vld [vmem:[#allocation7 + $0x500] sm:$0xff] }
  0xfc   :  { %1210 = vmatpush1.msra.mxu1 %v299_v20  ;;  %1140 = vmatprep.subr.mxu0 %v102_v21  ;;  %v407_v20 = vld [vmem:[#allocation7 + $0xb00] sm:$0xff]  ;;  %v210_v21 = vld [vmem:[#allocation7 + $0x4d8] sm:$0xff] }
  0xfd   :  { %1211 = vmatprep.subr.mxu1 %v294_v22  ;;  %1141 = vmatpush1.msra.mxu0 %v101_v23  ;;  %v402_v22 = vld [vmem:[#allocation7 + $0xad8] sm:$0xff]  ;;  %v209_v23 = vld [vmem:[#allocation7 + $0x4d0] sm:$0xff] }
  0xfe   :  { %1212 = vmatpush1.msra.mxu1 %v293_v24  ;;  %1142 = vmatprep.subr.mxu0 %v96_v26  ;;  %v401_v24 = vld [vmem:[#allocation7 + $0xad0] sm:$0xff]  ;;  %v204_v26 = vld [vmem:[#allocation7 + $0x4a8] sm:$0xff] }
  0xff   :  { %1213 = vmatprep.subr.mxu1 %v288_v27  ;;  %1143 = vmatpush1.msra.mxu0 %v95_v28  ;;  %v396_v27 = vld [vmem:[#allocation7 + $0xaa8] sm:$0xff]  ;;  %v203_v28 = vld [vmem:[#allocation7 + $0x4a0] sm:$0xff] }
 0x100   :  { %1214 = vmatpush1.msra.mxu1 %v287_v29  ;;  %1144 = vmatprep.subr.mxu0 %v90_v31  ;;  %v395_v29 = vld [vmem:[#allocation7 + $0xaa0] sm:$0xff]  ;;  %v198_v31 = vld [vmem:[#allocation7 + $0x478] sm:$0xff] }
 0x101   :  { %1215 = vmatprep.subr.mxu1 %v282_v32  ;;  %1145 = vmatpush1.msra.mxu0 %v89_v33  ;;  %v390_v32 = vld [vmem:[#allocation7 + $0xa78] sm:$0xff]  ;;  %v197_v33 = vld [vmem:[#allocation7 + $0x470] sm:$0xff] }
 0x102   :  { %1216 = vmatpush1.msra.mxu1 %v281_v34  ;;  %1146 = vmatprep.subr.mxu0 %v84_v35  ;;  %v389_v34 = vld [vmem:[#allocation7 + $0xa70] sm:$0xff]  ;;  %v192_v35 = vld [vmem:[#allocation7 + $0x448] sm:$0xff] }
 0x103   :  { %1217 = vmatprep.subr.mxu1 %v276_v36  ;;  %1147 = vmatpush1.msra.mxu0 %v83_v37  ;;  %v384_v36 = vld [vmem:[#allocation7 + $0xa48] sm:$0xff]  ;;  %v191_v37 = vld [vmem:[#allocation7 + $0x440] sm:$0xff] }
 0x104   :  { %1218 = vmatpush1.msra.mxu1 %v275_v38  ;;  %1148 = vmatprep.subr.mxu0 %v78_v39  ;;  %v383_v38 = vld [vmem:[#allocation7 + $0xa40] sm:$0xff]  ;;  %v186_v39 = vld [vmem:[#allocation7 + $0x418] sm:$0xff] }
 0x105   :  { %1219 = vmatprep.subr.mxu1 %v270_v40  ;;  %1149 = vmatpush1.msra.mxu0 %v77_v42  ;;  %v378_v40 = vld [vmem:[#allocation7 + $0xa18] sm:$0xff]  ;;  %v185_v42 = vld [vmem:[#allocation7 + $0x410] sm:$0xff] }
 0x106   :  { %1220 = vmatpush1.msra.mxu1 %v269_v43  ;;  %1150 = vmatprep.subr.mxu0 %v72_v44  ;;  %v377_v43 = vld [vmem:[#allocation7 + $0xa10] sm:$0xff]  ;;  %v180_v44 = vld [vmem:[#allocation7 + $0x3e8] sm:$0xff] }
 0x107   :  { %1221 = vmatprep.subr.mxu1 %v264_v45  ;;  %1151 = vmatpush1.msra.mxu0 %v71_v46  ;;  %v372_v45 = vld [vmem:[#allocation7 + $0x9e8] sm:$0xff]  ;;  %v179_v46 = vld [vmem:[#allocation7 + $0x3e0] sm:$0xff] }
 0x108   :  { %1222 = vmatpush1.msra.mxu1 %v263_v47  ;;  %1152 = vmatprep.subr.mxu0 %v66_v48  ;;  %v371_v47 = vld [vmem:[#allocation7 + $0x9e0] sm:$0xff]  ;;  %v174_v48 = vld [vmem:[#allocation7 + $0x3b8] sm:$0xff] }
 0x109   :  { %1223 = vmatprep.subr.mxu1 %v258_v49  ;;  %1153 = vmatpush1.msra.mxu0 %v65_v50  ;;  %v366_v49 = vld [vmem:[#allocation7 + $0x9b8] sm:$0xff]  ;;  %v173_v50 = vld [vmem:[#allocation7 + $0x3b0] sm:$0xff] }
 0x10a   :  { %1224 = vmatpush1.msra.mxu1 %v257_v51  ;;  %1154 = vmatprep.subr.mxu0 %v60_v53  ;;  %v365_v51 = vld [vmem:[#allocation7 + $0x9b0] sm:$0xff]  ;;  %v168_v53 = vld [vmem:[#allocation7 + $0x388] sm:$0xff] }
 0x10b   :  { %1225 = vmatprep.subr.mxu1 %v252_v54  ;;  %1155 = vmatpush1.msra.mxu0 %v59_v55  ;;  %v360_v54 = vld [vmem:[#allocation7 + $0x988] sm:$0xff]  ;;  %v167_v55 = vld [vmem:[#allocation7 + $0x380] sm:$0xff] }
 0x10c   :  { %1226 = vmatpush1.msra.mxu1 %v251_v56  ;;  %1156 = vmatprep.subr.mxu0 %v246_v57  ;;  %v359_v56 = vld [vmem:[#allocation7 + $0x980] sm:$0xff]  ;;  %v162_v57 = vld [vmem:[#allocation7 + $0x358] sm:$0xff] }
 0x10d   :  { %1227 = vmatprep.subr.mxu1 %v438_v58  ;;  %1157 = vmatpush2.msra.mxu0 %v245_v59  ;;  %v354_v58 = vld [vmem:[#allocation7 + $0x958] sm:$0xff]  ;;  %v161_v59 = vld [vmem:[#allocation7 + $0x350] sm:$0xff] }
 0x10e   :  { %1228 = vmatpush2.msra.mxu1 %v437_v60  ;;  %1158 = vmatprep.subr.mxu0 %v240_v61  ;;  %v353_v60 = vld [vmem:[#allocation7 + $0x950] sm:$0xff]  ;;  %v156_v61 = vld [vmem:[#allocation7 + $0x328] sm:$0xff] }
 0x10f   :  { %1229 = vmatprep.subr.mxu1 %v432_v63  ;;  %1159 = vmatpush2.msra.mxu0 %v239_v0  ;;  %v348_v63 = vld [vmem:[#allocation7 + $0x928] sm:$0xff]  ;;  %v155_v0 = vld [vmem:[#allocation7 + $0x320] sm:$0xff] }
 0x110   :  { %1230 = vmatpush2.msra.mxu1 %v431_v1  ;;  %1160 = vmatprep.subr.mxu0 %v234_v18  ;;  %v347_v1 = vld [vmem:[#allocation7 + $0x920] sm:$0xff]  ;;  %v534_v18 = vld [vmem:[#allocation7 + $0xef8] sm:$0xff] }
 0x111   :  { %1231 = vmatprep.subr.mxu1 %v426_v2  ;;  %1161 = vmatpush2.msra.mxu0 %v233_v4  ;;  %v533_v2 = vld [vmem:[#allocation7 + $0xef0] sm:$0xff]  ;;  %v528_v4 = vld [vmem:[#allocation7 + $0xec8] sm:$0xff] }
 0x112   :  { %1232 = vmatpush2.msra.mxu1 %v425_v5  ;;  %1162 = vmatprep.subr.mxu0 %v228_v6  ;;  %v2184_v5 = vld [vmem:[#allocation7 + $0x2d8] sm:$0xff]  ;;  %v527_v6 = vld [vmem:[#allocation7 + $0xec0] sm:$0xff] }
 0x113   :  { %1233 = vmatprep.subr.mxu1 %v420_v7  ;;  %1163 = vmatpush2.msra.mxu0 %v227_v9  ;;  %v2185_v7 = vld [vmem:[#allocation7 + $0x2d0] sm:$0xff]  ;;  %v522_v9 = vld [vmem:[#allocation7 + $0xe98] sm:$0xff] }
 0x114   :  { %1234 = vmatpush2.msra.mxu1 %v419_v10  ;;  %1164 = vmatprep.subr.mxu0 %v222_v12  ;;  %v2186_v10 = vld [vmem:[#allocation7 + $0x2a8] sm:$0xff] }
 0x115   :  { %1235 = vmatprep.subr.mxu1 %v414_v13  ;;  %1165 = vmatpush2.msra.mxu0 %v221_v14  ;;  %v516_v12 = vld [vmem:[#allocation7 + $0xe68] sm:$0xff]  ;;  %v515_v13 = vld [vmem:[#allocation7 + $0xe60] sm:$0xff]  ;;  %v2189_v14 = vld [vmem:[#allocation7 + $0x270] sm:$0xff] }
 0x116   :  { %1236 = vmatpush2.msra.mxu1 %v413_v15  ;;  %1166 = vmatprep.subr.mxu0 %v216_v16  ;;  %v2190_v15 = vld [vmem:[#allocation7 + $0x248] sm:$0xff]  ;;  %v509_v16 = vld [vmem:[#allocation7 + $0xe30] sm:$0xff] }
 0x117   :  { %1237 = vmatprep.subr.mxu1 %v408_v17  ;;  %1167 = vmatpush2.msra.mxu0 %v215_v19  ;;  %v2191_v17 = vld [vmem:[#allocation7 + $0x240] sm:$0xff]  ;;  %v504_v19 = vld [vmem:[#allocation7 + $0xe08] sm:$0xff] }
 0x118   :  { %1238 = vmatpush2.msra.mxu1 %v407_v20  ;;  %1168 = vmatprep.subr.mxu0 %v210_v21  ;;  %v2192_v20 = vld [vmem:[#allocation7 + $0x218] sm:$0xff]  ;;  %v503_v21 = vld [vmem:[#allocation7 + $0xe00] sm:$0xff] }
 0x119   :  { %1239 = vmatprep.subr.mxu1 %v402_v22  ;;  %1169 = vmatpush2.msra.mxu0 %v209_v23  ;;  %v2193_v22 = vld [vmem:[#allocation7 + $0x210] sm:$0xff]  ;;  %v498_v23 = vld [vmem:[#allocation7 + $0xdd8] sm:$0xff] }
 0x11a   :  { %1240 = vmatpush2.msra.mxu1 %v401_v24  ;;  %1170 = vmatprep.subr.mxu0 %v204_v26  ;;  %v2194_v24 = vld [vmem:[#allocation7 + $0x1e8] sm:$0xff]  ;;  %v497_v26 = vld [vmem:[#allocation7 + $0xdd0] sm:$0xff] }
 0x11b   :  { %1241 = vmatprep.subr.mxu1 %v396_v27  ;;  %1171 = vmatpush2.msra.mxu0 %v203_v28  ;;  %v2195_v27 = vld [vmem:[#allocation7 + $0x1e0] sm:$0xff]  ;;  %v492_v28 = vld [vmem:[#allocation7 + $0xda8] sm:$0xff] }
 0x11c   :  { %1242 = vmatpush2.msra.mxu1 %v395_v29  ;;  %1172 = vmatprep.subr.mxu0 %v198_v31  ;;  %v2196_v29 = vld [vmem:[#allocation7 + $0x1b8] sm:$0xff]  ;;  %v491_v31 = vld [vmem:[#allocation7 + $0xda0] sm:$0xff] }
 0x11d   :  { %1243 = vmatprep.subr.mxu1 %v390_v32  ;;  %1173 = vmatpush2.msra.mxu0 %v197_v33  ;;  %v2197_v32 = vld [vmem:[#allocation7 + $0x1b0] sm:$0xff]  ;;  %v486_v33 = vld [vmem:[#allocation7 + $0xd78] sm:$0xff] }
 0x11e   :  { %1244 = vmatpush2.msra.mxu1 %v389_v34  ;;  %1174 = vmatprep.subr.mxu0 %v192_v35  ;;  %v2198_v34 = vld [vmem:[#allocation7 + $0x188] sm:$0xff]  ;;  %v485_v35 = vld [vmem:[#allocation7 + $0xd70] sm:$0xff] }
 0x11f   :  { %1245 = vmatprep.subr.mxu1 %v384_v36  ;;  %1175 = vmatpush2.msra.mxu0 %v191_v37  ;;  %v2199_v36 = vld [vmem:[#allocation7 + $0x180] sm:$0xff]  ;;  %v480_v37 = vld [vmem:[#allocation7 + $0xd48] sm:$0xff] }
 0x120   :  { %1246 = vmatpush2.msra.mxu1 %v383_v38  ;;  %1176 = vmatprep.subr.mxu0 %v186_v39  ;;  %v2200_v38 = vld [vmem:[#allocation7 + $0x158] sm:$0xff]  ;;  %v479_v39 = vld [vmem:[#allocation7 + $0xd40] sm:$0xff] }
 0x121   :  { %1247 = vmatprep.subr.mxu1 %v378_v40  ;;  %1177 = vmatpush2.msra.mxu0 %v185_v42  ;;  %v2201_v40 = vld [vmem:[#allocation7 + $0x150] sm:$0xff]  ;;  %v474_v42 = vld [vmem:[#allocation7 + $0xd18] sm:$0xff] }
 0x122   :  { %1248 = vmatpush2.msra.mxu1 %v377_v43  ;;  %1178 = vmatprep.subr.mxu0 %v180_v44  ;;  %v2202_v43 = vld [vmem:[#allocation7 + $0x128] sm:$0xff]  ;;  %v473_v44 = vld [vmem:[#allocation7 + $0xd10] sm:$0xff] }
 0x123   :  { %1249 = vmatprep.subr.mxu1 %v372_v45  ;;  %1179 = vmatpush2.msra.mxu0 %v179_v46  ;;  %v2203_v45 = vld [vmem:[#allocation7 + $0x120] sm:$0xff]  ;;  %v468_v46 = vld [vmem:[#allocation7 + $0xce8] sm:$0xff] }
 0x124   :  { %1250 = vmatpush2.msra.mxu1 %v371_v47  ;;  %1180 = vmatprep.subr.mxu0 %v174_v48  ;;  %v2204_v47 = vld [vmem:[#allocation7 + $0xf8] sm:$0xff]  ;;  %v467_v48 = vld [vmem:[#allocation7 + $0xce0] sm:$0xff] }
 0x125   :  { %1251 = vmatprep.subr.mxu1 %v366_v49  ;;  %1181 = vmatpush2.msra.mxu0 %v173_v50  ;;  %v2205_v49 = vld [vmem:[#allocation7 + $0xf0] sm:$0xff]  ;;  %v462_v50 = vld [vmem:[#allocation7 + $0xcb8] sm:$0xff] }
 0x126   :  { %1252 = vmatpush2.msra.mxu1 %v365_v51  ;;  %1182 = vmatprep.subr.mxu0 %v168_v53  ;;  %v2206_v51 = vld [vmem:[#allocation7 + $0xc8] sm:$0xff]  ;;  %v461_v53 = vld [vmem:[#allocation7 + $0xcb0] sm:$0xff] }
 0x127   :  { %1253 = vmatprep.subr.mxu1 %v360_v54  ;;  %1183 = vmatpush2.msra.mxu0 %v167_v55  ;;  %v2207_v54 = vld [vmem:[#allocation7 + $0xc0] sm:$0xff]  ;;  %v456_v55 = vld [vmem:[#allocation7 + $0xc88] sm:$0xff] }
 0x128   :  { %1254 = vmatpush2.msra.mxu1 %v359_v56  ;;  %1184 = vmatprep.subr.mxu0 %v162_v57  ;;  %v2208_v56 = vld [vmem:[#allocation7 + $0x98] sm:$0xff]  ;;  %v455_v57 = vld [vmem:[#allocation7 + $0xc80] sm:$0xff] }
 0x129   :  { %1255 = vmatprep.subr.mxu1 %v354_v58  ;;  %1185 = vmatpush2.msra.mxu0 %v161_v59  ;;  %v2209_v58 = vld [vmem:[#allocation7 + $0x90] sm:$0xff]  ;;  %v450_v59 = vld [vmem:[#allocation7 + $0xc58] sm:$0xff] }
 0x12a   :  { %1256 = vmatpush2.msra.mxu1 %v353_v60  ;;  %1186 = vmatprep.subr.mxu0 %v156_v61  ;;  %v2210_v60 = vld [vmem:[#allocation7 + $0x68] sm:$0xff]  ;;  %v449_v61 = vld [vmem:[#allocation7 + $0xc50] sm:$0xff] }
 0x12b   :  { %1257 = vmatprep.subr.mxu1 %v348_v63  ;;  %1187 = vmatpush2.msra.mxu0 %v155_v0  ;;  %v2211_v63 = vld [vmem:[#allocation7 + $0x60] sm:$0xff]  ;;  %v444_v0 = vld [vmem:[#allocation7 + $0xc28] sm:$0xff] }
 0x12c   :  { %1188 = vmatprep.mubr.f32.mxu0 %v2905_v8  ;;  %1258 = vmatpush2.msra.mxu1 %v347_v1  ;;  %v521_v8 = vld [vmem:[#allocation7 + $0xe90] sm:$0xff]  ;;  %v2212_v1 = vld [vmem:[#allocation7 + $0x38] sm:$0xff] }
 0x12d   :  { %1189 = vmatmul.mubr.f32.vlgmr.msra.gmra.mxu0 %v2898_v62  ;;  %1259 = vmatprep.mubr.f32.mxu1 %v2909_v11  ;;  %v2187_v62 = vld [vmem:[#allocation7 + $0x2a0] sm:$0xff]  ;;  %v2188_v11 = vld [vmem:[#allocation7 + $0x278] sm:$0xff] }
 0x12e   :  { %1266 = vmatprep.subr.mxu0 %v534_v18  ;;  %1372 = vmatprep.subr.mxu1 %v2184_v5  ;;  %v443_v18 = vld [vmem:[#allocation7 + $0xc20] sm:$0xff]  ;;  %v2214_v5 = vld [vmem:[#allocation7 + $0x8] sm:$0xff] }
 0x12f   :  { %1260 = vmatmul.mubr.f32.vlgmr.msra.gmra.mxu1 %v2901_v3  ;;  %1267 = vmatpush1.msra.mxu0 %v533_v2  ;;  %v510_v3 = vld [vmem:[#allocation7 + $0xe38] sm:$0xff]  ;;  %v2213_v2 = vld [vmem:[#allocation7 + $0x30] sm:$0xff] }
 0x130   :  { %1373 = vmatpush1.msra.mxu1 %v2185_v7  ;;  %1268 = vmatprep.subr.mxu0 %v528_v4  ;;  %v630_v4 = vld [vmem:[#allocation7 + $0x11f8] sm:$0xff]  ;;  %v2215_v7 = vld [vmem:[#allocation7] sm:$0xff] }
 0x131   :  { %1374 = vmatprep.subr.mxu1 %v2186_v10  ;;  %1269 = vmatpush1.msra.mxu0 %v527_v6  ;;  %v629_v6 = vld [vmem:[#allocation7 + $0x11f0] sm:$0xff]  ;;  %v2216_v10 = vld [vmem:[#allocation7 + $0x5d8] sm:$0xff] }
 0x132   :  { %1375 = vmatpush1.msra.mxu1 %v2187_v62  ;;  %1270 = vmatprep.subr.mxu0 %v522_v9  ;;  %v624_v9 = vld [vmem:[#allocation7 + $0x11c8] sm:$0xff]  ;;  %v2217_v62 = vld [vmem:[#allocation7 + $0x5d0] sm:$0xff] }
 0x133   :  { %1376 = vmatprep.subr.mxu1 %v2188_v11  ;;  %1271 = vmatpush1.msra.mxu0 %v521_v8  ;;  %v623_v8 = vld [vmem:[#allocation7 + $0x11c0] sm:$0xff]  ;;  %v2218_v11 = vld [vmem:[#allocation7 + $0x5a8] sm:$0xff] }
 0x134   :  { %1377 = vmatpush1.msra.mxu1 %v2189_v14  ;;  %1272 = vmatprep.subr.mxu0 %v516_v12  ;;  %v618_v12 = vld [vmem:[#allocation7 + $0x1198] sm:$0xff]  ;;  %v2219_v14 = vld [vmem:[#allocation7 + $0x5a0] sm:$0xff] }
 0x135   :  { %1378 = vmatprep.subr.mxu1 %v2190_v15  ;;  %1273 = vmatpush1.msra.mxu0 %v515_v13  ;;  %v617_v13 = vld [vmem:[#allocation7 + $0x1190] sm:$0xff]  ;;  %v2220_v15 = vld [vmem:[#allocation7 + $0x578] sm:$0xff] }
 0x136   :  { %1379 = vmatpush1.msra.mxu1 %v2191_v17  ;;  %1274 = vmatprep.subr.mxu0 %v510_v3  ;;  %v612_v3 = vld [vmem:[#allocation7 + $0x1168] sm:$0xff]  ;;  %v2221_v17 = vld [vmem:[#allocation7 + $0x570] sm:$0xff] }
 0x137   :  { %1380 = vmatprep.subr.mxu1 %v2192_v20  ;;  %1275 = vmatpush1.msra.mxu0 %v509_v16  ;;  %v611_v16 = vld [vmem:[#allocation7 + $0x1160] sm:$0xff]  ;;  %v2222_v20 = vld [vmem:[#allocation7 + $0x548] sm:$0xff] }
 0x138   :  { %1381 = vmatpush1.msra.mxu1 %v2193_v22  ;;  %1276 = vmatprep.subr.mxu0 %v504_v19  ;;  %v606_v19 = vld [vmem:[#allocation7 + $0x1138] sm:$0xff]  ;;  %v2223_v22 = vld [vmem:[#allocation7 + $0x540] sm:$0xff] }
 0x139   :  { %1382 = vmatprep.subr.mxu1 %v2194_v24  ;;  %1277 = vmatpush1.msra.mxu0 %v503_v21  ;;  %v605_v21 = vld [vmem:[#allocation7 + $0x1130] sm:$0xff]  ;;  %v2224_v24 = vld [vmem:[#allocation7 + $0x518] sm:$0xff] }
 0x13a   :  { %1383 = vmatpush1.msra.mxu1 %v2195_v27  ;;  %1278 = vmatprep.subr.mxu0 %v498_v23  ;;  %v600_v23 = vld [vmem:[#allocation7 + $0x1108] sm:$0xff]  ;;  %v2225_v27 = vld [vmem:[#allocation7 + $0x510] sm:$0xff] }
 0x13b   :  { %1384 = vmatprep.subr.mxu1 %v2196_v29  ;;  %1279 = vmatpush1.msra.mxu0 %v497_v26  ;;  %v599_v26 = vld [vmem:[#allocation7 + $0x1100] sm:$0xff]  ;;  %v2226_v29 = vld [vmem:[#allocation7 + $0x4e8] sm:$0xff] }
 0x13c   :  { %1385 = vmatpush1.msra.mxu1 %v2197_v32  ;;  %1280 = vmatprep.subr.mxu0 %v492_v28  ;;  %v594_v28 = vld [vmem:[#allocation7 + $0x10d8] sm:$0xff]  ;;  %v2227_v32 = vld [vmem:[#allocation7 + $0x4e0] sm:$0xff] }
 0x13d   :  { %1386 = vmatprep.subr.mxu1 %v2198_v34  ;;  %1281 = vmatpush1.msra.mxu0 %v491_v31  ;;  %v593_v31 = vld [vmem:[#allocation7 + $0x10d0] sm:$0xff]  ;;  %v2228_v34 = vld [vmem:[#allocation7 + $0x4b8] sm:$0xff] }
 0x13e   :  { %1387 = vmatpush1.msra.mxu1 %v2199_v36  ;;  %1282 = vmatprep.subr.mxu0 %v486_v33  ;;  %v588_v33 = vld [vmem:[#allocation7 + $0x10a8] sm:$0xff]  ;;  %v2229_v36 = vld [vmem:[#allocation7 + $0x4b0] sm:$0xff] }
 0x13f   :  { %1388 = vmatprep.subr.mxu1 %v2200_v38  ;;  %1283 = vmatpush1.msra.mxu0 %v485_v35  ;;  %v587_v35 = vld [vmem:[#allocation7 + $0x10a0] sm:$0xff]  ;;  %v2230_v38 = vld [vmem:[#allocation7 + $0x488] sm:$0xff] }
 0x140   :  { %1389 = vmatpush1.msra.mxu1 %v2201_v40  ;;  %1284 = vmatprep.subr.mxu0 %v480_v37  ;;  %v582_v37 = vld [vmem:[#allocation7 + $0x1078] sm:$0xff]  ;;  %v2231_v40 = vld [vmem:[#allocation7 + $0x480] sm:$0xff] }
 0x141   :  { %1390 = vmatprep.subr.mxu1 %v2202_v43  ;;  %1285 = vmatpush1.msra.mxu0 %v479_v39  ;;  %v581_v39 = vld [vmem:[#allocation7 + $0x1070] sm:$0xff]  ;;  %v2232_v43 = vld [vmem:[#allocation7 + $0x458] sm:$0xff] }
 0x142   :  { %1391 = vmatpush1.msra.mxu1 %v2203_v45  ;;  %1286 = vmatprep.subr.mxu0 %v474_v42  ;;  %v576_v42 = vld [vmem:[#allocation7 + $0x1048] sm:$0xff]  ;;  %v2233_v45 = vld [vmem:[#allocation7 + $0x450] sm:$0xff] }
 0x143   :  { %1392 = vmatprep.subr.mxu1 %v2204_v47  ;;  %1287 = vmatpush1.msra.mxu0 %v473_v44  ;;  %v575_v44 = vld [vmem:[#allocation7 + $0x1040] sm:$0xff]  ;;  %v2234_v47 = vld [vmem:[#allocation7 + $0x428] sm:$0xff] }
 0x144   :  { %1393 = vmatpush1.msra.mxu1 %v2205_v49  ;;  %1288 = vmatprep.subr.mxu0 %v468_v46  ;;  %v570_v46 = vld [vmem:[#allocation7 + $0x1018] sm:$0xff]  ;;  %v2235_v49 = vld [vmem:[#allocation7 + $0x420] sm:$0xff] }
 0x145   :  { %1394 = vmatprep.subr.mxu1 %v2206_v51  ;;  %1289 = vmatpush1.msra.mxu0 %v467_v48  ;;  %v569_v48 = vld [vmem:[#allocation7 + $0x1010] sm:$0xff]  ;;  %v2236_v51 = vld [vmem:[#allocation7 + $0x3f8] sm:$0xff] }
 0x146   :  { %1395 = vmatpush1.msra.mxu1 %v2207_v54  ;;  %1290 = vmatprep.subr.mxu0 %v462_v50  ;;  %v564_v50 = vld [vmem:[#allocation7 + $0xfe8] sm:$0xff]  ;;  %v2237_v54 = vld [vmem:[#allocation7 + $0x3f0] sm:$0xff] }
 0x147   :  { %1396 = vmatprep.subr.mxu1 %v2208_v56  ;;  %1291 = vmatpush1.msra.mxu0 %v461_v53  ;;  %v563_v53 = vld [vmem:[#allocation7 + $0xfe0] sm:$0xff]  ;;  %v2238_v56 = vld [vmem:[#allocation7 + $0x3c8] sm:$0xff] }
 0x148   :  { %1397 = vmatpush1.msra.mxu1 %v2209_v58  ;;  %1292 = vmatprep.subr.mxu0 %v456_v55  ;;  %v558_v55 = vld [vmem:[#allocation7 + $0xfb8] sm:$0xff] }
 0x149   :  { %1398 = vmatprep.subr.mxu1 %v2210_v60  ;;  %1293 = vmatpush1.msra.mxu0 %v455_v57  ;;  %v557_v57 = vld [vmem:[#allocation7 + $0xfb0] sm:$0xff]  ;;  %v552_v60 = vld [vmem:[#allocation7 + $0xf88] sm:$0xff] }
 0x14a   :  { %1399 = vmatpush1.msra.mxu1 %v2211_v63  ;;  %1294 = vmatprep.subr.mxu0 %v450_v59  ;;  %v2933_v58 = vld [vmem:[#allocation5] sm:$0xff]  ;;  %v2239_v59 = vld [vmem:[#allocation7 + $0x3c0] sm:$0xff] }
 0x14b   :  { %1400 = vmatprep.subr.mxu1 %v2212_v1  ;;  %1295 = vmatpush1.msra.mxu0 %v449_v61  ;;  %v2240_v61 = vld [vmem:[#allocation7 + $0x398] sm:$0xff]  ;;  %v551_v63 = vld [vmem:[#allocation7 + $0xf80] sm:$0xff] }
 0x14c   :  { %1401 = vmatpush1.msra.mxu1 %v2213_v2  ;;  %1296 = vmatprep.subr.mxu0 %v444_v0  ;;  %v2241_v0 = vld [vmem:[#allocation7 + $0x390] sm:$0xff]  ;;  %v546_v1 = vld [vmem:[#allocation7 + $0xf58] sm:$0xff]  ;;  %v2242_v2 = vld [vmem:[#allocation7 + $0x368] sm:$0xff] }
 0x14d   :  { %1402 = vmatprep.subr.mxu1 %v2214_v5  ;;  %1297 = vmatpush1.msra.mxu0 %v443_v18  ;;  %v2937_v18 = vrot.slane %v2933_v58, %v2895_v52  ;;  %v2243_v5 = vld [vmem:[#allocation7 + $0x360] sm:$0xff] }
 0x14e   :  { %1403 = vmatpush1.msra.mxu1 %v2215_v7  ;;  %1298 = vmatprep.subr.mxu0 %v630_v4  ;;  %v545_v4 = vld [vmem:[#allocation7 + $0xf50] sm:$0xff]  ;;  %v2244_v7 = vld [vmem:[#allocation7 + $0x338] sm:$0xff] }
 0x14f   :  { %1404 = vmatprep.subr.mxu1 %v2216_v10  ;;  %1299 = vmatpush2.msra.mxu0 %v629_v6  ;;  %v540_v6 = vld [vmem:[#allocation7 + $0xf28] sm:$0xff]  ;;  %v2245_v10 = vld [vmem:[#allocation7 + $0x330] sm:$0xff] }
 0x150   :  { %1405 = vmatpush2.msra.mxu1 %v2217_v62  ;;  %1300 = vmatprep.subr.mxu0 %v624_v9  ;;  %v539_v9 = vld [vmem:[#allocation7 + $0xf20] sm:$0xff]  ;;  %v2246_v62 = vld [vmem:[#allocation7 + $0x308] sm:$0xff] }
 0x151   :  { %1406 = vmatprep.subr.mxu1 %v2218_v11  ;;  %1301 = vmatpush2.msra.mxu0 %v623_v8  ;;  %v2941_v8 = vcombine.high %v2937_v18, %v2937_v18  ;;  %v2248_v11 = vld.sshfl [vmem:[#allocation2 + $0x8] sm:$0x33 pattern:$0x76325410] }
 0x152   :  { %1407 = vmatpush2.msra.mxu1 %v2219_v14  ;;  %1302 = vmatprep.subr.mxu0 %v618_v12  ;;  %v2247_v12 = vld [vmem:[#allocation7 + $0x300] sm:$0xff]  ;;  %v2250_v14 = vld [vmem:[#allocation7 + $0xed8] sm:$0xff] }
 0x153   :  { %1408 = vmatprep.subr.mxu1 %v2220_v15  ;;  %1303 = vmatpush2.msra.mxu0 %v617_v13  ;;  %v2249_v13 = vld [vmem:[#allocation7 + $0x8d8] sm:$0xff]  ;;  %v2252_v15 = vld [vmem:[#allocation7 + $0xed0] sm:$0xff] }
 0x154   :  { %1409 = vmatpush2.msra.mxu1 %v2221_v17  ;;  %1304 = vmatprep.subr.mxu0 %v612_v3  ;;  %v2251_v3 = vld [vmem:[#allocation7 + $0x8d0] sm:$0xff]  ;;  %v2254_v17 = vld [vmem:[#allocation7 + $0xea8] sm:$0xff] }
 0x155   :  { %1410 = vmatprep.subr.mxu1 %v2222_v20  ;;  %1305 = vmatpush2.msra.mxu0 %v611_v16  ;;  %v2253_v16 = vld [vmem:[#allocation7 + $0x8a8] sm:$0xff]  ;;  %v2257_v20 = vld [vmem:[#allocation7 + $0x878] sm:$0xff] }
 0x156   :  { %1411 = vmatpush2.msra.mxu1 %v2223_v22  ;;  %1306 = vmatprep.subr.mxu0 %v606_v19  ;;  %v2256_v19 = vld [vmem:[#allocation7 + $0xea0] sm:$0xff]  ;;  %v2259_v22 = vld [vmem:[#allocation7 + $0x870] sm:$0xff] }
 0x157   :  { %1412 = vmatprep.subr.mxu1 %v2224_v24  ;;  %1307 = vmatpush2.msra.mxu0 %v605_v21  ;;  %v2258_v21 = vld [vmem:[#allocation7 + $0xe78] sm:$0xff]  ;;  %v2261_v24 = vld [vmem:[#allocation7 + $0x848] sm:$0xff] }
 0x158   :  { %1413 = vmatpush2.msra.mxu1 %v2225_v27  ;;  %1308 = vmatprep.subr.mxu0 %v600_v23  ;;  %v2260_v23 = vld [vmem:[#allocation7 + $0xe70] sm:$0xff]  ;;  %v2263_v27 = vld [vmem:[#allocation7 + $0x840] sm:$0xff] }
 0x159   :  { %1414 = vmatprep.subr.mxu1 %v2226_v29  ;;  %1309 = vmatpush2.msra.mxu0 %v599_v26  ;;  %v2262_v26 = vld [vmem:[#allocation7 + $0xe48] sm:$0xff]  ;;  %v2265_v29 = vld [vmem:[#allocation7 + $0x818] sm:$0xff] }
 0x15a   :  { %1415 = vmatpush2.msra.mxu1 %v2227_v32  ;;  %1310 = vmatprep.subr.mxu0 %v594_v28  ;;  %v2264_v28 = vld [vmem:[#allocation7 + $0xe40] sm:$0xff]  ;;  %v2267_v32 = vld [vmem:[#allocation7 + $0x810] sm:$0xff] }
 0x15b   :  { %1416 = vmatprep.subr.mxu1 %v2228_v34  ;;  %1311 = vmatpush2.msra.mxu0 %v593_v31  ;;  %v2266_v31 = vld [vmem:[#allocation7 + $0xe18] sm:$0xff]  ;;  %v2269_v34 = vld [vmem:[#allocation7 + $0x7e8] sm:$0xff] }
 0x15c   :  { %1417 = vmatpush2.msra.mxu1 %v2229_v36  ;;  %1312 = vmatprep.subr.mxu0 %v588_v33  ;;  %v2268_v33 = vld [vmem:[#allocation7 + $0xe10] sm:$0xff]  ;;  %v2271_v36 = vld [vmem:[#allocation7 + $0x7e0] sm:$0xff] }
 0x15d   :  { %1418 = vmatprep.subr.mxu1 %v2230_v38  ;;  %1313 = vmatpush2.msra.mxu0 %v587_v35  ;;  %v2270_v35 = vld [vmem:[#allocation7 + $0xde8] sm:$0xff]  ;;  %v2273_v38 = vld [vmem:[#allocation7 + $0x7b8] sm:$0xff] }
 0x15e   :  { %1419 = vmatpush2.msra.mxu1 %v2231_v40  ;;  %1314 = vmatprep.subr.mxu0 %v582_v37  ;;  %v2272_v37 = vld [vmem:[#allocation7 + $0xde0] sm:$0xff]  ;;  %v2275_v40 = vld [vmem:[#allocation7 + $0x7b0] sm:$0xff] }
 0x15f   :  { %1420 = vmatprep.subr.mxu1 %v2232_v43  ;;  %1315 = vmatpush2.msra.mxu0 %v581_v39  ;;  %v2274_v39 = vld [vmem:[#allocation7 + $0xdb8] sm:$0xff]  ;;  %v2277_v43 = vld [vmem:[#allocation7 + $0x788] sm:$0xff] }
 0x160   :  { %1421 = vmatpush2.msra.mxu1 %v2233_v45  ;;  %1316 = vmatprep.subr.mxu0 %v576_v42  ;;  %v2276_v42 = vld [vmem:[#allocation7 + $0xdb0] sm:$0xff]  ;;  %v2279_v45 = vld [vmem:[#allocation7 + $0x780] sm:$0xff] }
 0x161   :  { %1422 = vmatprep.subr.mxu1 %v2234_v47  ;;  %1317 = vmatpush2.msra.mxu0 %v575_v44  ;;  %v2278_v44 = vld [vmem:[#allocation7 + $0xd88] sm:$0xff]  ;;  %v2281_v47 = vld [vmem:[#allocation7 + $0x758] sm:$0xff] }
 0x162   :  { %1423 = vmatpush2.msra.mxu1 %v2235_v49  ;;  %1318 = vmatprep.subr.mxu0 %v570_v46  ;;  %v2280_v46 = vld [vmem:[#allocation7 + $0xd80] sm:$0xff]  ;;  %v2283_v49 = vld [vmem:[#allocation7 + $0x750] sm:$0xff] }
 0x163   :  { %1424 = vmatprep.subr.mxu1 %v2236_v51  ;;  %1319 = vmatpush2.msra.mxu0 %v569_v48  ;;  %v2282_v48 = vld [vmem:[#allocation7 + $0xd58] sm:$0xff]  ;;  %v2285_v51 = vld [vmem:[#allocation7 + $0x728] sm:$0xff] }
 0x164   :  { %1425 = vmatpush2.msra.mxu1 %v2237_v54  ;;  %1320 = vmatprep.subr.mxu0 %v564_v50  ;;  %v2284_v50 = vld [vmem:[#allocation7 + $0xd50] sm:$0xff]  ;;  %v2287_v54 = vld [vmem:[#allocation7 + $0x720] sm:$0xff] }
 0x165   :  { %1426 = vmatprep.subr.mxu1 %v2238_v56  ;;  %1321 = vmatpush2.msra.mxu0 %v563_v53  ;;  %v2286_v53 = vld [vmem:[#allocation7 + $0xd28] sm:$0xff]  ;;  %v2289_v56 = vld [vmem:[#allocation7 + $0x6f8] sm:$0xff] }
 0x166   :  { %1427 = vmatpush2.msra.mxu1 %v2239_v59  ;;  %1322 = vmatprep.subr.mxu0 %v558_v55  ;;  %v2288_v55 = vld [vmem:[#allocation7 + $0xd20] sm:$0xff]  ;;  %v2291_v59 = vld [vmem:[#allocation7 + $0x6f0] sm:$0xff] }
 0x167   :  { %1428 = vmatprep.subr.mxu1 %v2240_v61  ;;  %1323 = vmatpush2.msra.mxu0 %v557_v57  ;;  %v2290_v57 = vld [vmem:[#allocation7 + $0xcf8] sm:$0xff]  ;;  %v2293_v61 = vld [vmem:[#allocation7 + $0x6c8] sm:$0xff] }
 0x168   :  { %1429 = vmatpush2.msra.mxu1 %v2241_v0  ;;  %1324 = vmatprep.subr.mxu0 %v552_v60  ;;  %v2292_v60 = vld [vmem:[#allocation7 + $0xcf0] sm:$0xff]  ;;  %v2295_v0 = vld [vmem:[#allocation7 + $0x6c0] sm:$0xff] }
 0x169   :  { %1430 = vmatprep.subr.mxu1 %v2242_v2  ;;  %1325 = vmatpush2.msra.mxu0 %v551_v63  ;;  %v2294_v63 = vld [vmem:[#allocation7 + $0xcc8] sm:$0xff]  ;;  %v2297_v2 = vld [vmem:[#allocation7 + $0x698] sm:$0xff] }
 0x16a   :  { %1431 = vmatpush2.msra.mxu1 %v2243_v5  ;;  %1326 = vmatprep.subr.mxu0 %v546_v1  ;;  %v2296_v1 = vld [vmem:[#allocation7 + $0xcc0] sm:$0xff]  ;;  %v2299_v5 = vld [vmem:[#allocation7 + $0x690] sm:$0xff] }
 0x16b   :  { %1432 = vmatprep.subr.mxu1 %v2244_v7  ;;  %1327 = vmatpush2.msra.mxu0 %v545_v4  ;;  %v2298_v4 = vld [vmem:[#allocation7 + $0xc98] sm:$0xff]  ;;  %v2301_v7 = vld [vmem:[#allocation7 + $0x668] sm:$0xff] }
 0x16c   :  { %1433 = vmatpush2.msra.mxu1 %v2245_v10  ;;  %1328 = vmatprep.subr.mxu0 %v540_v6  ;;  %v2300_v6 = vld [vmem:[#allocation7 + $0xc90] sm:$0xff]  ;;  %v2303_v10 = vld [vmem:[#allocation7 + $0x660] sm:$0xff] }
 0x16d   :  { %1434 = vmatprep.subr.mxu1 %v2246_v62  ;;  %1329 = vmatpush2.msra.mxu0 %v539_v9  ;;  %v2302_v9 = vld [vmem:[#allocation7 + $0xc68] sm:$0xff]  ;;  %v2304_v62 = vld [vmem:[#allocation7 + $0xc60] sm:$0xff] }
 0x16e   :  { %1330 = vmatprep.mubr.f32.mxu0 %v2919_v25  ;;  %1435 = vmatpush2.msra.mxu1 %v2247_v12  ;;  %v2255_v25 = vld [vmem:[#allocation7 + $0x8a0] sm:$0xff]  ;;  %v2305_v12 = vld [vmem:[#allocation7 + $0x638] sm:$0xff] }
 0x16f   :  { %1331 = vmatmul.mubr.f32.vlgmr.msra.gmra.mxu0 %v2248_v11  ;;  %1436 = vmatprep.mubr.f32.mxu1 %v2941_v8  ;;  %v2306_v11 = vld [vmem:[#allocation7 + $0xc38] sm:$0xff] }
 0x170   :  { %1443 = vmatprep.subr.mxu0 %v2249_v13  ;;  %1514 = vmatprep.subr.mxu1 %v2250_v14  ;;  %v2307_v13 = vld [vmem:[#allocation7 + $0x630] sm:$0xff] }
 0x171   :  { %1437 = vmatmul.mubr.f32.vlgmr.msra.gmra.mxu1 %v2937_v18  ;;  %1444 = vmatpush1.msra.mxu0 %v2251_v3  ;;  %v2308_v14 = vld [vmem:[#allocation7 + $0xc30] sm:$0xff]  ;;  %v2309_v3 = vld [vmem:[#allocation7 + $0x608] sm:$0xff] }
 0x172   :  { %1515 = vmatpush1.msra.mxu1 %v2252_v15  ;;  %1445 = vmatprep.subr.mxu0 %v2253_v16  ;;  %v2310_v15 = vld [vmem:[#allocation7 + $0xc08] sm:$0xff]  ;;  %v2311_v16 = vld [vmem:[#allocation7 + $0x600] sm:$0xff] }
 0x173   :  { %1516 = vmatprep.subr.mxu1 %v2254_v17  ;;  %1446 = vmatpush1.msra.mxu0 %v2255_v25  ;;  %v2312_v17 = vld [vmem:[#allocation7 + $0xc00] sm:$0xff]  ;;  %v2313_v25 = vld [vmem:[#allocation7 + $0xbd8] sm:$0xff] }
 0x174   :  { %1517 = vmatpush1.msra.mxu1 %v2256_v19  ;;  %1447 = vmatprep.subr.mxu0 %v2257_v20  ;;  %v2314_v19 = vld [vmem:[#allocation7 + $0x11d8] sm:$0xff]  ;;  %v2315_v20 = vld [vmem:[#allocation7 + $0xbd0] sm:$0xff] }
 0x175   :  { %1518 = vmatprep.subr.mxu1 %v2258_v21  ;;  %1448 = vmatpush1.msra.mxu0 %v2259_v22  ;;  %v2316_v21 = vld [vmem:[#allocation7 + $0x11d0] sm:$0xff]  ;;  %v2317_v22 = vld [vmem:[#allocation7 + $0xba8] sm:$0xff] }
 0x176   :  { %1519 = vmatpush1.msra.mxu1 %v2260_v23  ;;  %1449 = vmatprep.subr.mxu0 %v2261_v24  ;;  %v2318_v23 = vld [vmem:[#allocation7 + $0x11a8] sm:$0xff]  ;;  %v2319_v24 = vld [vmem:[#allocation7 + $0xba0] sm:$0xff] }
 0x177   :  { %1520 = vmatprep.subr.mxu1 %v2262_v26  ;;  %1450 = vmatpush1.msra.mxu0 %v2263_v27  ;;  %v2320_v26 = vld [vmem:[#allocation7 + $0x11a0] sm:$0xff]  ;;  %v2321_v27 = vld [vmem:[#allocation7 + $0xb78] sm:$0xff] }
 0x178   :  { %1521 = vmatpush1.msra.mxu1 %v2264_v28  ;;  %1451 = vmatprep.subr.mxu0 %v2265_v29  ;;  %v2322_v28 = vld [vmem:[#allocation7 + $0x1178] sm:$0xff]  ;;  %v2323_v29 = vld [vmem:[#allocation7 + $0xb70] sm:$0xff] }
 0x179   :  { %1522 = vmatprep.subr.mxu1 %v2266_v31  ;;  %1452 = vmatpush1.msra.mxu0 %v2267_v32  ;;  %v2324_v31 = vld [vmem:[#allocation7 + $0x1170] sm:$0xff]  ;;  %v2325_v32 = vld [vmem:[#allocation7 + $0xb48] sm:$0xff] }
 0x17a   :  { %1523 = vmatpush1.msra.mxu1 %v2268_v33  ;;  %1453 = vmatprep.subr.mxu0 %v2269_v34  ;;  %v2326_v33 = vld [vmem:[#allocation7 + $0x1148] sm:$0xff]  ;;  %v2327_v34 = vld [vmem:[#allocation7 + $0xb40] sm:$0xff] }
 0x17b   :  { %1524 = vmatprep.subr.mxu1 %v2270_v35  ;;  %1454 = vmatpush1.msra.mxu0 %v2271_v36  ;;  %v2328_v35 = vld [vmem:[#allocation7 + $0x1140] sm:$0xff]  ;;  %v2329_v36 = vld [vmem:[#allocation7 + $0xb18] sm:$0xff] }
 0x17c   :  { %1525 = vmatpush1.msra.mxu1 %v2272_v37  ;;  %1455 = vmatprep.subr.mxu0 %v2273_v38  ;;  %v2330_v37 = vld [vmem:[#allocation7 + $0x1118] sm:$0xff]  ;;  %v2331_v38 = vld [vmem:[#allocation7 + $0xb10] sm:$0xff] }
 0x17d   :  { %1526 = vmatprep.subr.mxu1 %v2274_v39  ;;  %1456 = vmatpush1.msra.mxu0 %v2275_v40  ;;  %v2332_v39 = vld [vmem:[#allocation7 + $0x1110] sm:$0xff]  ;;  %v2333_v40 = vld [vmem:[#allocation7 + $0xae8] sm:$0xff] }
 0x17e   :  { %1527 = vmatpush1.msra.mxu1 %v2276_v42  ;;  %1457 = vmatprep.subr.mxu0 %v2277_v43  ;;  %v2334_v42 = vld [vmem:[#allocation7 + $0x10e8] sm:$0xff]  ;;  %v2335_v43 = vld [vmem:[#allocation7 + $0xae0] sm:$0xff] }
 0x17f   :  { %1528 = vmatprep.subr.mxu1 %v2278_v44  ;;  %1458 = vmatpush1.msra.mxu0 %v2279_v45  ;;  %v2336_v44 = vld [vmem:[#allocation7 + $0x10e0] sm:$0xff]  ;;  %v2337_v45 = vld [vmem:[#allocation7 + $0xab8] sm:$0xff] }
 0x180   :  { %1529 = vmatpush1.msra.mxu1 %v2280_v46  ;;  %1459 = vmatprep.subr.mxu0 %v2281_v47  ;;  %v2338_v46 = vld [vmem:[#allocation7 + $0x10b8] sm:$0xff]  ;;  %v2339_v47 = vld [vmem:[#allocation7 + $0xab0] sm:$0xff] }
 0x181   :  { %1530 = vmatprep.subr.mxu1 %v2282_v48  ;;  %1460 = vmatpush1.msra.mxu0 %v2283_v49  ;;  %v2340_v48 = vld [vmem:[#allocation7 + $0x10b0] sm:$0xff]  ;;  %v2341_v49 = vld [vmem:[#allocation7 + $0xa88] sm:$0xff] }
 0x182   :  { %1531 = vmatpush1.msra.mxu1 %v2284_v50  ;;  %1461 = vmatprep.subr.mxu0 %v2285_v51  ;;  %v2342_v50 = vld [vmem:[#allocation7 + $0x1088] sm:$0xff]  ;;  %v2343_v51 = vld [vmem:[#allocation7 + $0xa80] sm:$0xff] }
 0x183   :  { %1532 = vmatprep.subr.mxu1 %v2286_v53  ;;  %1462 = vmatpush1.msra.mxu0 %v2287_v54  ;;  %v2344_v53 = vld [vmem:[#allocation7 + $0x1080] sm:$0xff]  ;;  %v2345_v54 = vld [vmem:[#allocation7 + $0xa58] sm:$0xff] }
 0x184   :  { %1533 = vmatpush1.msra.mxu1 %v2288_v55  ;;  %1463 = vmatprep.subr.mxu0 %v2289_v56  ;;  %v2346_v55 = vld [vmem:[#allocation7 + $0x1058] sm:$0xff]  ;;  %v2347_v56 = vld [vmem:[#allocation7 + $0xa50] sm:$0xff] }
 0x185   :  { %1534 = vmatprep.subr.mxu1 %v2290_v57  ;;  %1464 = vmatpush1.msra.mxu0 %v2291_v59  ;;  %v2348_v57 = vld [vmem:[#allocation7 + $0x1050] sm:$0xff]  ;;  %v2349_v59 = vld [vmem:[#allocation7 + $0xa28] sm:$0xff] }
 0x186   :  { %1535 = vmatpush1.msra.mxu1 %v2292_v60  ;;  %1465 = vmatprep.subr.mxu0 %v2293_v61  ;;  %v2350_v60 = vld [vmem:[#allocation7 + $0x1028] sm:$0xff]  ;;  %v2351_v61 = vld [vmem:[#allocation7 + $0xa20] sm:$0xff] }
 0x187   :  { %1536 = vmatprep.subr.mxu1 %v2294_v63  ;;  %1466 = vmatpush1.msra.mxu0 %v2295_v0  ;;  %v2352_v63 = vld [vmem:[#allocation7 + $0x1020] sm:$0xff]  ;;  %v1341_v0 = vcombine.high %v2933_v58, %v2933_v58  ;;  %v2361_v58 = vld [vmem:[#allocation7 + $0x998] sm:$0xff] }
 0x188   :  { %1537 = vmatpush1.msra.mxu1 %v2296_v1  ;;  %1467 = vmatprep.subr.mxu0 %v2297_v2  ;;  %v2353_v1 = vld [vmem:[#allocation7 + $0x9f8] sm:$0xff] }
 0x189   :  { %1538 = vmatprep.subr.mxu1 %v2298_v4  ;;  %1468 = vmatpush1.msra.mxu0 %v2299_v5  ;;  %v2354_v2 = vld [vmem:[#allocation7 + $0xff8] sm:$0xff]  ;;  %v2355_v4 = vld [vmem:[#allocation7 + $0x9f0] sm:$0xff] }
 0x18a   :  { %1539 = vmatpush1.msra.mxu1 %v2300_v6  ;;  %1469 = vmatprep.subr.mxu0 %v2301_v7  ;;  %v2356_v5 = vld [vmem:[#allocation7 + $0xff0] sm:$0xff]  ;;  %v2357_v6 = vld [vmem:[#allocation7 + $0x9c8] sm:$0xff] }
 0x18b   :  { %1540 = vmatprep.subr.mxu1 %v2302_v9  ;;  %1470 = vmatpush1.msra.mxu0 %v2303_v10  ;;  %v2358_v7 = vld [vmem:[#allocation7 + $0xfc8] sm:$0xff]  ;;  %v2359_v9 = vld [vmem:[#allocation7 + $0x9c0] sm:$0xff] }
 0x18c   :  { %1541 = vmatpush1.msra.mxu1 %v2304_v62  ;;  %1471 = vmatprep.subr.mxu0 %v2305_v12  ;;  %v2360_v10 = vld [vmem:[#allocation7 + $0xfc0] sm:$0xff]  ;;  %v2949_v62 = vrot.slane %v1341_v0, %v2895_v52  ;;  %v2362_v12 = vld [vmem:[#allocation7 + $0xf98] sm:$0xff]  ;;  %v2408_v0 = vld [vmem:[#allocation7 + $0x790] sm:$0xff] }
 0x18d   :  { %1542 = vmatprep.subr.mxu1 %v2306_v11  ;;  %1472 = vmatpush1.msra.mxu0 %v2307_v13  ;;  %v2363_v11 = vld [vmem:[#allocation7 + $0x990] sm:$0xff] }
 0x18e   :  { %1543 = vmatpush1.msra.mxu1 %v2308_v14  ;;  %1473 = vmatprep.subr.mxu0 %v2309_v3  ;;  %v2364_v13 = vld [vmem:[#allocation7 + $0xf90] sm:$0xff]  ;;  %v2365_v14 = vld [vmem:[#allocation7 + $0x968] sm:$0xff]  ;;  %v2955_v52 = vcombine.high %v2949_v62, %v2949_v62 }
 0x18f   :  { %1544 = vmatprep.subr.mxu1 %v2310_v15  ;;  %1474 = vmatpush1.msra.mxu0 %v2311_v16  ;;  %v2366_v3 = vld [vmem:[#allocation7 + $0xf68] sm:$0xff]  ;;  %v2951_v15 = vld.sshfl [vmem:[#allocation5 + $0x8] sm:$0x33 pattern:$0x76325410]  ;;  %v2367_v16 = vld [vmem:[#allocation7 + $0x960] sm:$0xff] }
 0x190   :  { %1545 = vmatpush1.msra.mxu1 %v2312_v17  ;;  %1475 = vmatprep.subr.mxu0 %v2313_v25  ;;  %v2368_v17 = vld [vmem:[#allocation7 + $0xf60] sm:$0xff]  ;;  %v2369_v25 = vld [vmem:[#allocation7 + $0x938] sm:$0xff] }
 0x191   :  { %1546 = vmatprep.subr.mxu1 %v2314_v19  ;;  %1476 = vmatpush2.msra.mxu0 %v2315_v20  ;;  %v2370_v19 = vld [vmem:[#allocation7 + $0xf38] sm:$0xff]  ;;  %v2371_v20 = vld [vmem:[#allocation7 + $0x930] sm:$0xff] }
 0x192   :  { %1547 = vmatpush2.msra.mxu1 %v2316_v21  ;;  %1477 = vmatprep.subr.mxu0 %v2317_v22  ;;  %v2372_v21 = vld [vmem:[#allocation7 + $0xf30] sm:$0xff]  ;;  %v2959_v22 = vcombine.high %v2951_v15, %v2951_v15 }
 0x193   :  { %1548 = vmatprep.subr.mxu1 %v2318_v23  ;;  %1478 = vmatpush2.msra.mxu0 %v2319_v24  ;;  %v2373_v23 = vld [vmem:[#allocation7 + $0x908] sm:$0xff] }
 0x194   :  { %1549 = vmatpush2.msra.mxu1 %v2320_v26  ;;  %1479 = vmatprep.subr.mxu0 %v2321_v27  ;;  %v2374_v24 = vld [vmem:[#allocation7 + $0xf08] sm:$0xff]  ;;  %v2375_v26 = vld [vmem:[#allocation7 + $0x900] sm:$0xff] }
 0x195   :  { %1550 = vmatprep.subr.mxu1 %v2322_v28  ;;  %1480 = vmatpush2.msra.mxu0 %v2323_v29  ;;  %v2376_v27 = vld [vmem:[#allocation7 + $0xf00] sm:$0xff]  ;;  %v2377_v28 = vld [vmem:[#allocation7 + $0x2e8] sm:$0xff] }
 0x196   :  { %1551 = vmatpush2.msra.mxu1 %v2324_v31  ;;  %1481 = vmatprep.subr.mxu0 %v2325_v32  ;;  %v2378_v29 = vld [vmem:[#allocation7 + $0x8e8] sm:$0xff]  ;;  %v2379_v31 = vld [vmem:[#allocation7 + $0x2e0] sm:$0xff] }
 0x197   :  { %1552 = vmatprep.subr.mxu1 %v2326_v33  ;;  %1482 = vmatpush2.msra.mxu0 %v2327_v34  ;;  %v2380_v32 = vld [vmem:[#allocation7 + $0x8e0] sm:$0xff]  ;;  %v2381_v33 = vld [vmem:[#allocation7 + $0x2b8] sm:$0xff] }
 0x198   :  { %1553 = vmatpush2.msra.mxu1 %v2328_v35  ;;  %1483 = vmatprep.subr.mxu0 %v2329_v36  ;;  %v2382_v34 = vld [vmem:[#allocation7 + $0x8b8] sm:$0xff]  ;;  %v2383_v35 = vld [vmem:[#allocation7 + $0x2b0] sm:$0xff] }
 0x199   :  { %1554 = vmatprep.subr.mxu1 %v2330_v37  ;;  %1484 = vmatpush2.msra.mxu0 %v2331_v38  ;;  %v2384_v36 = vld [vmem:[#allocation7 + $0x8b0] sm:$0xff]  ;;  %v2385_v37 = vld [vmem:[#allocation7 + $0x288] sm:$0xff] }
 0x19a   :  { %1555 = vmatpush2.msra.mxu1 %v2332_v39  ;;  %1485 = vmatprep.subr.mxu0 %v2333_v40  ;;  %v2386_v38 = vld [vmem:[#allocation7 + $0x888] sm:$0xff]  ;;  %v2387_v39 = vld [vmem:[#allocation7 + $0x280] sm:$0xff] }
 0x19b   :  { %1556 = vmatprep.subr.mxu1 %v2334_v42  ;;  %1486 = vmatpush2.msra.mxu0 %v2335_v43  ;;  %v2388_v40 = vld [vmem:[#allocation7 + $0x880] sm:$0xff]  ;;  %v2389_v42 = vld [vmem:[#allocation7 + $0x258] sm:$0xff] }
 0x19c   :  { %1557 = vmatpush2.msra.mxu1 %v2336_v44  ;;  %1487 = vmatprep.subr.mxu0 %v2337_v45  ;;  %v2390_v43 = vld [vmem:[#allocation7 + $0x858] sm:$0xff]  ;;  %v2391_v44 = vld [vmem:[#allocation7 + $0x250] sm:$0xff] }
 0x19d   :  { %1558 = vmatprep.subr.mxu1 %v2338_v46  ;;  %1488 = vmatpush2.msra.mxu0 %v2339_v47  ;;  %v2392_v45 = vld [vmem:[#allocation7 + $0x850] sm:$0xff]  ;;  %v2393_v46 = vld [vmem:[#allocation7 + $0x228] sm:$0xff] }
 0x19e   :  { %1559 = vmatpush2.msra.mxu1 %v2340_v48  ;;  %1489 = vmatprep.subr.mxu0 %v2341_v49  ;;  %v2394_v47 = vld [vmem:[#allocation7 + $0x828] sm:$0xff]  ;;  %v2395_v48 = vld [vmem:[#allocation7 + $0x220] sm:$0xff] }
 0x19f   :  { %1560 = vmatprep.subr.mxu1 %v2342_v50  ;;  %1490 = vmatpush2.msra.mxu0 %v2343_v51  ;;  %v2396_v49 = vld [vmem:[#allocation7 + $0x820] sm:$0xff]  ;;  %v2397_v50 = vld [vmem:[#allocation7 + $0x1f8] sm:$0xff] }
 0x1a0   :  { %1561 = vmatpush2.msra.mxu1 %v2344_v53  ;;  %1491 = vmatprep.subr.mxu0 %v2345_v54  ;;  %v2398_v51 = vld [vmem:[#allocation7 + $0x7f8] sm:$0xff]  ;;  %v2399_v53 = vld [vmem:[#allocation7 + $0x1f0] sm:$0xff] }
 0x1a1   :  { %1562 = vmatprep.subr.mxu1 %v2346_v55  ;;  %1492 = vmatpush2.msra.mxu0 %v2347_v56  ;;  %v2400_v54 = vld [vmem:[#allocation7 + $0x7f0] sm:$0xff]  ;;  %v2401_v55 = vld [vmem:[#allocation7 + $0x1c8] sm:$0xff] }
 0x1a2   :  { %1563 = vmatpush2.msra.mxu1 %v2348_v57  ;;  %1493 = vmatprep.subr.mxu0 %v2349_v59  ;;  %v2402_v56 = vld [vmem:[#allocation7 + $0x7c8] sm:$0xff]  ;;  %v2403_v57 = vld [vmem:[#allocation7 + $0x1c0] sm:$0xff] }
 0x1a3   :  { %1564 = vmatprep.subr.mxu1 %v2350_v60  ;;  %1494 = vmatpush2.msra.mxu0 %v2351_v61  ;;  %v2404_v59 = vld [vmem:[#allocation7 + $0x7c0] sm:$0xff]  ;;  %v2405_v60 = vld [vmem:[#allocation7 + $0x198] sm:$0xff] }
 0x1a4   :  { %1565 = vmatpush2.msra.mxu1 %v2352_v63  ;;  %1495 = vmatprep.subr.mxu0 %v2353_v1  ;;  %v2406_v61 = vld [vmem:[#allocation7 + $0x798] sm:$0xff]  ;;  %v2407_v63 = vld [vmem:[#allocation7 + $0x190] sm:$0xff]  ;;  %v2409_v1 = vld [vmem:[#allocation7 + $0x168] sm:$0xff] }
 0x1a5   :  { %1566 = vmatprep.subr.mxu1 %v2354_v2  ;;  %1496 = vmatpush2.msra.mxu0 %v2355_v4  ;;  %v2410_v2 = vld [vmem:[#allocation7 + $0x768] sm:$0xff]  ;;  %v2411_v4 = vld [vmem:[#allocation7 + $0x160] sm:$0xff] }
 0x1a6   :  { %1567 = vmatpush2.msra.mxu1 %v2356_v5  ;;  %1497 = vmatprep.subr.mxu0 %v2357_v6  ;;  %v2412_v5 = vld [vmem:[#allocation7 + $0x760] sm:$0xff]  ;;  %v2413_v6 = vld [vmem:[#allocation7 + $0x138] sm:$0xff] }
 0x1a7   :  { %1568 = vmatprep.subr.mxu1 %v2358_v7  ;;  %1498 = vmatpush2.msra.mxu0 %v2359_v9  ;;  %v2414_v7 = vld [vmem:[#allocation7 + $0x738] sm:$0xff]  ;;  %v2415_v9 = vld [vmem:[#allocation7 + $0x130] sm:$0xff] }
 0x1a8   :  { %1569 = vmatpush2.msra.mxu1 %v2360_v10  ;;  %1499 = vmatprep.subr.mxu0 %v2361_v58  ;;  %v2416_v10 = vld [vmem:[#allocation7 + $0x730] sm:$0xff]  ;;  %v2417_v58 = vld [vmem:[#allocation7 + $0x108] sm:$0xff] }
 0x1a9   :  { %1570 = vmatprep.subr.mxu1 %v2362_v12  ;;  %1500 = vmatpush2.msra.mxu0 %v2363_v11  ;;  %v2418_v12 = vld [vmem:[#allocation7 + $0x708] sm:$0xff]  ;;  %v2419_v11 = vld [vmem:[#allocation7 + $0x100] sm:$0xff] }
 0x1aa   :  { %1571 = vmatpush2.msra.mxu1 %v2364_v13  ;;  %1501 = vmatprep.subr.mxu0 %v2365_v14  ;;  %v2420_v13 = vld [vmem:[#allocation7 + $0x700] sm:$0xff]  ;;  %v2421_v14 = vld [vmem:[#allocation7 + $0xd8] sm:$0xff] }
 0x1ab   :  { %1572 = vmatprep.subr.mxu1 %v2366_v3  ;;  %1502 = vmatpush2.msra.mxu0 %v2367_v16  ;;  %v2422_v3 = vld [vmem:[#allocation7 + $0x6d8] sm:$0xff]  ;;  %v2423_v16 = vld [vmem:[#allocation7 + $0xd0] sm:$0xff] }
 0x1ac   :  { %1573 = vmatpush2.msra.mxu1 %v2368_v17  ;;  %1503 = vmatprep.subr.mxu0 %v2369_v25  ;;  %v2424_v17 = vld [vmem:[#allocation7 + $0x6d0] sm:$0xff]  ;;  %v2425_v25 = vld [vmem:[#allocation7 + $0xa8] sm:$0xff] }
 0x1ad   :  { %1574 = vmatprep.subr.mxu1 %v2370_v19  ;;  %1504 = vmatpush2.msra.mxu0 %v2371_v20  ;;  %v2426_v19 = vld [vmem:[#allocation7 + $0x6a8] sm:$0xff]  ;;  %v2427_v20 = vld [vmem:[#allocation7 + $0xa0] sm:$0xff] }
 0x1ae   :  { %1575 = vmatpush2.msra.mxu1 %v2372_v21  ;;  %1505 = vmatprep.subr.mxu0 %v2373_v23  ;;  %v2428_v21 = vld [vmem:[#allocation7 + $0x6a0] sm:$0xff]  ;;  %v2429_v23 = vld [vmem:[#allocation7 + $0x78] sm:$0xff] }
 0x1af   :  { %1576 = vmatprep.subr.mxu1 %v2374_v24  ;;  %1506 = vmatpush2.msra.mxu0 %v2375_v26  ;;  %v2430_v24 = vld [vmem:[#allocation7 + $0x678] sm:$0xff]  ;;  %v2431_v26 = vld [vmem:[#allocation7 + $0x70] sm:$0xff] }
 0x1b0   :  { %1507 = vmatprep.mubr.f32.mxu0 %v2955_v52  ;;  %1577 = vmatpush2.msra.mxu1 %v2376_v27  ;;  %v2432_v27 = vld [vmem:[#allocation7 + $0x670] sm:$0xff] }
 0x1b1   :  { %1508 = vmatmul.mubr.f32.vlgmr.msra.gmra.mxu0 %v2949_v62  ;;  %1578 = vmatprep.mubr.f32.mxu1 %v2959_v22 }
 0x1b2   :  { %1585 = vmatprep.subr.mxu0 %v2377_v28  ;;  %1656 = vmatprep.subr.mxu1 %v2378_v29  ;;  %v2433_v28 = vld [vmem:[#allocation7 + $0x48] sm:$0xff] }
 0x1b3   :  { %1579 = vmatmul.mubr.f32.vlgmr.msra.gmra.mxu1 %v2951_v15  ;;  %1586 = vmatpush1.msra.mxu0 %v2379_v31  ;;  %v2434_v29 = vld [vmem:[#allocation7 + $0x648] sm:$0xff]  ;;  %v2435_v31 = vld [vmem:[#allocation7 + $0x40] sm:$0xff] }
 0x1b4   :  { %1657 = vmatpush1.msra.mxu1 %v2380_v32  ;;  %1587 = vmatprep.subr.mxu0 %v2381_v33  ;;  %v2436_v32 = vld [vmem:[#allocation7 + $0x640] sm:$0xff]  ;;  %v2437_v33 = vld [vmem:[#allocation7 + $0x18] sm:$0xff] }
 0x1b5   :  { %1658 = vmatprep.subr.mxu1 %v2382_v34  ;;  %1588 = vmatpush1.msra.mxu0 %v2383_v35  ;;  %v2438_v34 = vld [vmem:[#allocation7 + $0x618] sm:$0xff]  ;;  %v2439_v35 = vld [vmem:[#allocation7 + $0x10] sm:$0xff] }
 0x1b6   :  { %1659 = vmatpush1.msra.mxu1 %v2384_v36  ;;  %1589 = vmatprep.subr.mxu0 %v2385_v37  ;;  %v2440_v36 = vld [vmem:[#allocation7 + $0x610] sm:$0xff]  ;;  %v2441_v37 = vld [vmem:[#allocation7 + $0x5e8] sm:$0xff] }
 0x1b7   :  { %1660 = vmatprep.subr.mxu1 %v2386_v38  ;;  %1590 = vmatpush1.msra.mxu0 %v2387_v39  ;;  %v2442_v38 = vld [vmem:[#allocation7 + $0xbe8] sm:$0xff]  ;;  %v2443_v39 = vld [vmem:[#allocation7 + $0x5e0] sm:$0xff] }
 0x1b8   :  { %1661 = vmatpush1.msra.mxu1 %v2388_v40  ;;  %1591 = vmatprep.subr.mxu0 %v2389_v42  ;;  %v2444_v40 = vld [vmem:[#allocation7 + $0xbe0] sm:$0xff]  ;;  %v2445_v42 = vld [vmem:[#allocation7 + $0x5b8] sm:$0xff] }
 0x1b9   :  { %1662 = vmatprep.subr.mxu1 %v2390_v43  ;;  %1592 = vmatpush1.msra.mxu0 %v2391_v44  ;;  %v2446_v43 = vld [vmem:[#allocation7 + $0xbb8] sm:$0xff]  ;;  %v2447_v44 = vld [vmem:[#allocation7 + $0x5b0] sm:$0xff] }
 0x1ba   :  { %1663 = vmatpush1.msra.mxu1 %v2392_v45  ;;  %1593 = vmatprep.subr.mxu0 %v2393_v46  ;;  %v2448_v45 = vld [vmem:[#allocation7 + $0xbb0] sm:$0xff]  ;;  %v2449_v46 = vld [vmem:[#allocation7 + $0x588] sm:$0xff] }
 0x1bb   :  { %1664 = vmatprep.subr.mxu1 %v2394_v47  ;;  %1594 = vmatpush1.msra.mxu0 %v2395_v48  ;;  %v2450_v47 = vld [vmem:[#allocation7 + $0xb88] sm:$0xff]  ;;  %v2451_v48 = vld [vmem:[#allocation7 + $0x580] sm:$0xff] }
 0x1bc   :  { %1665 = vmatpush1.msra.mxu1 %v2396_v49  ;;  %1595 = vmatprep.subr.mxu0 %v2397_v50  ;;  %v2452_v49 = vld [vmem:[#allocation7 + $0xb80] sm:$0xff]  ;;  %v2453_v50 = vld [vmem:[#allocation7 + $0x558] sm:$0xff] }
 0x1bd   :  { %1666 = vmatprep.subr.mxu1 %v2398_v51  ;;  %1596 = vmatpush1.msra.mxu0 %v2399_v53  ;;  %v2454_v51 = vld [vmem:[#allocation7 + $0xb58] sm:$0xff]  ;;  %v2455_v53 = vld [vmem:[#allocation7 + $0x550] sm:$0xff] }
 0x1be   :  { %1667 = vmatpush1.msra.mxu1 %v2400_v54  ;;  %1597 = vmatprep.subr.mxu0 %v2401_v55  ;;  %v2456_v54 = vld [vmem:[#allocation7 + $0xb50] sm:$0xff]  ;;  %v2457_v55 = vld [vmem:[#allocation7 + $0x528] sm:$0xff] }
 0x1bf   :  { %1668 = vmatprep.subr.mxu1 %v2402_v56  ;;  %1598 = vmatpush1.msra.mxu0 %v2403_v57  ;;  %v2458_v56 = vld [vmem:[#allocation7 + $0xb28] sm:$0xff]  ;;  %v2459_v57 = vld [vmem:[#allocation7 + $0x520] sm:$0xff] }
 0x1c0   :  { %1669 = vmatpush1.msra.mxu1 %v2404_v59  ;;  %1599 = vmatprep.subr.mxu0 %v2405_v60  ;;  %v2460_v59 = vld [vmem:[#allocation7 + $0xb20] sm:$0xff]  ;;  %v2461_v60 = vld [vmem:[#allocation7 + $0x4f8] sm:$0xff] }
 0x1c1   :  { %1670 = vmatprep.subr.mxu1 %v2406_v61  ;;  %1600 = vmatpush1.msra.mxu0 %v2407_v63  ;;  %v2462_v61 = vld [vmem:[#allocation7 + $0xaf8] sm:$0xff]  ;;  %v2463_v63 = vld [vmem:[#allocation7 + $0x4f0] sm:$0xff] }
 0x1c2   :  { %1671 = vmatpush1.msra.mxu1 %v2408_v0  ;;  %1601 = vmatprep.subr.mxu0 %v2409_v1  ;;  %v2464_v0 = vld [vmem:[#allocation7 + $0xaf0] sm:$0xff]  ;;  %v2465_v1 = vld [vmem:[#allocation7 + $0x4c8] sm:$0xff] }
 0x1c3   :  { %1672 = vmatprep.subr.mxu1 %v2410_v2  ;;  %1602 = vmatpush1.msra.mxu0 %v2411_v4  ;;  %v2466_v2 = vld [vmem:[#allocation7 + $0xac8] sm:$0xff]  ;;  %v2467_v4 = vld [vmem:[#allocation7 + $0x4c0] sm:$0xff] }
 0x1c4   :  { %1673 = vmatpush1.msra.mxu1 %v2412_v5  ;;  %1603 = vmatprep.subr.mxu0 %v2413_v6  ;;  %v2468_v5 = vld [vmem:[#allocation7 + $0xac0] sm:$0xff]  ;;  %v2469_v6 = vld [vmem:[#allocation7 + $0x498] sm:$0xff] }
 0x1c5   :  { %1674 = vmatprep.subr.mxu1 %v2414_v7  ;;  %1604 = vmatpush1.msra.mxu0 %v2415_v9  ;;  %v2470_v7 = vld [vmem:[#allocation7 + $0xa98] sm:$0xff]  ;;  %v2471_v9 = vld [vmem:[#allocation7 + $0x490] sm:$0xff] }
 0x1c6   :  { %1675 = vmatpush1.msra.mxu1 %v2416_v10  ;;  %1605 = vmatprep.subr.mxu0 %v2417_v58  ;;  %v2472_v10 = vld [vmem:[#allocation7 + $0xa90] sm:$0xff]  ;;  %v2473_v58 = vld [vmem:[#allocation7 + $0x468] sm:$0xff] }
 0x1c7   :  { %1676 = vmatprep.subr.mxu1 %v2418_v12  ;;  %1606 = vmatpush1.msra.mxu0 %v2419_v11  ;;  %v2474_v12 = vld [vmem:[#allocation7 + $0xa68] sm:$0xff]  ;;  %v2475_v11 = vld [vmem:[#allocation7 + $0x460] sm:$0xff] }
 0x1c8   :  { %1677 = vmatpush1.msra.mxu1 %v2420_v13  ;;  %1607 = vmatprep.subr.mxu0 %v2421_v14  ;;  %v2476_v13 = vld [vmem:[#allocation7 + $0xa60] sm:$0xff]  ;;  %v2477_v14 = vld [vmem:[#allocation7 + $0x438] sm:$0xff] }
 0x1c9   :  { %1678 = vmatprep.subr.mxu1 %v2422_v3  ;;  %1608 = vmatpush1.msra.mxu0 %v2423_v16  ;;  %v2478_v3 = vld [vmem:[#allocation7 + $0xa38] sm:$0xff]  ;;  %v2479_v16 = vld [vmem:[#allocation7 + $0x430] sm:$0xff] }
 0x1ca   :  { %1679 = vmatpush1.msra.mxu1 %v2424_v17  ;;  %1609 = vmatprep.subr.mxu0 %v2425_v25  ;;  %v2480_v17 = vld [vmem:[#allocation7 + $0xa30] sm:$0xff]  ;;  %v2481_v25 = vld [vmem:[#allocation7 + $0x408] sm:$0xff] }
 0x1cb   :  { %1680 = vmatprep.subr.mxu1 %v2426_v19  ;;  %1610 = vmatpush1.msra.mxu0 %v2427_v20  ;;  %v2482_v19 = vld [vmem:[#allocation7 + $0xa08] sm:$0xff]  ;;  %v2483_v20 = vld [vmem:[#allocation7 + $0x400] sm:$0xff] }
 0x1cc   :  { %1681 = vmatpush1.msra.mxu1 %v2428_v21  ;;  %1611 = vmatprep.subr.mxu0 %v2429_v23  ;;  %v2484_v21 = vld [vmem:[#allocation7 + $0xa00] sm:$0xff]  ;;  %v2485_v23 = vld [vmem:[#allocation7 + $0x3d8] sm:$0xff] }
 0x1cd   :  { %1682 = vmatprep.subr.mxu1 %v2430_v24  ;;  %1612 = vmatpush1.msra.mxu0 %v2431_v26  ;;  %v2486_v24 = vld [vmem:[#allocation7 + $0x9d8] sm:$0xff]  ;;  %v2487_v26 = vld [vmem:[#allocation7 + $0x3d0] sm:$0xff] }
 0x1ce   :  { %1683 = vmatpush1.msra.mxu1 %v2432_v27  ;;  %1613 = vmatprep.subr.mxu0 %v2433_v28  ;;  %v2488_v27 = vld [vmem:[#allocation7 + $0x9d0] sm:$0xff]  ;;  %v2489_v28 = vld [vmem:[#allocation7 + $0x3a8] sm:$0xff] }
 0x1cf   :  { %1684 = vmatprep.subr.mxu1 %v2434_v29  ;;  %1614 = vmatpush1.msra.mxu0 %v2435_v31  ;;  %v2490_v29 = vld [vmem:[#allocation7 + $0x9a8] sm:$0xff]  ;;  %v2491_v31 = vld [vmem:[#allocation7 + $0x3a0] sm:$0xff] }
 0x1d0   :  { %1685 = vmatpush1.msra.mxu1 %v2436_v32  ;;  %1615 = vmatprep.subr.mxu0 %v2437_v33  ;;  %v2492_v32 = vld [vmem:[#allocation7 + $0x9a0] sm:$0xff]  ;;  %v2493_v33 = vld [vmem:[#allocation7 + $0x378] sm:$0xff] }
 0x1d1   :  { %1686 = vmatprep.subr.mxu1 %v2438_v34  ;;  %1616 = vmatpush1.msra.mxu0 %v2439_v35  ;;  %v2494_v34 = vld [vmem:[#allocation7 + $0x978] sm:$0xff]  ;;  %v2495_v35 = vld [vmem:[#allocation7 + $0x370] sm:$0xff] }
 0x1d2   :  { %1687 = vmatpush1.msra.mxu1 %v2440_v36  ;;  %1617 = vmatprep.subr.mxu0 %v2441_v37  ;;  %v2496_v36 = vld [vmem:[#allocation7 + $0x970] sm:$0xff]  ;;  %v2497_v37 = vld [vmem:[#allocation7 + $0x348] sm:$0xff] }
 0x1d3   :  { %1688 = vmatprep.subr.mxu1 %v2442_v38  ;;  %1618 = vmatpush2.msra.mxu0 %v2443_v39  ;;  %v2498_v38 = vld [vmem:[#allocation7 + $0x948] sm:$0xff]  ;;  %v2499_v39 = vld [vmem:[#allocation7 + $0x340] sm:$0xff] }
 0x1d4   :  { %1689 = vmatpush2.msra.mxu1 %v2444_v40  ;;  %1619 = vmatprep.subr.mxu0 %v2445_v42  ;;  %v2500_v40 = vld [vmem:[#allocation7 + $0x940] sm:$0xff]  ;;  %v2501_v42 = vld [vmem:[#allocation7 + $0x318] sm:$0xff] }
 0x1d5   :  { %1690 = vmatprep.subr.mxu1 %v2446_v43  ;;  %1620 = vmatpush2.msra.mxu0 %v2447_v44  ;;  %v2502_v43 = vld [vmem:[#allocation7 + $0x918] sm:$0xff]  ;;  %v2503_v44 = vld [vmem:[#allocation7 + $0x310] sm:$0xff] }
 0x1d6   :  { %1691 = vmatpush2.msra.mxu1 %v2448_v45  ;;  %1621 = vmatprep.subr.mxu0 %v2449_v46  ;;  %v2504_v45 = vld [vmem:[#allocation7 + $0x910] sm:$0xff]  ;;  %v2505_v46 = vld [vmem:[#allocation7 + $0xee8] sm:$0xff] }
 0x1d7   :  { %1692 = vmatprep.subr.mxu1 %v2450_v47  ;;  %1622 = vmatpush2.msra.mxu0 %v2451_v48  ;;  %v2506_v47 = vld [vmem:[#allocation7 + $0x2f8] sm:$0xff]  ;;  %v2507_v48 = vld [vmem:[#allocation7 + $0xee0] sm:$0xff] }
 0x1d8   :  { %1693 = vmatpush2.msra.mxu1 %v2452_v49  ;;  %1623 = vmatprep.subr.mxu0 %v2453_v50  ;;  %v2508_v49 = vld [vmem:[#allocation7 + $0x2f0] sm:$0xff]  ;;  %v2509_v50 = vld [vmem:[#allocation7 + $0xeb8] sm:$0xff] }
 0x1d9   :  { %1694 = vmatprep.subr.mxu1 %v2454_v51  ;;  %1624 = vmatpush2.msra.mxu0 %v2455_v53  ;;  %v2510_v51 = vld [vmem:[#allocation7 + $0x2c8] sm:$0xff]  ;;  %v2511_v53 = vld [vmem:[#allocation7 + $0xeb0] sm:$0xff] }
 0x1da   :  { %1695 = vmatpush2.msra.mxu1 %v2456_v54  ;;  %1625 = vmatprep.subr.mxu0 %v2457_v55  ;;  %v2512_v54 = vld [vmem:[#allocation7 + $0x2c0] sm:$0xff]  ;;  %v2513_v55 = vld [vmem:[#allocation7 + $0xe88] sm:$0xff] }
 0x1db   :  { %1696 = vmatprep.subr.mxu1 %v2458_v56  ;;  %1626 = vmatpush2.msra.mxu0 %v2459_v57  ;;  %v2514_v56 = vld [vmem:[#allocation7 + $0x298] sm:$0xff]  ;;  %v2515_v57 = vld [vmem:[#allocation7 + $0xe80] sm:$0xff] }
 0x1dc   :  { %1697 = vmatpush2.msra.mxu1 %v2460_v59  ;;  %1627 = vmatprep.subr.mxu0 %v2461_v60  ;;  %v2516_v59 = vld [vmem:[#allocation7 + $0x290] sm:$0xff]  ;;  %v2517_v60 = vld [vmem:[#allocation7 + $0xe58] sm:$0xff] }
 0x1dd   :  { %1698 = vmatprep.subr.mxu1 %v2462_v61  ;;  %1628 = vmatpush2.msra.mxu0 %v2463_v63  ;;  %v2518_v61 = vld [vmem:[#allocation7 + $0x268] sm:$0xff]  ;;  %v2519_v63 = vld [vmem:[#allocation7 + $0xe50] sm:$0xff] }
 0x1de   :  { %1699 = vmatpush2.msra.mxu1 %v2464_v0  ;;  %1629 = vmatprep.subr.mxu0 %v2465_v1  ;;  %v2520_v0 = vld [vmem:[#allocation7 + $0x260] sm:$0xff]  ;;  %v2521_v1 = vld [vmem:[#allocation7 + $0xe28] sm:$0xff] }
 0x1df   :  { %1700 = vmatprep.subr.mxu1 %v2466_v2  ;;  %1630 = vmatpush2.msra.mxu0 %v2467_v4  ;;  %v2522_v2 = vld [vmem:[#allocation7 + $0x238] sm:$0xff]  ;;  %v2523_v4 = vld [vmem:[#allocation7 + $0xe20] sm:$0xff] }
 0x1e0   :  { %1701 = vmatpush2.msra.mxu1 %v2468_v5  ;;  %1631 = vmatprep.subr.mxu0 %v2469_v6  ;;  %v2524_v5 = vld [vmem:[#allocation7 + $0x230] sm:$0xff]  ;;  %v2525_v6 = vld [vmem:[#allocation7 + $0xdf8] sm:$0xff] }
 0x1e1   :  { %1702 = vmatprep.subr.mxu1 %v2470_v7  ;;  %1632 = vmatpush2.msra.mxu0 %v2471_v9  ;;  %v2526_v7 = vld [vmem:[#allocation7 + $0x208] sm:$0xff]  ;;  %v2527_v9 = vld [vmem:[#allocation7 + $0xdf0] sm:$0xff] }
 0x1e2   :  { %1703 = vmatpush2.msra.mxu1 %v2472_v10  ;;  %1633 = vmatprep.subr.mxu0 %v2473_v58  ;;  %v2528_v10 = vld [vmem:[#allocation7 + $0x200] sm:$0xff]  ;;  %v2529_v58 = vld [vmem:[#allocation7 + $0xdc8] sm:$0xff] }
 0x1e3   :  { %1704 = vmatprep.subr.mxu1 %v2474_v12  ;;  %1634 = vmatpush2.msra.mxu0 %v2475_v11  ;;  %v2530_v12 = vld [vmem:[#allocation7 + $0x1d8] sm:$0xff]  ;;  %v2531_v11 = vld [vmem:[#allocation7 + $0xdc0] sm:$0xff] }
 0x1e4   :  { %1705 = vmatpush2.msra.mxu1 %v2476_v13  ;;  %1635 = vmatprep.subr.mxu0 %v2477_v14  ;;  %v2532_v13 = vld [vmem:[#allocation7 + $0x1d0] sm:$0xff]  ;;  %v2533_v14 = vld [vmem:[#allocation7 + $0xd98] sm:$0xff] }
 0x1e5   :  { %1706 = vmatprep.subr.mxu1 %v2478_v3  ;;  %1636 = vmatpush2.msra.mxu0 %v2479_v16  ;;  %v2534_v3 = vld [vmem:[#allocation7 + $0x1a8] sm:$0xff]  ;;  %v2535_v16 = vld [vmem:[#allocation7 + $0xd90] sm:$0xff] }
 0x1e6   :  { %1707 = vmatpush2.msra.mxu1 %v2480_v17  ;;  %1637 = vmatprep.subr.mxu0 %v2481_v25  ;;  %v2536_v17 = vld [vmem:[#allocation7 + $0x1a0] sm:$0xff]  ;;  %v2537_v25 = vld [vmem:[#allocation7 + $0xd68] sm:$0xff] }
 0x1e7   :  { %1708 = vmatprep.subr.mxu1 %v2482_v19  ;;  %1638 = vmatpush2.msra.mxu0 %v2483_v20  ;;  %v2538_v19 = vld [vmem:[#allocation7 + $0x178] sm:$0xff]  ;;  %v2539_v20 = vld [vmem:[#allocation7 + $0xd60] sm:$0xff] }
 0x1e8   :  { %1709 = vmatpush2.msra.mxu1 %v2484_v21  ;;  %1639 = vmatprep.subr.mxu0 %v2485_v23  ;;  %v2540_v21 = vld [vmem:[#allocation7 + $0x170] sm:$0xff]  ;;  %v2541_v23 = vld [vmem:[#allocation7 + $0xd38] sm:$0xff] }
 0x1e9   :  { %1710 = vmatprep.subr.mxu1 %v2486_v24  ;;  %1640 = vmatpush2.msra.mxu0 %v2487_v26  ;;  %v2542_v24 = vld [vmem:[#allocation7 + $0x148] sm:$0xff]  ;;  %v2543_v26 = vld [vmem:[#allocation7 + $0xd30] sm:$0xff] }
 0x1ea   :  { %1711 = vmatpush2.msra.mxu1 %v2488_v27  ;;  %1641 = vmatprep.subr.mxu0 %v2489_v28  ;;  %v2544_v27 = vld [vmem:[#allocation7 + $0x140] sm:$0xff]  ;;  %v2545_v28 = vld [vmem:[#allocation7 + $0xd08] sm:$0xff] }
 0x1eb   :  { %1712 = vmatprep.subr.mxu1 %v2490_v29  ;;  %1642 = vmatpush2.msra.mxu0 %v2491_v31  ;;  %v2546_v29 = vld [vmem:[#allocation7 + $0x118] sm:$0xff]  ;;  %v2547_v31 = vld [vmem:[#allocation7 + $0xd00] sm:$0xff] }
 0x1ec   :  { %1713 = vmatpush2.msra.mxu1 %v2492_v32  ;;  %1643 = vmatprep.subr.mxu0 %v2493_v33  ;;  %v2548_v32 = vld [vmem:[#allocation7 + $0x110] sm:$0xff]  ;;  %v2549_v33 = vld [vmem:[#allocation7 + $0xcd8] sm:$0xff] }
 0x1ed   :  { %1714 = vmatprep.subr.mxu1 %v2494_v34  ;;  %1644 = vmatpush2.msra.mxu0 %v2495_v35  ;;  %v2550_v34 = vld [vmem:[#allocation7 + $0xe8] sm:$0xff]  ;;  %v2551_v35 = vld [vmem:[#allocation7 + $0xcd0] sm:$0xff] }
 0x1ee   :  { %1715 = vmatpush2.msra.mxu1 %v2496_v36  ;;  %1645 = vmatprep.subr.mxu0 %v2497_v37  ;;  %v2552_v36 = vld [vmem:[#allocation7 + $0xe0] sm:$0xff]  ;;  %v2553_v37 = vld [vmem:[#allocation7 + $0xca8] sm:$0xff] }
 0x1ef   :  { %1716 = vmatprep.subr.mxu1 %v2498_v38  ;;  %1646 = vmatpush2.msra.mxu0 %v2499_v39  ;;  %v2554_v38 = vld [vmem:[#allocation7 + $0xb8] sm:$0xff]  ;;  %v2555_v39 = vld [vmem:[#allocation7 + $0xca0] sm:$0xff] }
 0x1f0   :  { %1717 = vmatpush2.msra.mxu1 %v2500_v40  ;;  %1647 = vmatprep.subr.mxu0 %v2501_v42  ;;  %v2556_v40 = vld [vmem:[#allocation7 + $0xb0] sm:$0xff]  ;;  %v2557_v42 = vld [vmem:[#allocation7 + $0xc78] sm:$0xff] }
 0x1f1   :  { %1718 = vmatprep.subr.mxu1 %v2502_v43  ;;  %1648 = vmatpush2.msra.mxu0 %v2503_v44  ;;  %v2558_v43 = vld [vmem:[#allocation7 + $0x88] sm:$0xff]  ;;  %v2559_v44 = vld [vmem:[#allocation7 + $0xc70] sm:$0xff] }
 0x1f2   :  { %1649 = vmatprep.mubr.f32.mxu0 %v2941_v8  ;;  %1719 = vmatpush2.msra.mxu1 %v2504_v45  ;;  %v2560_v45 = vld [vmem:[#allocation7 + $0x80] sm:$0xff] }
 0x1f3   :  { %1650 = vmatmul.mubr.f32.vlgmr.msra.gmra.mxu0 %v2937_v18  ;;  %1720 = vmatprep.mubr.f32.mxu1 %v2955_v52 }
 0x1f4   :  { %1727 = vmatprep.subr.mxu0 %v2505_v46  ;;  %1798 = vmatprep.subr.mxu1 %v2506_v47  ;;  %v2969_v46 = vpop.f32.mrf.mxu0  ;;  %v2561_v47 = vld [vmem:[#allocation7 + $0xc48] sm:$0xff] }
 0x1f5   :  { %1721 = vmatmul.mubr.f32.vlgmr.msra.gmra.mxu1 %v2949_v62  ;;  %1728 = vmatpush1.msra.mxu0 %v2507_v48  ;;  %v2562_v48 = vld [vmem:[#allocation7 + $0x58] sm:$0xff] }
 0x1f6   :  { %1799 = vmatpush1.msra.mxu1 %v2508_v49  ;;  %1729 = vmatprep.subr.mxu0 %v2509_v50  ;;  %v2563_v49 = vld [vmem:[#allocation7 + $0xc40] sm:$0xff]  ;;  %v2564_v50 = vld [vmem:[#allocation7 + $0x50] sm:$0xff] }
 0x1f7   :  { %1800 = vmatprep.subr.mxu1 %v2510_v51  ;;  %1730 = vmatpush1.msra.mxu0 %v2511_v53  ;;  %v2565_v51 = vld [vmem:[#allocation7 + $0xc18] sm:$0xff]  ;;  %v2566_v53 = vld [vmem:[#allocation7 + $0x28] sm:$0xff] }
 0x1f8   :  { %1801 = vmatpush1.msra.mxu1 %v2512_v54  ;;  %1731 = vmatprep.subr.mxu0 %v2513_v55  ;;  %v2567_v54 = vld [vmem:[#allocation7 + $0xc10] sm:$0xff]  ;;  %v2568_v55 = vld [vmem:[#allocation7 + $0x20] sm:$0xff] }
 0x1f9   :  { %1802 = vmatprep.subr.mxu1 %v2514_v56  ;;  %1732 = vmatpush1.msra.mxu0 %v2515_v57  ;;  %v2971_v56 = vpop.f32.mrf.mxu1  ;;  %v2973_v57 = vpop.f32.mrf.mxu0 }
 0x1fa   :  { %1803 = vmatpush1.msra.mxu1 %v2516_v59  ;;  %1733 = vmatprep.subr.mxu0 %v2517_v60  ;;  %v2569_v59 = vld [vmem:[#allocation7 + $0x11e8] sm:$0xff]  ;;  %v2570_v60 = vld [vmem:[#allocation7 + $0x5f8] sm:$0xff] }
 0x1fb   :  { %1804 = vmatprep.subr.mxu1 %v2518_v61  ;;  %1734 = vmatpush1.msra.mxu0 %v2519_v63  ;;  %v2571_v61 = vld [vmem:[#allocation7 + $0x11e0] sm:$0xff]  ;;  %v2572_v63 = vld [vmem:[#allocation7 + $0x5f0] sm:$0xff] }
 0x1fc   :  { %1805 = vmatpush1.msra.mxu1 %v2520_v0  ;;  %1735 = vmatprep.subr.mxu0 %v2521_v1  ;;  %v2975_v0 = vpop.f32.mrf.mxu0  ;;  %v2573_v1 = vld [vmem:[#allocation7 + $0x11b8] sm:$0xff] }
 0x1fd   :  { %1806 = vmatprep.subr.mxu1 %v2522_v2  ;;  %1736 = vmatpush1.msra.mxu0 %v2523_v4  ;;  %v2574_v2 = vld [vmem:[#allocation7 + $0x5c8] sm:$0xff]  ;;  %v2575_v4 = vld [vmem:[#allocation7 + $0x11b0] sm:$0xff] }
 0x1fe   :  { %1807 = vmatpush1.msra.mxu1 %v2524_v5  ;;  %1737 = vmatprep.subr.mxu0 %v2525_v6  ;;  %v2576_v5 = vld [vmem:[#allocation7 + $0x5c0] sm:$0xff]  ;;  %v2977_v6 = vpop.f32.mrf.mxu1 }
 0x1ff   :  { %1808 = vmatprep.subr.mxu1 %v2526_v7  ;;  %1738 = vmatpush1.msra.mxu0 %v2527_v9  ;;  %v2577_v7 = vld [vmem:[#allocation7 + $0x1188] sm:$0xff]  ;;  %v2578_v9 = vld [vmem:[#allocation7 + $0x598] sm:$0xff] }
 0x200   :  { %1809 = vmatpush1.msra.mxu1 %v2528_v10  ;;  %1739 = vmatprep.subr.mxu0 %v2529_v58  ;;  %v649_v10 = vsub.s32 3, %v2892_v41  ;;  %v2579_v58 = vld [vmem:[#allocation7 + $0x1180] sm:$0xff] }
 0x201   :  { %1810 = vmatprep.subr.mxu1 %v2530_v12  ;;  %1740 = vmatpush1.msra.mxu0 %v2531_v11  ;;  %v2580_v12 = vld [vmem:[#allocation7 + $0x590] sm:$0xff]  ;;  %v641_v11 = vsub.s32 1, %v2892_v41 }
 0x202   :  { %1811 = vmatpush1.msra.mxu1 %v2532_v13  ;;  %1741 = vmatprep.subr.mxu0 %v2533_v14  ;;  %v977_v13 = vpop.f32.mrf.mxu1  ;;  %v2981_v14 = vpop.f32.mrf.mxu0 }
 0x203   :  { %1812 = vmatprep.subr.mxu1 %v2534_v3  ;;  %1742 = vmatpush1.msra.mxu0 %v2535_v16  ;;  %v2581_v3 = vld [vmem:[#allocation7 + $0x1158] sm:$0xff]  ;;  %v2582_v16 = vld [vmem:[#allocation7 + $0x568] sm:$0xff] }
 0x204   :  { %1813 = vmatpush1.msra.mxu1 %v2536_v17  ;;  %1743 = vmatprep.subr.mxu0 %v2537_v25  ;;  %v2986_v17 = vld [vmem:[%s3072_s3] sm:$0x3f]  ;;  %v645_v25 = vsub.s32 2, %v2892_v41  ;;  %s2854_s3 = smov [#allocation8]  }
 0x205   :  { %1814 = vmatprep.subr.mxu1 %v2538_v19  ;;  %1744 = vmatpush1.msra.mxu0 %v2539_v20  ;;  %v2583_v19 = vld [vmem:[#allocation7 + $0x1150] sm:$0xff]  ;;  %v2584_v20 = vld [vmem:[#allocation7 + $0x560] sm:$0xff]  ;;  %s2157_s5 = sshll.u32 %s2854_s3, 4  ;;  %s2158_s5 = int_to_ptr.vmem [resolvable:$true] %s2157_s5 }
 0x206   :  { %1815 = vmatpush1.msra.mxu1 %v2540_v21  ;;  %1745 = vmatprep.subr.mxu0 %v2541_v23  ;;  %v637_v21 = vsub.s32 0, %v2892_v41  ;;  %v1048_v23 = vpop.f32.mrf.mxu0  ;;  %s2821_s6 = scalar_lea.vmem %s2158_s5, 384  ;;  %p2826_p2 = scmp.lt.s32.totalorder %s2158_s5, %s2158_s5 }
 0x207   :  { %1816 = vmatprep.subr.mxu1 %v2542_v24  ;;  %1746 = vmatpush1.msra.mxu0 %v2543_v26  ;;  %v2585_v24 = vld [vmem:[#allocation7 + $0x1128] sm:$0xff]  ;;  %v2586_v26 = vld [vmem:[#allocation7 + $0x538] sm:$0xff]  ;;  %p2822_p1 = scmp.ne.s32.totalorder %s2158_s5, %s2821_s6  ;;  %p2827_p3 = scmp.lt.s32.totalorder %s2821_s6, %s2821_s6 }
 0x208   :  { %1817 = vmatpush1.msra.mxu1 %v2544_v27  ;;  %1747 = vmatprep.subr.mxu0 %v2545_v28  ;;  %v2991_v27 = vrot.slane %v2986_v17, %v649_v10  ;;  %v2587_v28 = vld [vmem:[#allocation7 + $0x1120] sm:$0xff]  ;;  %v2604_v10 = vld [vmem:[#allocation7 + $0x470] sm:$0xff] }
 0x209   :  { %1818 = vmatprep.subr.mxu1 %v2546_v29  ;;  %1748 = vmatpush1.msra.mxu0 %v2547_v31  ;;  %v2588_v29 = vld [vmem:[#allocation7 + $0x530] sm:$0xff]  ;;  %v2994_v31 = vrot.slane %v2986_v17, %v641_v11  ;;  %v2606_v11 = vld [vmem:[#allocation7 + $0x448] sm:$0xff]  ;;  %p2828_p4 = por %p2827_p3, %p2826_p2 }
 0x20a   :  { %1819 = vmatpush1.msra.mxu1 %v2548_v32  ;;  %1749 = vmatprep.subr.mxu0 %v2549_v33  ;;  %v979_v32 = vpop.f32.mrf.mxu1  ;;  %v2589_v33 = vld [vmem:[#allocation7 + $0x10f8] sm:$0xff] }
 0x20b   :  { %1820 = vmatprep.subr.mxu1 %v2550_v34  ;;  %1750 = vmatpush1.msra.mxu0 %v2551_v35  ;;  %v2590_v34 = vld [vmem:[#allocation7 + $0x508] sm:$0xff]  ;;  %v2997_v35 = vrot.slane %v2986_v17, %v645_v25  ;;  %v2608_v25 = vld [vmem:[#allocation7 + $0x440] sm:$0xff]  ;;  %p2829_p5 = pnand %p2828_p4, %p2822_p1 }
 0x20c   :  { %1821 = vmatpush1.msra.mxu1 %v2552_v36  ;;  %1751 = vmatprep.subr.mxu0 %v2553_v37  ;;  %v2591_v36 = vld [vmem:[#allocation7 + $0x10f0] sm:$0xff]  ;;  %v2592_v37 = vld [vmem:[#allocation7 + $0x500] sm:$0xff] }
 0x20d   :  { %1822 = vmatprep.subr.mxu1 %v2554_v38  ;;  %1752 = vmatpush1.msra.mxu0 %v2555_v39  ;;  %v3000_v38 = vrot.slane %v2986_v17, %v637_v21  ;;  %v1119_v39 = vpop.f32.mrf.mxu1 }
 0x20e   :  { %1823 = vmatpush1.msra.mxu1 %v2556_v40  ;;  %1753 = vmatprep.subr.mxu0 %v2557_v42  ;;  %v1050_v40 = vpop.f32.mrf.mxu0  ;;  %v2593_v42 = vld [vmem:[#allocation7 + $0x10c8] sm:$0xff] }
 0x20f   :  { %1824 = vmatprep.subr.mxu1 %v2558_v43  ;;  %1754 = vmatpush1.msra.mxu0 %v2559_v44  ;;  %v2594_v43 = vld [vmem:[#allocation7 + $0x4d8] sm:$0xff]  ;;  %v980_v44 = vadd.f32 %v979_v32, %v2991_v27 }
 0x210   :  { %1825 = vmatpush1.msra.mxu1 %v2560_v45  ;;  %1755 = vmatprep.subr.mxu0 %v2561_v47  ;;  %v2595_v45 = vld [vmem:[#allocation7 + $0x10c0] sm:$0xff]  ;;  %v2596_v47 = vld [vmem:[#allocation7 + $0x4d0] sm:$0xff] }
 0x211   :  { %1826 = vmatprep.subr.mxu1 %v2562_v48  ;;  %1756 = vmatpush1.msra.mxu0 %v2563_v49  ;;  %v767_v48 = vadd.f32 %v2973_v57, %v2994_v31  ;;  %v2597_v49 = vld [vmem:[#allocation7 + $0x1098] sm:$0xff]  ;;  %v1190_v57 = vpop.f32.mrf.mxu0 }
 0x212   :  { %1827 = vmatpush1.msra.mxu1 %v2564_v50  ;;  %1757 = vmatprep.subr.mxu0 %v2565_v51  ;;  %v2598_v50 = vld [vmem:[#allocation7 + $0x4a8] sm:$0xff]  ;;  %v978_v51 = vadd.f32 %v977_v13, %v2997_v35 }
 0x213   :  { %1828 = vmatprep.subr.mxu1 %v2566_v53  ;;  %1758 = vmatpush1.msra.mxu0 %v2567_v54  ;;  %v1051_v53 = vadd.f32 %v1050_v40, %v980_v44  ;;  %v653_v54 = vsub.s32 4, %v2892_v41  ;;  %v1192_v21 = vpop.f32.mrf.mxu0  ;;  %v2615_v40 = vld [vmem:[#allocation7 + $0xfd0] sm:$0xff] }
 0x214   :  { %1829 = vmatpush1.msra.mxu1 %v2568_v55  ;;  %1759 = vmatprep.subr.mxu0 %v2569_v59  ;;  %v657_v55 = vsub.s32 5, %v2892_v41  ;;  %v2599_v59 = vld [vmem:[#allocation7 + $0x1090] sm:$0xff] }
 0x215   :  { %1830 = vmatprep.subr.mxu1 %v2570_v60  ;;  %1760 = vmatpush2.msra.mxu0 %v2571_v61  ;;  %v2600_v60 = vld [vmem:[#allocation7 + $0x4a0] sm:$0xff]  ;;  %v765_v61 = vadd.f32 %v2969_v46, %v3000_v38  ;;  %v3012_v13 = vrot.slane %v2986_v17, %v653_v54 }
 0x216   :  { %1831 = vmatpush2.msra.mxu1 %v2572_v63  ;;  %1761 = vmatprep.subr.mxu0 %v2573_v1  ;;  %v1121_v63 = vpop.f32.mrf.mxu1  ;;  %v2601_v1 = vld [vmem:[#allocation7 + $0x1068] sm:$0xff] }
 0x217   :  { %1832 = vmatprep.subr.mxu1 %v2574_v2  ;;  %1762 = vmatpush2.msra.mxu0 %v2575_v4  ;;  %v2602_v2 = vld [vmem:[#allocation7 + $0x478] sm:$0xff]  ;;  %v2853_v4 = vmov 1966171168   ;;  %v1122_v46 = vadd.f32 %v1121_v63, %v1051_v53 }
 0x218   :  { %1833 = vmatpush2.msra.mxu1 %v2576_v5  ;;  %1763 = vmatprep.subr.mxu0 %v2577_v7  ;;  %v2021_v5 = vunpack.c.l.s4 %v2853_v4  ;;  %v1049_v7 = vadd.f32 %v1048_v23, %v978_v51  ;;  %v2610_v23 = vld [vmem:[#allocation7 + $0x418] sm:$0xff] }
 0x219   :  { %1834 = vmatprep.subr.mxu1 %v2578_v9  ;;  %1764 = vmatpush2.msra.mxu0 %v2579_v58  ;;  %v2603_v9 = vld [vmem:[#allocation7 + $0x1060] sm:$0xff]  ;;  %v838_v58 = vadd.f32 %v2977_v6, %v767_v48  ;;  %v2609_v6 = vld [vmem:[#allocation7 + $0x1008] sm:$0xff]  ;;  %v2621_v48 = vld [vmem:[#allocation7 + $0xf78] sm:$0xff] }
 0x21a   :  { %1835 = vmatpush2.msra.mxu1 %v2580_v12  ;;  %1765 = vmatprep.subr.mxu0 %v2581_v3  ;;  %v2605_v12 = vld [vmem:[#allocation7 + $0x1038] sm:$0xff]  ;;  %v3015_v3 = vrot.slane %v2986_v17, %v657_v55  ;;  %v2612_v17 = vld [vmem:[#allocation7 + $0x410] sm:$0xff] }
 0x21b   :  { %1836 = vmatprep.subr.mxu1 %v2582_v16  ;;  %1766 = vmatpush2.msra.mxu0 %v2583_v19  ;;  %v2607_v16 = vld [vmem:[#allocation7 + $0x1030] sm:$0xff]  ;;  %v836_v19 = vadd.f32 %v2971_v56, %v765_v61 }
 0x21c   :  { %1837 = vmatpush2.msra.mxu1 %v2584_v20  ;;  %1767 = vmatprep.subr.mxu0 %v2585_v24  ;;  %v1261_v20 = vpop.f32.mrf.mxu1  ;;  %v909_v24 = vadd.f32 %v2981_v14, %v838_v58  ;;  %v2616_v14 = vld [vmem:[#allocation7 + $0x3e0] sm:$0xff]  ;;  %v2623_v55 = vld [vmem:[#allocation7 + $0xf70] sm:$0xff] }
 0x21d   :  { %1838 = vmatprep.subr.mxu1 %v2586_v26  ;;  %1768 = vmatpush2.msra.mxu0 %v2587_v28  ;;  %v2022_v26 = vunpack.c.0.s8 %v2021_v5  ;;  %v1120_v28 = vadd.f32 %v1119_v39, %v1049_v7  ;;  %v907_v32 = vadd.f32 %v2975_v0, %v836_v19  ;;  %v2629_v5 = vld [vmem:[#allocation7 + $0xf18] sm:$0xff]  ;;  %v2630_v7 = vld [vmem:[#allocation7 + $0x328] sm:$0xff] }
 0x21e   :  { %1839 = vmatpush2.msra.mxu1 %v2588_v29  ;;  %1769 = vmatprep.subr.mxu0 %v2589_v33  ;;  %v2611_v29 = vld [vmem:[#allocation7 + $0x1000] sm:$0xff]  ;;  %v2613_v33 = vld [vmem:[#allocation7 + $0xfd8] sm:$0xff]  ;;  %v1263_v39 = vpop.f32.mrf.mxu1 }
 0x21f   :  { %1840 = vmatprep.subr.mxu1 %v2590_v34  ;;  %1770 = vmatpush2.msra.mxu0 %v2591_v36  ;;  %v2614_v34 = vld [vmem:[#allocation7 + $0x3e8] sm:$0xff]  ;;  %v2018_v56 = vcombine.low %v1120_v28, %v1122_v46  ;;  %v1191_v36 = vadd.f32 %v1190_v57, %v3012_v13  ;;  %v2017_v44 = vcombine.low %v907_v32, %v909_v24  ;;  %v2627_v57 = vld [vmem:[#allocation7 + $0xf40] sm:$0xff]  ;;  %v2633_v46 = vld [vmem:[#allocation7 + $0x8f8] sm:$0xff] }
 0x220   :  { %1841 = vmatpush2.msra.mxu1 %v2592_v37  ;;  %1771 = vmatprep.subr.mxu0 %v2593_v42  ;;  %v1193_v37 = vadd.f32 %v1192_v21, %v3015_v3  ;;  %v2617_v42 = vld [vmem:[#allocation7 + $0xfa8] sm:$0xff]  ;;  %v3023_v0 = vsub.s32 %v2022_v26, %v2892_v41  ;;  %v2626_v41 = vld [vmem:[#allocation7 + $0x358] sm:$0xff]  ;;  %v2636_v21 = vld [vmem:[#allocation7 + $0xef0] sm:$0xff] }
 0x221   :  { %1842 = vmatprep.subr.mxu1 %v2594_v43  ;;  %1772 = vmatpush2.msra.mxu0 %v2595_v45  ;;  %v2618_v43 = vld [vmem:[#allocation7 + $0x3b8] sm:$0xff]  ;;  %v2619_v45 = vld [vmem:[#allocation7 + $0xfa0] sm:$0xff]  ;;  %v1262_v53 = vadd.f32 %v1261_v20, %v1191_v36  ;;  %v2635_v20 = vld [vmem:[#allocation7 + $0x8f0] sm:$0xff] }
 0x222   :  { %1843 = vmatpush2.msra.mxu1 %v2596_v47  ;;  %1773 = vmatprep.subr.mxu0 %v2597_v49  ;;  %v2620_v47 = vld [vmem:[#allocation7 + $0x3b0] sm:$0xff]  ;;  %v2622_v49 = vld [vmem:[#allocation7 + $0x388] sm:$0xff]  ;;  %v2033_v51 = vrot.slane %v2018_v56, %v3023_v0  ;;  %v1264_v54 = vadd.f32 %v1263_v39, %v1193_v37  ;;  %v2026_v63 = vrot.slane %v2017_v44, %v3023_v0  ;;  %v2640_v32 = vld [vmem:[#allocation7 + $0xec0] sm:$0xff] }
 0x223   :  { %1844 = vmatprep.subr.mxu1 %v2598_v50  ;;  %1774 = vmatpush2.msra.mxu0 %v2599_v59  ;;  %v2624_v59 = vld [vmem:[#allocation7 + $0x380] sm:$0xff]  ;;  %v2637_v24 = vld [vmem:[#allocation7 + $0x8c8] sm:$0xff]  ;;  %v2643_v56 = vld [vmem:[#allocation7 + $0x890] sm:$0xff] }
 0x224   :  { %1845 = vmatpush2.msra.mxu1 %v2600_v60  ;;  %1775 = vmatprep.subr.mxu0 %v2601_v1  ;;  %v2625_v60 = vld [vmem:[#allocation7 + $0xf48] sm:$0xff]  ;;  %v2628_v1 = vld [vmem:[#allocation7 + $0x350] sm:$0xff]  ;;  %v2648_v39 = vld [vmem:[#allocation7 + $0xe60] sm:$0xff] }
 0x225   :  { %1846 = vmatprep.subr.mxu1 %v2602_v2  ;;  %1776 = vmatpush2.msra.mxu0 %v2603_v9  ;;  %v2041_v9 = vcombine.low %v2026_v63, %v2033_v51  ;;  %v2638_v26 = vld [vmem:[#allocation7 + $0xec8] sm:$0xff]  ;;  %v2644_v36 = vld [vmem:[#allocation7 + $0xe90] sm:$0xff] }
 0x226   :  { %1847 = vmatpush2.msra.mxu1 %v2604_v10  ;;  %1777 = vmatprep.subr.mxu0 %v2605_v12  ;;  %v2631_v10 = vld [vmem:[#allocation7 + $0xf10] sm:$0xff]  ;;  %v2632_v12 = vld [vmem:[#allocation7 + $0x320] sm:$0xff]  ;;  %v2645_v37 = vld [vmem:[#allocation7 + $0x868] sm:$0xff] }
 0x227   :  { %1848 = vmatprep.subr.mxu1 %v2606_v11  ;;  %1778 = vmatpush2.msra.mxu0 %v2607_v16  ;;  %v2042_v11 = vcombine.high %v2026_v63, %v2033_v51  ;;  %v2050_v19 = vrot.slane %v2041_v9, %v3023_v0  ;;  %v2651_v44 = vld [vmem:[#allocation7 + $0x830] sm:$0xff]  ;;  %v2657_v51 = vld [vmem:[#allocation7 + $0x7d8] sm:$0xff]  ;;  %v2672_v9 = vld [vmem:[#allocation7 + $0xd40] sm:$0xff] }
 0x228   :  { %1849 = vmatpush2.msra.mxu1 %v2608_v25  ;;  %1779 = vmatprep.subr.mxu0 %v2609_v6  ;;  %v2634_v25 = vld [vmem:[#allocation7 + $0xef8] sm:$0xff] }
 0x229   :  { %1850 = vmatprep.subr.mxu1 %v2610_v23  ;;  %1780 = vmatpush2.msra.mxu0 %v2611_v29  ;;  %v2665_v63 = vld [vmem:[#allocation7 + $0x778] sm:$0xff] }
 0x22a   :  { %1851 = vmatpush2.msra.mxu1 %v2612_v17  ;;  %1781 = vmatprep.subr.mxu0 %v2613_v33  ;;  %v2639_v17 = vld [vmem:[#allocation7 + $0x8c0] sm:$0xff]  ;;  %v2641_v33 = vld [vmem:[#allocation7 + $0x898] sm:$0xff] }
 0x22b   :  { %1852 = vmatprep.subr.mxu1 %v2614_v34  ;;  %1782 = vmatpush2.msra.mxu0 %v2615_v40  ;;  %v2642_v34 = vld [vmem:[#allocation7 + $0xe98] sm:$0xff]  ;;  %v2646_v40 = vld [vmem:[#allocation7 + $0xe68] sm:$0xff] }
 0x22c   :  { %1853 = vmatpush2.msra.mxu1 %v2616_v14  ;;  %1783 = vmatprep.subr.mxu0 %v2617_v42  ;;  %v2647_v14 = vld [vmem:[#allocation7 + $0x860] sm:$0xff]  ;;  %v2649_v42 = vld [vmem:[#allocation7 + $0x838] sm:$0xff] }
 0x22d   :  { %1854 = vmatprep.subr.mxu1 %v2618_v43  ;;  %1784 = vmatpush2.msra.mxu0 %v2619_v45  ;;  %v2650_v43 = vld [vmem:[#allocation7 + $0xe38] sm:$0xff]  ;;  %v2652_v45 = vld [vmem:[#allocation7 + $0xe30] sm:$0xff] }
 0x22e   :  { %1855 = vmatpush2.msra.mxu1 %v2620_v47  ;;  %1785 = vmatprep.subr.mxu0 %v2621_v48  ;;  %v2653_v47 = vld [vmem:[#allocation7 + $0x808] sm:$0xff] }
 0x22f   :  { %1856 = vmatprep.subr.mxu1 %v2622_v49  ;;  %v1332_v50 = vpop.f32.mrf.mxu0  ;;  %1786 = vmatpush2.msra.mxu0 %v2623_v55  ;;  %v2654_v48 = vld [vmem:[#allocation7 + $0xe08] sm:$0xff]  ;;  %v2655_v49 = vld [vmem:[#allocation7 + $0x800] sm:$0xff]  ;;  %v2660_v55 = vld [vmem:[#allocation7 + $0xdd0] sm:$0xff] }
 0x230   :  { %1857 = vmatpush2.msra.mxu1 %v2624_v59  ;;  %1787 = vmatprep.subr.mxu0 %v2625_v60  ;;  %v1333_v2 = vadd.f32 %v1332_v50, %v1262_v53  ;;  %v2656_v50 = vld [vmem:[#allocation7 + $0xe00] sm:$0xff]  ;;  %v2658_v53 = vld [vmem:[#allocation7 + $0xdd8] sm:$0xff]  ;;  %v2661_v59 = vld [vmem:[#allocation7 + $0x7a8] sm:$0xff] }
 0x231   :  { %1858 = vmatprep.subr.mxu1 %v2626_v41  ;;  %v1334_v61 = vpop.f32.mrf.mxu0  ;;  %1788 = vmatpush2.msra.mxu0 %v2627_v57  ;;  %v2662_v60 = vld [vmem:[#allocation7 + $0xda8] sm:$0xff]  ;;  %v2663_v41 = vld [vmem:[#allocation7 + $0x7a0] sm:$0xff]  ;;  %v2666_v57 = vld [vmem:[#allocation7 + $0xd78] sm:$0xff] }
 0x232   :  { %1859 = vmatpush2.msra.mxu1 %v2628_v1  ;;  %v1335_v4 = vadd.f32 %v1334_v61, %v1264_v54  ;;  %1789 = vmatprep.subr.mxu0 %v2629_v5  ;;  %v2659_v54 = vld [vmem:[#allocation7 + $0x7d0] sm:$0xff]  ;;  %v2664_v61 = vld [vmem:[#allocation7 + $0xda0] sm:$0xff]  ;;  %v2670_v5 = vld [vmem:[#allocation7 + $0xd48] sm:$0xff] }
 0x233   :  { %1860 = vmatprep.subr.mxu1 %v2630_v7  ;;  %1790 = vmatpush2.msra.mxu0 %v2631_v10  ;;  %v2667_v1 = vld [vmem:[#allocation7 + $0x770] sm:$0xff]  ;;  %v2671_v7 = vld [vmem:[#allocation7 + $0x740] sm:$0xff]  ;;  %v2673_v10 = vld [vmem:[#allocation7 + $0x718] sm:$0xff] }
 0x234   :  { %1791 = vmatprep.mubr.f32.mxu0 %v2959_v22  ;;  %v2019_v58 = vcombine.low %v1333_v2, %v1335_v4  ;;  %1861 = vmatpush2.msra.mxu1 %v2632_v12  ;;  %v2668_v2 = vld [vmem:[#allocation7 + $0xd70] sm:$0xff]  ;;  %v2669_v4 = vld [vmem:[#allocation7 + $0x748] sm:$0xff] }
 0x235   :  { %1792 = vmatmul.mubr.f32.vlgmr.msra.gmra.mxu0 %v2951_v15  ;;  %1862 = vmatprep.mubr.f32.mxu1 %v2941_v8  ;;  %v2675_v12 = vld [vmem:[#allocation7 + $0x710] sm:$0xff] }
 0x236   :  { %1869 = vmatprep.subr.mxu0 %v2633_v46  ;;  %v2040_v16 = vrot.slane %v2019_v58, %v3023_v0  ;;  %1940 = vmatprep.subr.mxu1 %v2634_v25  ;;  %v2674_v58 = vld [vmem:[#allocation7 + $0xd18] sm:$0xff]  ;;  %v2677_v46 = vld [vmem:[#allocation7 + $0x6e8] sm:$0xff]  ;;  %v2679_v25 = vld [vmem:[#allocation7 + $0x6e0] sm:$0xff] }
 0x237   :  { %1863 = vmatmul.mubr.f32.vlgmr.msra.gmra.mxu1 %v2937_v18  ;;  %1870 = vmatpush1.msra.mxu0 %v2635_v20  ;;  %v2057_v18 = vrot.slane %v2042_v11, %v3023_v0  ;;  %v2676_v11 = vld [vmem:[#allocation7 + $0xd10] sm:$0xff]  ;;  %v2681_v20 = vld [vmem:[#allocation7 + $0x6b8] sm:$0xff] }
 0x238   :  { %1941 = vmatpush1.msra.mxu1 %v2636_v21  ;;  %v2043_v6 = vcombine.high %v2040_v16, %v2040_v16  ;;  %v2064_v23 = vrot.slane %v2040_v16, %v3023_v0  ;;  %1871 = vmatprep.subr.mxu0 %v2637_v24  ;;  %v2678_v16 = vld [vmem:[#allocation7 + $0xce8] sm:$0xff]  ;;  %v2682_v21 = vld [vmem:[#allocation7 + $0xcb8] sm:$0xff] }
 0x239   :  { %1942 = vmatprep.subr.mxu1 %v2638_v26  ;;  %1872 = vmatpush1.msra.mxu0 %v2639_v17  ;;  %v2685_v24 = vld [vmem:[#allocation7 + $0x688] sm:$0xff]  ;;  %v2690_v17 = vld [vmem:[#allocation7 + $0xc58] sm:$0xff] }
 0x23a   :  { %v2071_v28 = vrot.slane %v2043_v6, %v3023_v0  ;;  %v2072_v29 = vcombine.low %v2050_v19, %v2064_v23  ;;  %1943 = vmatpush1.msra.mxu1 %v2640_v32  ;;  %1873 = vmatprep.subr.mxu0 %v2641_v33  ;;  %v2680_v19 = vld [vmem:[#allocation7 + $0xce0] sm:$0xff]  ;;  %v2683_v6 = vld [vmem:[#allocation7 + $0x6b0] sm:$0xff]  ;;  %v2686_v26 = vld [vmem:[#allocation7 + $0xc88] sm:$0xff] }
 0x23b   :  { %1944 = vmatprep.subr.mxu1 %v2642_v34  ;;  %1874 = vmatpush1.msra.mxu0 %v2643_v56  ;;  %v2684_v23 = vld [vmem:[#allocation7 + $0xcb0] sm:$0xff]  ;;  %v2693_v34 = vld [vmem:[#allocation7 + $0x628] sm:$0xff]  ;;  %v2695_v56 = vld [vmem:[#allocation7 + $0x620] sm:$0xff] }
 0x23c   :  { %v2073_v30 = vcombine.low %v2057_v18, %v2071_v28  ;;  %2080 = vst.msk [vmem:[#allocation8] ss:$2 sm:$0x3f] %vm3035_vm0, %v2072_v29  ;;  %1945 = vmatpush1.msra.mxu1 %v2644_v36  ;;  %1875 = vmatprep.subr.mxu0 %v2645_v37  ;;  %v2687_v18 = vld [vmem:[#allocation7 + $0x680] sm:$0xff]  ;;  %v2689_v29 = vld [vmem:[#allocation7 + $0x658] sm:$0xff]  ;;  %v2691_v32 = vld [vmem:[#allocation7 + $0x650] sm:$0xff] }
 0x23d   :  { %1946 = vmatprep.subr.mxu1 %v2646_v40  ;;  %1876 = vmatpush1.msra.mxu0 %v2647_v14  ;;  %v2688_v28 = vld [vmem:[#allocation7 + $0xc80] sm:$0xff]  ;;  %v2692_v33 = vld [vmem:[#allocation7 + $0xc50] sm:$0xff]  ;;  %v2697_v37 = vld [vmem:[#allocation7 + $0xbf8] sm:$0xff] }
 0x23e   :  { %2082 = vst.msk [vmem:[#allocation8 + $0xc] ss:$2 sm:$0x3f] %vm3035_vm0, %v2073_v30  ;;  %1947 = vmatpush1.msra.mxu1 %v2648_v39  ;;  %1877 = vmatprep.subr.mxu0 %v2649_v42  ;;  %v2694_v30 = vld [vmem:[#allocation7 + $0xc28] sm:$0xff]  ;;  %v2696_v36 = vld [vmem:[#allocation7 + $0xc20] sm:$0xff]  ;;  %v2698_v40 = vld [vmem:[#allocation7 + $0x11f8] sm:$0xff] }
 0x23f   :  { %1948 = vmatprep.subr.mxu1 %v2650_v43  ;;  %1878 = vmatpush1.msra.mxu0 %v2651_v44  ;;  %v2699_v14 = vld [vmem:[#allocation7 + $0xbf0] sm:$0xff]  ;;  %v2701_v42 = vld [vmem:[#allocation7 + $0xbc8] sm:$0xff]  ;;  %v2703_v44 = vld [vmem:[#allocation7 + $0xbc0] sm:$0xff] }
 0x240   :  { %1949 = vmatpush1.msra.mxu1 %v2652_v45  ;;  %1879 = vmatprep.subr.mxu0 %v2653_v47  ;;  %v2700_v39 = vld [vmem:[#allocation7 + $0x11f0] sm:$0xff]  ;;  %v2702_v43 = vld [vmem:[#allocation7 + $0x11c8] sm:$0xff]  ;;  %v2704_v45 = vld [vmem:[#allocation7 + $0x11c0] sm:$0xff] }
 0x241   :  { %1950 = vmatprep.subr.mxu1 %v2654_v48  ;;  %1880 = vmatpush1.msra.mxu0 %v2655_v49  ;;  %v2705_v47 = vld [vmem:[#allocation7 + $0xb98] sm:$0xff]  ;;  %v2707_v49 = vld [vmem:[#allocation7 + $0xb90] sm:$0xff] }
 0x242   :  { %1951 = vmatpush1.msra.mxu1 %v2656_v50  ;;  %1881 = vmatprep.subr.mxu0 %v2657_v51  ;;  %v2706_v48 = vld [vmem:[#allocation7 + $0x1198] sm:$0xff]  ;;  %v2708_v50 = vld [vmem:[#allocation7 + $0x1190] sm:$0xff]  ;;  %v2709_v51 = vld [vmem:[#allocation7 + $0xb68] sm:$0xff] }
 0x243   :  { %1952 = vmatprep.subr.mxu1 %v2658_v53  ;;  %1882 = vmatpush1.msra.mxu0 %v2659_v54  ;;  %v2710_v53 = vld [vmem:[#allocation7 + $0x1168] sm:$0xff]  ;;  %v2711_v54 = vld [vmem:[#allocation7 + $0xb60] sm:$0xff] }
 0x244   :  { %1953 = vmatpush1.msra.mxu1 %v2660_v55  ;;  %1883 = vmatprep.subr.mxu0 %v2661_v59  ;;  %v2712_v55 = vld [vmem:[#allocation7 + $0x1160] sm:$0xff]  ;;  %v2713_v59 = vld [vmem:[#allocation7 + $0xb38] sm:$0xff] }
 0x245   :  { %1954 = vmatprep.subr.mxu1 %v2662_v60  ;;  %1884 = vmatpush1.msra.mxu0 %v2663_v41  ;;  %v2714_v60 = vld [vmem:[#allocation7 + $0x1138] sm:$0xff]  ;;  %v2715_v41 = vld [vmem:[#allocation7 + $0xb30] sm:$0xff] }
 0x246   :  { %1955 = vmatpush1.msra.mxu1 %v2664_v61  ;;  %1885 = vmatprep.subr.mxu0 %v2665_v63  ;;  %v2716_v61 = vld [vmem:[#allocation7 + $0x1130] sm:$0xff]  ;;  %v2717_v63 = vld [vmem:[#allocation7 + $0xb08] sm:$0xff] }
 0x247   :  { %1956 = vmatprep.subr.mxu1 %v2666_v57  ;;  %1886 = vmatpush1.msra.mxu0 %v2667_v1  ;;  %v2718_v57 = vld [vmem:[#allocation7 + $0x1108] sm:$0xff]  ;;  %v2719_v1 = vld [vmem:[#allocation7 + $0xb00] sm:$0xff] }
 0x248   :  { %1957 = vmatpush1.msra.mxu1 %v2668_v2  ;;  %1887 = vmatprep.subr.mxu0 %v2669_v4  ;;  %v2720_v2 = vld [vmem:[#allocation7 + $0x1100] sm:$0xff]  ;;  %v2721_v4 = vld [vmem:[#allocation7 + $0xad8] sm:$0xff] }
 0x249   :  { %1958 = vmatprep.subr.mxu1 %v2670_v5  ;;  %1888 = vmatpush1.msra.mxu0 %v2671_v7  ;;  %v2722_v5 = vld [vmem:[#allocation7 + $0x10d8] sm:$0xff]  ;;  %v2723_v7 = vld [vmem:[#allocation7 + $0xad0] sm:$0xff] }
 0x24a   :  { %1959 = vmatpush1.msra.mxu1 %v2672_v9  ;;  %1889 = vmatprep.subr.mxu0 %v2673_v10  ;;  %v2724_v9 = vld [vmem:[#allocation7 + $0x10d0] sm:$0xff]  ;;  %v2725_v10 = vld [vmem:[#allocation7 + $0xaa8] sm:$0xff] }
 0x24b   :  { %1960 = vmatprep.subr.mxu1 %v2674_v58  ;;  %1890 = vmatpush1.msra.mxu0 %v2675_v12  ;;  %v2726_v58 = vld [vmem:[#allocation7 + $0x10a8] sm:$0xff]  ;;  %v2727_v12 = vld [vmem:[#allocation7 + $0xaa0] sm:$0xff] }
 0x24c   :  { %1961 = vmatpush1.msra.mxu1 %v2676_v11  ;;  %1891 = vmatprep.subr.mxu0 %v2677_v46  ;;  %v2728_v11 = vld [vmem:[#allocation7 + $0x10a0] sm:$0xff]  ;;  %v2729_v46 = vld [vmem:[#allocation7 + $0xa78] sm:$0xff] }
 0x24d   :  { %1962 = vmatprep.subr.mxu1 %v2678_v16  ;;  %1892 = vmatpush1.msra.mxu0 %v2679_v25  ;;  %v2730_v16 = vld [vmem:[#allocation7 + $0x1078] sm:$0xff]  ;;  %v2731_v25 = vld [vmem:[#allocation7 + $0xa70] sm:$0xff] }
 0x24e   :  { %1963 = vmatpush1.msra.mxu1 %v2680_v19  ;;  %1893 = vmatprep.subr.mxu0 %v2681_v20  ;;  %v2732_v19 = vld [vmem:[#allocation7 + $0x1070] sm:$0xff]  ;;  %v2733_v20 = vld [vmem:[#allocation7 + $0xa48] sm:$0xff] }
 0x24f   :  { %1964 = vmatprep.subr.mxu1 %v2682_v21  ;;  %1894 = vmatpush1.msra.mxu0 %v2683_v6  ;;  %v2734_v21 = vld [vmem:[#allocation7 + $0x1048] sm:$0xff]  ;;  %v2735_v6 = vld [vmem:[#allocation7 + $0xa40] sm:$0xff] }
 0x250   :  { %1965 = vmatpush1.msra.mxu1 %v2684_v23  ;;  %1895 = vmatprep.subr.mxu0 %v2685_v24  ;;  %v2736_v23 = vld [vmem:[#allocation7 + $0x1040] sm:$0xff]  ;;  %v2737_v24 = vld [vmem:[#allocation7 + $0xa18] sm:$0xff] }
 0x251   :  { %1966 = vmatprep.subr.mxu1 %v2686_v26  ;;  %1896 = vmatpush1.msra.mxu0 %v2687_v18  ;;  %v2738_v26 = vld [vmem:[#allocation7 + $0x1018] sm:$0xff]  ;;  %v2739_v18 = vld [vmem:[#allocation7 + $0xa10] sm:$0xff] }
 0x252   :  { %1967 = vmatpush1.msra.mxu1 %v2688_v28  ;;  %1897 = vmatprep.subr.mxu0 %v2689_v29  ;;  %v2740_v28 = vld [vmem:[#allocation7 + $0x1010] sm:$0xff]  ;;  %v2741_v29 = vld [vmem:[#allocation7 + $0x9e8] sm:$0xff] }
 0x253   :  { %1968 = vmatprep.subr.mxu1 %v2690_v17  ;;  %1898 = vmatpush1.msra.mxu0 %v2691_v32  ;;  %v2742_v17 = vld [vmem:[#allocation7 + $0xfe8] sm:$0xff]  ;;  %v2743_v32 = vld [vmem:[#allocation7 + $0x9e0] sm:$0xff] }
 0x254   :  { %1969 = vmatpush1.msra.mxu1 %v2692_v33  ;;  %1899 = vmatprep.subr.mxu0 %v2693_v34  ;;  %v2744_v33 = vld [vmem:[#allocation7 + $0xfe0] sm:$0xff]  ;;  %v2745_v34 = vld [vmem:[#allocation7 + $0x9b8] sm:$0xff] }
 0x255   :  { %1970 = vmatprep.subr.mxu1 %v2694_v30  ;;  %1900 = vmatpush1.msra.mxu0 %v2695_v56  ;;  %v2746_v30 = vld [vmem:[#allocation7 + $0xfb8] sm:$0xff]  ;;  %v2747_v56 = vld [vmem:[#allocation7 + $0x9b0] sm:$0xff] }
 0x256   :  { %1971 = vmatpush1.msra.mxu1 %v2696_v36  ;;  %1901 = vmatprep.subr.mxu0 %v2697_v37  ;;  %v2748_v36 = vld [vmem:[#allocation7 + $0xfb0] sm:$0xff]  ;;  %v2749_v37 = vld [vmem:[#allocation7 + $0x988] sm:$0xff] }
 0x257   :  { %1972 = vmatprep.subr.mxu1 %v2698_v40  ;;  %1902 = vmatpush2.msra.mxu0 %v2699_v14  ;;  %v2750_v40 = vld [vmem:[#allocation7 + $0xf88] sm:$0xff]  ;;  %v2751_v14 = vld [vmem:[#allocation7 + $0x980] sm:$0xff] }
 0x258   :  { %1973 = vmatpush2.msra.mxu1 %v2700_v39  ;;  %1903 = vmatprep.subr.mxu0 %v2701_v42  ;;  %v2752_v39 = vld [vmem:[#allocation7 + $0xf80] sm:$0xff]  ;;  %v2753_v42 = vld [vmem:[#allocation7 + $0x958] sm:$0xff] }
 0x259   :  { %1974 = vmatprep.subr.mxu1 %v2702_v43  ;;  %1904 = vmatpush2.msra.mxu0 %v2703_v44  ;;  %v2754_v43 = vld [vmem:[#allocation7 + $0xf58] sm:$0xff]  ;;  %v2755_v44 = vld [vmem:[#allocation7 + $0x950] sm:$0xff] }
 0x25a   :  { %1975 = vmatpush2.msra.mxu1 %v2704_v45  ;;  %1905 = vmatprep.subr.mxu0 %v2705_v47  ;;  %v2756_v45 = vld [vmem:[#allocation7 + $0xf50] sm:$0xff]  ;;  %v2757_v47 = vld [vmem:[#allocation7 + $0x928] sm:$0xff] }
 0x25b   :  { %1976 = vmatprep.subr.mxu1 %v2706_v48  ;;  %1906 = vmatpush2.msra.mxu0 %v2707_v49  ;;  %v2758_v48 = vld [vmem:[#allocation7 + $0xf28] sm:$0xff]  ;;  %v2759_v49 = vld [vmem:[#allocation7 + $0x920] sm:$0xff] }
 0x25c   :  { %1977 = vmatpush2.msra.mxu1 %v2708_v50  ;;  %1907 = vmatprep.subr.mxu0 %v2709_v51  ;;  %v2760_v50 = vld [vmem:[#allocation7 + $0xf20] sm:$0xff]  ;;  %v1438_v51 = vpop.f32.mrf.mxu1 }
 0x25d   :  { %1978 = vmatprep.subr.mxu1 %v2710_v53  ;;  %1908 = vmatpush2.msra.mxu0 %v2711_v54 }
 0x25e   :  { %1979 = vmatpush2.msra.mxu1 %v2712_v55  ;;  %1909 = vmatprep.subr.mxu0 %v2713_v59  ;;  %v1440_v54 = vpop.f32.mrf.mxu1 }
 0x25f   :  { %1980 = vmatprep.subr.mxu1 %v2714_v60  ;;  %1910 = vmatpush2.msra.mxu0 %v2715_v41 }
 0x260   :  { %1981 = vmatpush2.msra.mxu1 %v2716_v61  ;;  %1911 = vmatprep.subr.mxu0 %v2717_v63 }
 0x261   :  { %1982 = vmatprep.subr.mxu1 %v2718_v57  ;;  %1912 = vmatpush2.msra.mxu0 %v2719_v1 }
 0x262   :  { %1983 = vmatpush2.msra.mxu1 %v2720_v2  ;;  %1913 = vmatprep.subr.mxu0 %v2721_v4  ;;  %v1441_v2 = vadd.f32 %v1440_v54, %v2994_v31 }
 0x263   :  { %1984 = vmatprep.subr.mxu1 %v2722_v5  ;;  %1914 = vmatpush2.msra.mxu0 %v2723_v7 }
 0x264   :  { %1985 = vmatpush2.msra.mxu1 %v2724_v9  ;;  %1915 = vmatprep.subr.mxu0 %v2725_v10 }
 0x265   :  { %1986 = vmatprep.subr.mxu1 %v2726_v58  ;;  %1916 = vmatpush2.msra.mxu0 %v2727_v12 }
 0x266   :  { %1987 = vmatpush2.msra.mxu1 %v2728_v11  ;;  %1917 = vmatprep.subr.mxu0 %v2729_v46 }
 0x267   :  { %1988 = vmatprep.subr.mxu1 %v2730_v16  ;;  %1918 = vmatpush2.msra.mxu0 %v2731_v25 }
 0x268   :  { %1989 = vmatpush2.msra.mxu1 %v2732_v19  ;;  %1919 = vmatprep.subr.mxu0 %v2733_v20 }
 0x269   :  { %1990 = vmatprep.subr.mxu1 %v2734_v21  ;;  %1920 = vmatpush2.msra.mxu0 %v2735_v6 }
 0x26a   :  { %1991 = vmatpush2.msra.mxu1 %v2736_v23  ;;  %1921 = vmatprep.subr.mxu0 %v2737_v24 }
 0x26b   :  { %1992 = vmatprep.subr.mxu1 %v2738_v26  ;;  %1922 = vmatpush2.msra.mxu0 %v2739_v18 }
 0x26c   :  { %1993 = vmatpush2.msra.mxu1 %v2740_v28  ;;  %1923 = vmatprep.subr.mxu0 %v2741_v29 }
 0x26d   :  { %1994 = vmatprep.subr.mxu1 %v2742_v17  ;;  %1924 = vmatpush2.msra.mxu0 %v2743_v32 }
 0x26e   :  { %1995 = vmatpush2.msra.mxu1 %v2744_v33  ;;  %1925 = vmatprep.subr.mxu0 %v2745_v34 }
 0x26f   :  { %1996 = vmatprep.subr.mxu1 %v2746_v30  ;;  %1926 = vmatpush2.msra.mxu0 %v2747_v56 }
 0x270   :  { %1997 = vmatpush2.msra.mxu1 %v2748_v36  ;;  %1927 = vmatprep.subr.mxu0 %v2749_v37 }
 0x271   :  { %1998 = vmatprep.subr.mxu1 %v2750_v40  ;;  %1928 = vmatpush2.msra.mxu0 %v2751_v14  ;;  %v1509_v53 = vpop.f32.mrf.mxu0 }
 0x272   :  { %1999 = vmatpush2.msra.mxu1 %v2752_v39  ;;  %1929 = vmatprep.subr.mxu0 %v2753_v42 }
 0x273   :  { %2000 = vmatprep.subr.mxu1 %v2754_v43  ;;  %1930 = vmatpush2.msra.mxu0 %v2755_v44  ;;  %v1580_v55 = vpop.f32.mrf.mxu1  ;;  %v1511_v59 = vpop.f32.mrf.mxu0 }
 0x274   :  { %2001 = vmatpush2.msra.mxu1 %v2756_v45  ;;  %1931 = vmatprep.subr.mxu0 %v2757_v47  ;;  %v1512_v4 = vadd.f32 %v1511_v59, %v1441_v2 }
 0x275   :  { %2002 = vmatprep.subr.mxu1 %v2758_v48  ;;  %1932 = vmatpush2.msra.mxu0 %v2759_v49  ;;  %v1582_v41 = vpop.f32.mrf.mxu1 }
 0x276   :  { %1933 = vmatprep.mubr.f32.mxu0 %v2955_v52  ;;  %2003 = vmatpush2.msra.mxu1 %v2760_v50  ;;  %v1583_v12 = vadd.f32 %v1582_v41, %v1512_v4 }
 0x277   :  { %2004 = vmatprep.mubr.f32.mxu1 %v2959_v22  ;;  %1934 = vmatmul.mubr.f32.vlgmr.msra.gmra.mxu0 %v2949_v62 }
 0x278   :  { %2005 = vmatmul.mubr.f32.vlgmr.msra.gmra.mxu1 %v2951_v15  ;;  %v1439_v15 = vadd.f32 %v1438_v51, %v3000_v38 }
 0x27a   :  { %v1510_v9 = vadd.f32 %v1509_v53, %v1439_v15 }
 0x27c   :  { %v1581_v16 = vadd.f32 %v1580_v55, %v1510_v9 }
 0x27e   :  { %v2089_v20 = vcombine.low %v1581_v16, %v1583_v12 }
 0x280   :  { %v2098_v26 = vrot.slane %v2089_v20, %v3023_v0 }
 0x2b3   :  { %v1651_v60 = vpop.f32.mrf.mxu0 }
 0x2b4   :  { %v1652_v22 = vadd.f32 %v1651_v60, %v2997_v35 }
 0x2b5   :  { %v1722_v61 = vpop.f32.mrf.mxu1  ;;  %v1653_v63 = vpop.f32.mrf.mxu0 }
 0x2b6   :  { %v1654_v52 = vadd.f32 %v1653_v63, %v2991_v27  ;;  %v1723_v10 = vadd.f32 %v1722_v61, %v1652_v22 }
 0x2b7   :  { %v1724_v1 = vpop.f32.mrf.mxu1 }
 0x2b8   :  { %v1725_v5 = vadd.f32 %v1724_v1, %v1654_v52 }
 0x2f5   :  { %v1793_v57 = vpop.f32.mrf.mxu0 }
 0x2f6   :  { %v1794_v11 = vadd.f32 %v1793_v57, %v1723_v10 }
 0x2f7   :  { %v1795_v62 = vpop.f32.mrf.mxu0  ;;  %v1864_v7 = vpop.f32.mrf.mxu1 }
 0x2f8   :  { %v1796_v58 = vadd.f32 %v1795_v62, %v1725_v5  ;;  %v1865_v27 = vadd.f32 %v1864_v7, %v3012_v13 }
 0x2f9   :  { %v1866_v46 = vpop.f32.mrf.mxu1 }
 0x2fa   :  { %v2090_v25 = vcombine.low %v1794_v11, %v1796_v58  ;;  %v1867_v35 = vadd.f32 %v1866_v46, %v3015_v3 }
 0x2fc   :  { %v2105_v6 = vrot.slane %v2090_v25, %v3023_v0 }
 0x2fe   :  { %v2113_v29 = vcombine.low %v2098_v26, %v2105_v6  ;;  %v2114_v32 = vcombine.high %v2098_v26, %v2105_v6 }
 0x300   :  { %v2122_v33 = vrot.slane %v2113_v29, %v3023_v0  ;;  %v2129_v30 = vrot.slane %v2114_v32, %v3023_v0 }
 0x337   :  { %v1935_v19 = vpop.f32.mrf.mxu0 }
 0x338   :  { %v2006_v31 = vpop.f32.mrf.mxu1  ;;  %v1936_v21 = vadd.f32 %v1935_v19, %v1865_v27 }
 0x339   :  { %v1937_v38 = vpop.f32.mrf.mxu0 }
 0x33a   :  { %v1938_v23 = vadd.f32 %v1937_v38, %v1867_v35  ;;  %v2008_v24 = vpop.f32.mrf.mxu1  ;;  %v2007_v18 = vadd.f32 %v2006_v31, %v1936_v21 }
 0x33c   :  { %v2009_v28 = vadd.f32 %v2008_v24, %v1938_v23 }
 0x33e   :  { %v2091_v17 = vcombine.low %v2007_v18, %v2009_v28 }
 0x340   :  { %v2112_v13 = vrot.slane %v2091_v17, %v3023_v0 }
 0x342   :  { %v2115_v34 = vcombine.high %v2112_v13, %v2112_v13  ;;  %v2136_v3 = vrot.slane %v2112_v13, %v3023_v0 }
 0x344   :  { %v2143_v56 = vrot.slane %v2115_v34, %v3023_v0  ;;  %v2144_v36 = vcombine.low %v2122_v33, %v2136_v3 }
 0x346   :  { %v2145_v37 = vcombine.low %v2129_v30, %v2143_v56  ;;  %2149 = vst.msk [vmem:[#allocation8 + $0x1] ss:$2 sm:$0x3f] %vm3035_vm0, %v2144_v36 }
 0x348   :  { %2151 = vst.msk [vmem:[#allocation8 + $0xd] ss:$2 sm:$0x3f] %vm3035_vm0, %v2145_v37 }
 0x349   :  { %2832 = shalt.err (!%p2829_p5)
}
 0x34a   :  { %s2855_s7 = smov 192   ;;  %s2856_s8 = smov 12  }
 0x34b   :  { %2163 = dma.vmem_to_hbm [thread:$0]  %s2158_s5, 384, %s3073_s4, [#allocation4], %s2855_s7, %s2855_s7, %s2856_s8  }
 0x34c   :  { %2845 = dma.done.wait [#allocation4], 384  }
 0x34d   :  { %2846 = vsyncadd [#allocation4], 4294966912 }
 0x34e   :  { %2167 = vsyncpa [#allocation3], 1 }
 0x34f   :  { %2168 = vsyncpa [#allocation6], 1 }
 0x350   :  { %2169 = vsyncpa [#allocation4], 1 }

</bundles_post_ra>
